<compile_context>
chip_gen: v7x
topology: tpu7x:2x2x1
jax: 0.10.0
libtpu: 0.0.40
codegen_flags: <defaults>
</compile_context>

<pallas_src>
import math
from functools import partial

import jax
import jax.numpy as jnp
from jax.experimental import pallas as pl
from jax.experimental.pallas import tpu as pltpu

DIM_FF = 2048  # nn.TransformerEncoderLayer default dim_feedforward


# ----------------------------------------------------------------------------
# positional encoding (matches the PyTorch PositionalEncoding buffer)
# ----------------------------------------------------------------------------
def positional_encoding(max_len, d_model):
    position = jnp.arange(max_len, dtype=jnp.float32)[:, None]
    div_term = jnp.exp(
        jnp.arange(0, d_model, 2, dtype=jnp.float32) * (-math.log(10000.0) / d_model)
    )
    pe = jnp.zeros((max_len, d_model), jnp.float32)
    pe = pe.at[:, 0::2].set(jnp.sin(position * div_term))
    pe = pe.at[:, 1::2].set(jnp.cos(position * div_term))
    return pe


# ----------------------------------------------------------------------------
# Kernel 1: fused embedding + positional encoding + transformer encoder stack
# ----------------------------------------------------------------------------
def _encoder_stack_kernel(
    x_ref, ew_ref, peb_ref, perm_ref,
    wqkv_ref, bqkv_ref, wo_ref, vec_ref, w1_ref, b1_ref, w2_ref,
    o_ref,   # output (S*B, D): row-permuted hidden state (valid after last layer)
    h_ref,   # VMEM scratch (B*S, D): hidden state carried across the layer axis
    *, B, S, D, H,
):
    hd = D // H
    scale = 1.0 / math.sqrt(hd)
    layer = pl.program_id(0)

    # embedding + positional encoding (tiny; recomputed each step and selected at
    # layer 0 -- avoids a scratch store->reload on step 0's critical path).
    emb = jnp.dot(x_ref[...].reshape(B * S, -1), ew_ref[...],
                  preferred_element_type=jnp.float32)
    emb = (emb.reshape(B, S, D) + peb_ref[...]).reshape(B * S, D)
    h = jnp.where(layer == 0, emb, h_ref[...])

    # fused QKV projection: one matmul + one bias row
    qkv = jnp.dot(h, wqkv_ref[...], preferred_element_type=jnp.float32) + bqkv_ref[...]
    qkv3 = qkv.reshape(B, S, 3 * D)

    # per-head self-attention; per-head out-projection slices avoid the lane-axis
    # concatenation of head contexts (contributions are summed instead).
    attn = None
    for hh in range(H):
        lo = hh * hd
        q_h = qkv3[:, :, lo:lo + hd]
        k_h = qkv3[:, :, D + lo:D + lo + hd]
        v_h = qkv3[:, :, 2 * D + lo:2 * D + lo + hd]
        s = jnp.einsum("bqd,bkd->bqk", q_h, k_h,
                       preferred_element_type=jnp.float32) * scale
        s = s - jnp.max(s, axis=-1, keepdims=True)
        p = jnp.exp(s)
        p = p / jnp.sum(p, axis=-1, keepdims=True)          # exact softmax
        ctx = jnp.einsum("bqk,bkd->bqd", p, v_h,
                         preferred_element_type=jnp.float32)
        part = jnp.dot(ctx.reshape(B * S, hd), wo_ref[lo:lo + hd, :],
                       preferred_element_type=jnp.float32)
        attn = part if attn is None else attn + part
    attn = attn + vec_ref[0:1, :]                           # out_proj bias

    # residual + LayerNorm1
    h1 = h + attn
    mu = jnp.mean(h1, axis=-1, keepdims=True)
    var = jnp.mean((h1 - mu) ** 2, axis=-1, keepdims=True)
    h1 = (h1 - mu) * jax.lax.rsqrt(var + 1e-5) * vec_ref[1:2, :] + vec_ref[2:3, :]

    # feed-forward (ReLU)
    ff = jnp.dot(h1, w1_ref[...], preferred_element_type=jnp.float32) + b1_ref[...]
    ff = jnp.maximum(ff, 0.0)
    ff = jnp.dot(ff, w2_ref[...], preferred_element_type=jnp.float32) + vec_ref[3:4, :]

    # residual + LayerNorm2
    h2 = h1 + ff
    mu = jnp.mean(h2, axis=-1, keepdims=True)
    var = jnp.mean((h2 - mu) ** 2, axis=-1, keepdims=True)
    h2 = (h2 - mu) * jax.lax.rsqrt(var + 1e-5) * vec_ref[4:5, :] + vec_ref[5:6, :]

    h_ref[...] = h2
    # PyTorch's h.transpose(0,1).reshape(-1, S*D) hand-off, expressed as a row
    # permutation matmul (MXU, trivial) so the wrapper only needs a contiguous
    # reshape (S*B, D) -> (B, S*D).
    o_ref[...] = jnp.dot(perm_ref[...], h2, preferred_element_type=jnp.float32)


# ----------------------------------------------------------------------------
# Kernel 2: fused q_* heads + reparameterization + decoder
# ----------------------------------------------------------------------------
def _head_decoder_kernel(
    hf_ref, eps_ref,
    q_wcat_ref, q_bcat_ref, q_wt_ref, q_wy_ref, q_wz_ref,
    d_wz1_ref, d_bz1_ref, d_wpx2_ref, d_bpx2_ref, d_wti2_ref, d_bti2_ref,
    d_wc1z_ref, d_wc1t_ref, d_bc1_ref, d_wc2_ref, d_bc2_ref,
    ti_ref, t_ref, y_ref, mu_ref, lv_ref,
    pxm_ref, pxl_ref, pti_ref, pt_ref, ydec_ref, yt0_ref, yt1_ref,
    *, dim_z, seq_len, hdim, n_x,
):
    hf = hf_ref[...]                                        # (B, S*D) lane-dense
    # one matmul against all four heads' hf-facing weights
    base = jnp.dot(hf, q_wcat_ref[...],
                   preferred_element_type=jnp.float32) + q_bcat_ref[...]
    ti = base[:, 0:1]                                       # t_indirect_pred
    t = 1.0 / (1.0 + jnp.exp(-(base[:, 1:2] + ti * q_wt_ref[...])))    # t_pred
    wy = q_wy_ref[...]                                      # (1, 2)
    y = base[:, 2:3] + ti * wy[:, 0:1] + t * wy[:, 1:2]     # y_pred
    wz = q_wz_ref[...]                                      # (3, 2Z)
    qz = base[:, 3:] + ti * wz[0:1, :] + t * wz[1:2, :] + y * wz[2:3, :]
    mu = qz[:, :dim_z]
    logvar = qz[:, dim_z:]

    ti_ref[...] = ti
    t_ref[...] = t
    y_ref[...] = y
    mu_ref[...] = mu
    lv_ref[...] = logvar

    # reparameterize: z = mu + eps * exp(0.5*logvar)
    z = mu + eps_ref[...] * jnp.exp(0.5 * logvar)

    # p_x and p_t_indirect share a fused first layer (disjoint output columns)
    hz = jnp.dot(z, d_wz1_ref[...], preferred_element_type=jnp.float32) + d_bz1_ref[...]
    hz = jnp.maximum(hz, 0.0)                               # (B, hdim + d_model)
    px = jnp.dot(hz[:, :hdim], d_wpx2_ref[...],
                 preferred_element_type=jnp.float32) + d_bpx2_ref[...]   # (B, 2*n_x)
    p_ti = jnp.dot(hz[:, hdim:], d_wti2_ref[...],
                   preferred_element_type=jnp.float32) + d_bti2_ref[...]  # (B, S)
    pxm_ref[...] = px[:, :n_x]
    pxl_ref[...] = px[:, n_x:]
    pti_ref[...] = p_ti

    # p_t / p_y_t0 / p_y_t1: first layers fused; the [z, t_indirect] concat is
    # replaced by two matmuls (z-part + ti-part weights); second layers are
    # block-diagonal so one matmul covers all three.
    hc = (jnp.dot(z, d_wc1z_ref[...], preferred_element_type=jnp.float32)
          + jnp.dot(p_ti, d_wc1t_ref[...], preferred_element_type=jnp.float32)
          + d_bc1_ref[...])
    hc = jnp.maximum(hc, 0.0)                               # (B, 3*d_model)
    oc = jnp.dot(hc, d_wc2_ref[...],
                 preferred_element_type=jnp.float32) + d_bc2_ref[...]     # (B, 3*S)
    pt = 1.0 / (1.0 + jnp.exp(-oc[:, :seq_len]))            # p_t (sigmoid)
    yt0 = oc[:, seq_len:2 * seq_len]
    yt1 = oc[:, 2 * seq_len:]
    pt_ref[...] = pt
    yt0_ref[...] = yt0
    yt1_ref[...] = yt1
    ydec_ref[...] = (1.0 - pt) * yt0 + pt * yt1


# ----------------------------------------------------------------------------
# parameters
# ----------------------------------------------------------------------------
def init_params(key, dim_x, seq_len, dim_z, d_model, nhead, num_layers):
    """PyTorch-layout parameters (W: (fout, fin))."""
    keys = iter(jax.random.split(key, 256))

    def lin(fin, fout):
        w = jax.random.normal(next(keys), (fout, fin), jnp.float32) / math.sqrt(fin)
        b = jax.random.normal(next(keys), (fout,), jnp.float32) * 0.01
        return {"w": w, "b": b}

    params = {"embedding": lin(dim_x, d_model), "layers": []}
    for _ in range(num_layers):
        params["layers"].append({
            "in_proj": lin(d_model, 3 * d_model),
            "out_proj": lin(d_model, d_model),
            "ln1_g": jnp.ones((d_model,), jnp.float32),
            "ln1_b": jnp.zeros((d_model,), jnp.float32),
            "lin1": lin(d_model, DIM_FF),
            "lin2": lin(DIM_FF, d_model),
            "ln2_g": jnp.ones((d_model,), jnp.float32),
            "ln2_b": jnp.zeros((d_model,), jnp.float32),
        })
    hdim = d_model * seq_len
    params["q_t_indirect"] = lin(hdim, 1)
    params["q_t"] = lin(hdim + 1, 1)
    params["q_y"] = lin(hdim + 2, 1)
    params["q_z"] = lin(hdim + 3, 2 * dim_z)
    params["p_x"] = (lin(dim_z, hdim), lin(hdim, 2 * dim_x * seq_len))
    params["p_t_indirect"] = (lin(dim_z, d_model), lin(d_model, seq_len))
    params["p_t"] = (lin(dim_z + seq_len, d_model), lin(d_model, seq_len))
    params["p_y_t0"] = (lin(dim_z + seq_len, d_model), lin(d_model, seq_len))
    params["p_y_t1"] = (lin(dim_z + seq_len, d_model), lin(d_model, seq_len))
    return params


def prepare_params(params, *, seq_len, d_model, nhead, dim_z):
    """One-time repacking for the kernels: transposes, per-layer weight packing
    (QKV fused, all (1,D) vectors in one block), fused head / decoder blocks."""
    assert d_model % nhead == 0, "d_model must be divisible by nhead"
    assert d_model % 2 == 0, "positional encoding needs even d_model"
    D, S = d_model, seq_len
    SD = S * D
    layers = params["layers"]

    def stk(fn):
        return jnp.stack([fn(lp) for lp in layers], axis=0)

    prep = {
        "emb_wt": params["embedding"]["w"].T,                    # (dim_x, D)
        # positional encoding with the embedding bias folded in      (S, D)
        "pe_b": positional_encoding(S, D) + params["embedding"]["b"][None, :],
        "wqkv": stk(lambda lp: lp["in_proj"]["w"].T),            # (L, D, 3D)
        "bqkv": stk(lambda lp: lp["in_proj"]["b"].reshape(1, 3 * D)),
        "wo_t": stk(lambda lp: lp["out_proj"]["w"].T),           # (L, D, D)
        # packed per-layer (1,D) vectors: [bo, g1, be1, b2, g2, be2]  (L, 6, D)
        "vec6": stk(lambda lp: jnp.stack(
            [lp["out_proj"]["b"], lp["ln1_g"], lp["ln1_b"],
             lp["lin2"]["b"], lp["ln2_g"], lp["ln2_b"]], axis=0)),
        "w1": stk(lambda lp: lp["lin1"]["w"].T),                 # (L, D, FF)
        "b1": stk(lambda lp: lp["lin1"]["b"].reshape(1, DIM_FF)),
        "w2": stk(lambda lp: lp["lin2"]["w"].T),                 # (L, FF, D)
    }

    # --- fused encoder heads ---------------------------------------------------
    W_ti, b_ti = params["q_t_indirect"]["w"], params["q_t_indirect"]["b"]
    W_t, b_t = params["q_t"]["w"], params["q_t"]["b"]
    W_y, b_y = params["q_y"]["w"], params["q_y"]["b"]
    W_z, b_z = params["q_z"]["w"], params["q_z"]["b"]
    prep["q_wcat"] = jnp.concatenate(
        [W_ti, W_t[:, :SD], W_y[:, :SD], W_z[:, :SD]], axis=0).T       # (SD, 3+2Z)
    prep["q_bcat"] = jnp.concatenate([b_ti, b_t, b_y, b_z]).reshape(1, -1)
    prep["q_wt_x"] = W_t[:, SD:SD + 1]                                 # (1, 1)
    prep["q_wy_x"] = W_y[:, SD:SD + 2]                                 # (1, 2)
    prep["q_wz_x"] = W_z[:, SD:SD + 3].T                               # (3, 2Z)

    # --- fused decoder -----------------------------------------------------------
    px1, px2 = params["p_x"]
    ti1, ti2 = params["p_t_indirect"]
    pt1, pt2 = params["p_t"]
    y01, y02 = params["p_y_t0"]
    y11, y12 = params["p_y_t1"]
    prep["d_wz1"] = jnp.concatenate([px1["w"].T, ti1["w"].T], axis=1)  # (Z, SD+D)
    prep["d_bz1"] = jnp.concatenate([px1["b"], ti1["b"]]).reshape(1, -1)
    prep["d_wpx2"] = px2["w"].T                                        # (SD, 2*dx*S)
    prep["d_bpx2"] = px2["b"].reshape(1, -1)
    prep["d_wti2"] = ti2["w"].T                                        # (D, S)
    prep["d_bti2"] = ti2["b"].reshape(1, -1)
    # split the (Z+S, D) first-layer weights into z-part and t_indirect-part so
    # the kernel avoids a lane-axis concat of [z, t_indirect]
    prep["d_wc1z"] = jnp.concatenate(
        [pt1["w"].T[:dim_z], y01["w"].T[:dim_z], y11["w"].T[:dim_z]], axis=1)  # (Z, 3D)
    prep["d_wc1t"] = jnp.concatenate(
        [pt1["w"].T[dim_z:], y01["w"].T[dim_z:], y11["w"].T[dim_z:]], axis=1)  # (S, 3D)
    prep["d_bc1"] = jnp.concatenate([pt1["b"], y01["b"], y11["b"]]).reshape(1, -1)
    wc2 = jnp.zeros((3 * D, 3 * S), jnp.float32)                       # block-diag
    wc2 = wc2.at[0:D, 0:S].set(pt2["w"].T)
    wc2 = wc2.at[D:2 * D, S:2 * S].set(y02["w"].T)
    wc2 = wc2.at[2 * D:, 2 * S:].set(y12["w"].T)
    prep["d_wc2"] = wc2
    prep["d_bc2"] = jnp.concatenate([pt2["b"], y02["b"], y12["b"]]).reshape(1, -1)
    return prep


# ----------------------------------------------------------------------------
# forward
# ----------------------------------------------------------------------------
def cevt_forward(prep, x, eps_key, *, seq_len, dim_z, d_model, nhead):
    B, S, dim_x = x.shape
    D = d_model
    SD = S * D
    L = prep["wqkv"].shape[0]

    # Row-permutation matrix realizing PyTorch's h.transpose(0,1).reshape(-1,S*D)
    # (constant at trace time -> folded by XLA; note this literally reproduces the
    # reference, which interleaves batch samples within each hf row when B > 1).
    perm = (jnp.eye(B * S, dtype=jnp.float32)
            .reshape(B, S, B * S).transpose(1, 0, 2).reshape(S * B, B * S))

    enc_args = (x, prep["emb_wt"], prep["pe_b"], perm,
                prep["wqkv"], prep["bqkv"], prep["wo_t"], prep["vec6"],
                prep["w1"], prep["b1"], prep["w2"])

    def bcast_spec(a):
        n = a.ndim
        return pl.BlockSpec(a.shape, lambda l, _n=n: (0,) * _n)

    def layer_spec(a):
        n = a.ndim
        return pl.BlockSpec((None,) + tuple(a.shape[1:]),
                            lambda l, _n=n: (l,) + (0,) * (_n - 1))

    in_specs = [bcast_spec(a) for a in enc_args[:4]] + \
               [layer_spec(a) for a in enc_args[4:]]

    # --- encoder: embedding + PE + all layers in ONE pallas_call ---------------
    h_perm = pl.pallas_call(
        partial(_encoder_stack_kernel, B=B, S=S, D=D, H=nhead),
        grid=(L,),
        in_specs=in_specs,
        out_specs=pl.BlockSpec((S * B, D), lambda l: (0, 0)),
        out_shape=jax.ShapeDtypeStruct((S * B, D), jnp.float32),
        scratch_shapes=[pltpu.VMEM((B * S, D), jnp.float32)],
        compiler_params=pltpu.CompilerParams(dimension_semantics=("arbitrary",)),
    )(*enc_args)

    hf = h_perm.reshape(B, SD)                 # contiguous reshape, lane-dense
    eps = jax.random.normal(eps_key, (B, dim_z), jnp.float32)  # randn_like

    # --- heads + reparameterize + decoder in ONE pallas_call --------------------
    hd_args = (hf, eps,
               prep["q_wcat"], prep["q_bcat"], prep["q_wt_x"], prep["q_wy_x"],
               prep["q_wz_x"],
               prep["d_wz1"], prep["d_bz1"], prep["d_wpx2"], prep["d_bpx2"],
               prep["d_wti2"], prep["d_bti2"],
               prep["d_wc1z"], prep["d_wc1t"], prep["d_bc1"],
               prep["d_wc2"], prep["d_bc2"])

    n_x = dim_x * S
    out_shapes = (
        jax.ShapeDtypeStruct((B, 1), jnp.float32),      # t_indirect_pred
        jax.ShapeDtypeStruct((B, 1), jnp.float32),      # t_pred
        jax.ShapeDtypeStruct((B, 1), jnp.float32),      # y_pred
        jax.ShapeDtypeStruct((B, dim_z), jnp.float32),  # q_z_mu
        jax.ShapeDtypeStruct((B, dim_z), jnp.float32),  # q_z_logvar
        jax.ShapeDtypeStruct((B, n_x), jnp.float32),    # p_x_mu (flat)
        jax.ShapeDtypeStruct((B, n_x), jnp.float32),    # p_x_logvar (flat)
        jax.ShapeDtypeStruct((B, S), jnp.float32),      # p_t_indirect
        jax.ShapeDtypeStruct((B, S), jnp.float32),      # p_t
        jax.ShapeDtypeStruct((B, S), jnp.float32),      # y_pred_dec
        jax.ShapeDtypeStruct((B, S), jnp.float32),      # y_t0
        jax.ShapeDtypeStruct((B, S), jnp.float32),      # y_t1
    )

    def full_spec(shape):
        n = len(shape)
        return pl.BlockSpec(shape, lambda i, _n=n: (0,) * _n)

    outs = pl.pallas_call(
        partial(_head_decoder_kernel, dim_z=dim_z, seq_len=S, hdim=SD, n_x=n_x),
        grid=(1,),
        in_specs=[full_spec(a.shape) for a in hd_args],
        out_specs=tuple(full_spec(s.shape) for s in out_shapes),
        out_shape=out_shapes,
    )(*hd_args)

    (t_indirect_pred, t_pred, y_pred, q_z_mu, q_z_logvar,
     p_x_mu_f, p_x_logvar_f, p_t_indirect, p_t, y_dec, y_t0, y_t1) = outs

    return {
        "t_indirect_pred": t_indirect_pred, "t_pred": t_pred, "y_pred": y_pred,
        "q_z_mu": q_z_mu, "q_z_logvar": q_z_logvar,
        "p_x_mu": p_x_mu_f.reshape(B, S, dim_x),
        "p_x_logvar": p_x_logvar_f.reshape(B, S, dim_x),
        "p_t_indirect": p_t_indirect, "p_t": p_t,
        "y_pred_dec": y_dec, "y_t0": y_t0, "y_t1": y_t1,
    }


# ----------------------------------------------------------------------------
if __name__ == "__main__":
    B, S, dim_x = 2, 8, 4
    dim_z, d_model, nhead, num_layers = 10, 16, 4, 2

    root = jax.random.PRNGKey(0)
    pkey, xkey, ekey = jax.random.split(root, 3)

    params = init_params(pkey, dim_x, S, dim_z, d_model, nhead, num_layers)
    prep = prepare_params(params, seq_len=S, d_model=d_model, nhead=nhead,
                          dim_z=dim_z)
    x = jax.random.normal(xkey, (B, S, dim_x), jnp.float32)

    fwd = jax.jit(partial(cevt_forward, seq_len=S, dim_z=dim_z,
                          d_model=d_model, nhead=nhead))
    out = fwd(prep, x, ekey)
    jax.block_until_ready(out)

    # shape / sanity checks
    assert out["t_indirect_pred"].shape == (B, 1)
    assert out["t_pred"].shape == (B, 1)
    assert out["y_pred"].shape == (B, 1)
    assert out["q_z_mu"].shape == (B, dim_z)
    assert out["q_z_logvar"].shape == (B, dim_z)
    assert out["p_x_mu"].shape == (B, S, dim_x)
    assert out["p_x_logvar"].shape == (B, S, dim_x)
    assert out["p_t_indirect"].shape == (B, S)
    assert out["p_t"].shape == (B, S)
    assert out["y_pred_dec"].shape == (B, S)
    assert out["y_t0"].shape == (B, S)
    assert out["y_t1"].shape == (B, S)
    assert bool(jnp.all(jnp.isfinite(out["q_z_mu"])))
    assert bool(jnp.all(jnp.isfinite(out["p_x_mu"])))
    assert bool(jnp.all(jnp.isfinite(out["y_pred_dec"])))
    print("KERNEL_OK")
</pallas_src>

<mosaic_0001>
module attributes {stable_mosaic.version = 11 : i64} {
  func.func @_encoder_stack_kernel(%arg0: i32, %arg1: memref<2x8x4xf32, #tpu.memory_space<vmem>>, %arg2: memref<4x16xf32, #tpu.memory_space<vmem>>, %arg3: memref<8x16xf32, #tpu.memory_space<vmem>>, %arg4: memref<16x16xf32, #tpu.memory_space<vmem>>, %arg5: memref<1x16x48xf32, #tpu.memory_space<vmem>>, %arg6: memref<1x1x48xf32, #tpu.memory_space<vmem>>, %arg7: memref<1x16x16xf32, #tpu.memory_space<vmem>>, %arg8: memref<1x6x16xf32, #tpu.memory_space<vmem>>, %arg9: memref<1x16x2048xf32, #tpu.memory_space<vmem>>, %arg10: memref<1x1x2048xf32, #tpu.memory_space<vmem>>, %arg11: memref<1x2048x16xf32, #tpu.memory_space<vmem>>, %arg12: memref<16x16xf32, #tpu.memory_space<vmem>>, %arg13: memref<16x16xf32, #tpu.memory_space<vmem>>) attributes {dimension_semantics = [#tpu.dimension_semantics<arbitrary>], iteration_bounds = array<i64: 2>, scalar_prefetch = 0 : i64, scratch_operands = 1 : i64, tpu.core_type = #tpu.core_type<tc>, window_params = [{pipeline_mode = #tpu.pipeline_mode<synchronous>, transform_indices = @transform_0, window_bounds = array<i64: 2, 8, 4>}, {pipeline_mode = #tpu.pipeline_mode<synchronous>, transform_indices = @transform_1, window_bounds = array<i64: 4, 16>}, {pipeline_mode = #tpu.pipeline_mode<synchronous>, transform_indices = @transform_2, window_bounds = array<i64: 8, 16>}, {pipeline_mode = #tpu.pipeline_mode<synchronous>, transform_indices = @transform_3, window_bounds = array<i64: 16, 16>}, {transform_indices = @transform_4, window_bounds = array<i64: 1, 16, 48>}, {transform_indices = @transform_5, window_bounds = array<i64: 1, 1, 48>}, {transform_indices = @transform_6, window_bounds = array<i64: 1, 16, 16>}, {transform_indices = @transform_7, window_bounds = array<i64: 1, 6, 16>}, {transform_indices = @transform_8, window_bounds = array<i64: 1, 16, 2048>}, {transform_indices = @transform_9, window_bounds = array<i64: 1, 1, 2048>}, {transform_indices = @transform_10, window_bounds = array<i64: 1, 2048, 16>}, {pipeline_mode = #tpu.pipeline_mode<synchronous>, transform_indices = @transform_11, window_bounds = array<i64: 16, 16>}]} {
    %c0 = arith.constant 0 : index
    %c0_0 = arith.constant 0 : index
    %c0_1 = arith.constant 0 : index
    %0 = vector.load %arg1[%c0, %c0_0, %c0_1] : memref<2x8x4xf32, #tpu.memory_space<vmem>>, vector<2x8x4xf32>
    %1 = vector.shape_cast %0 : vector<2x8x4xf32> to vector<16x4xf32>
    %c0_2 = arith.constant 0 : index
    %c0_3 = arith.constant 0 : index
    %2 = vector.load %arg2[%c0_2, %c0_3] : memref<4x16xf32, #tpu.memory_space<vmem>>, vector<4x16xf32>
    %cst = arith.constant dense<0.000000e+00> : vector<16x16xf32>
    %3 = tpu.matmul %1, %2, %cst {dimension_numbers = #tpu.dot_dimension_numbers<[1], [0], [0], [1], [0, 0, 1, 1], [], []>} : vector<16x4xf32>, vector<4x16xf32>, vector<16x16xf32> -> vector<16x16xf32>
    %4 = vector.shape_cast %3 : vector<16x16xf32> to vector<2x8x16xf32>
    %c0_4 = arith.constant 0 : index
    %c0_5 = arith.constant 0 : index
    %5 = vector.load %arg3[%c0_4, %c0_5] : memref<8x16xf32, #tpu.memory_space<vmem>>, vector<8x16xf32>
    %6 = vector.shape_cast %5 : vector<8x16xf32> to vector<1x8x16xf32>
    %7 = vector.broadcast %6 : vector<1x8x16xf32> to vector<2x8x16xf32>
    %8 = arith.addf %4, %7 : vector<2x8x16xf32>
    %9 = vector.shape_cast %8 : vector<2x8x16xf32> to vector<16x16xf32>
    %c0_i32 = arith.constant 0 : i32
    %10 = arith.cmpi eq, %arg0, %c0_i32 : i32
    %c0_6 = arith.constant 0 : index
    %c0_7 = arith.constant 0 : index
    %11 = vector.load %arg13[%c0_6, %c0_7] : memref<16x16xf32, #tpu.memory_space<vmem>>, vector<16x16xf32>
    %12 = arith.select %10, %9, %11 : vector<16x16xf32>
    %c0_8 = arith.constant 0 : index
    %c0_9 = arith.constant 0 : index
    %c0_10 = arith.constant 0 : index
    %13 = vector.load %arg5[%c0_8, %c0_9, %c0_10] : memref<1x16x48xf32, #tpu.memory_space<vmem>>, vector<1x16x48xf32>
    %14 = vector.shape_cast %13 : vector<1x16x48xf32> to vector<16x48xf32>
    %cst_11 = arith.constant dense<0.000000e+00> : vector<16x48xf32>
    %15 = tpu.matmul %12, %14, %cst_11 {dimension_numbers = #tpu.dot_dimension_numbers<[1], [0], [0], [1], [0, 0, 1, 1], [], []>} : vector<16x16xf32>, vector<16x48xf32>, vector<16x48xf32> -> vector<16x48xf32>
    %c0_12 = arith.constant 0 : index
    %c0_13 = arith.constant 0 : index
    %c0_14 = arith.constant 0 : index
    %16 = vector.load %arg6[%c0_12, %c0_13, %c0_14] : memref<1x1x48xf32, #tpu.memory_space<vmem>>, vector<1x1x48xf32>
    %17 = vector.shape_cast %16 : vector<1x1x48xf32> to vector<1x48xf32>
    %18 = vector.broadcast %17 : vector<1x48xf32> to vector<16x48xf32>
    %19 = arith.addf %15, %18 : vector<16x48xf32>
    %20 = vector.shape_cast %19 : vector<16x48xf32> to vector<2x8x48xf32>
    %21 = vector.extract_strided_slice %20 {offsets = [0, 0, 0], sizes = [2, 8, 4], strides = [1, 1, 1]} : vector<2x8x48xf32> to vector<2x8x4xf32>
    %22 = vector.extract_strided_slice %20 {offsets = [0, 0, 16], sizes = [2, 8, 4], strides = [1, 1, 1]} : vector<2x8x48xf32> to vector<2x8x4xf32>
    %23 = vector.extract_strided_slice %20 {offsets = [0, 0, 32], sizes = [2, 8, 4], strides = [1, 1, 1]} : vector<2x8x48xf32> to vector<2x8x4xf32>
    "tpu.trace_start"() <{level = 10 : i32, message = "bqd,bkd->bqk"}> : () -> ()
    %cst_15 = arith.constant dense<0.000000e+00> : vector<2x8x8xf32>
    %24 = tpu.matmul %21, %22, %cst_15 {dimension_numbers = #tpu.dot_dimension_numbers<[2], [2], [1], [1], [0, 0, 0, 1, 1, 1], [0], [0]>} : vector<2x8x4xf32>, vector<2x8x4xf32>, vector<2x8x8xf32> -> vector<2x8x8xf32>
    "tpu.trace_stop"() : () -> ()
    %cst_16 = arith.constant 5.000000e-01 : f32
    %25 = vector.broadcast %cst_16 : f32 to vector<2x8x8xf32>
    %26 = arith.mulf %24, %25 : vector<2x8x8xf32>
    %cst_17 = arith.constant dense<0xFF800000> : vector<2x8xf32>
    %27 = vector.multi_reduction <maximumf>, %26, %cst_17 [2] : vector<2x8x8xf32> to vector<2x8xf32>
    %28 = vector.shape_cast %27 : vector<2x8xf32> to vector<2x8x1xf32>
    %29 = vector.broadcast %28 : vector<2x8x1xf32> to vector<2x8x8xf32>
    %30 = arith.subf %26, %29 : vector<2x8x8xf32>
    %31 = math.exp %30 : vector<2x8x8xf32>
    %cst_18 = arith.constant dense<0.000000e+00> : vector<2x8xf32>
    %32 = vector.multi_reduction <add>, %31, %cst_18 [2] : vector<2x8x8xf32> to vector<2x8xf32>
    %33 = vector.shape_cast %32 : vector<2x8xf32> to vector<2x8x1xf32>
    %34 = vector.broadcast %33 : vector<2x8x1xf32> to vector<2x8x8xf32>
    %35 = arith.divf %31, %34 : vector<2x8x8xf32>
    "tpu.trace_start"() <{level = 10 : i32, message = "bqk,bkd->bqd"}> : () -> ()
    %cst_19 = arith.constant dense<0.000000e+00> : vector<2x8x4xf32>
    %36 = tpu.matmul %35, %23, %cst_19 {dimension_numbers = #tpu.dot_dimension_numbers<[2], [1], [1], [2], [0, 0, 0, 1, 1, 2], [0], [0]>} : vector<2x8x8xf32>, vector<2x8x4xf32>, vector<2x8x4xf32> -> vector<2x8x4xf32>
    "tpu.trace_stop"() : () -> ()
    %37 = vector.shape_cast %36 : vector<2x8x4xf32> to vector<16x4xf32>
    %c0_20 = arith.constant 0 : index
    %c0_21 = arith.constant 0 : index
    %c0_22 = arith.constant 0 : index
    %38 = vector.load %arg7[%c0_20, %c0_21, %c0_22] : memref<1x16x16xf32, #tpu.memory_space<vmem>>, vector<1x4x16xf32>
    %39 = vector.shape_cast %38 : vector<1x4x16xf32> to vector<4x16xf32>
    %cst_23 = arith.constant dense<0.000000e+00> : vector<16x16xf32>
    %40 = tpu.matmul %37, %39, %cst_23 {dimension_numbers = #tpu.dot_dimension_numbers<[1], [0], [0], [1], [0, 0, 1, 1], [], []>} : vector<16x4xf32>, vector<4x16xf32>, vector<16x16xf32> -> vector<16x16xf32>
    %41 = vector.extract_strided_slice %20 {offsets = [0, 0, 4], sizes = [2, 8, 4], strides = [1, 1, 1]} : vector<2x8x48xf32> to vector<2x8x4xf32>
    %42 = vector.extract_strided_slice %20 {offsets = [0, 0, 20], sizes = [2, 8, 4], strides = [1, 1, 1]} : vector<2x8x48xf32> to vector<2x8x4xf32>
    %43 = vector.extract_strided_slice %20 {offsets = [0, 0, 36], sizes = [2, 8, 4], strides = [1, 1, 1]} : vector<2x8x48xf32> to vector<2x8x4xf32>
    "tpu.trace_start"() <{level = 10 : i32, message = "bqd,bkd->bqk"}> : () -> ()
    %cst_24 = arith.constant dense<0.000000e+00> : vector<2x8x8xf32>
    %44 = tpu.matmul %41, %42, %cst_24 {dimension_numbers = #tpu.dot_dimension_numbers<[2], [2], [1], [1], [0, 0, 0, 1, 1, 1], [0], [0]>} : vector<2x8x4xf32>, vector<2x8x4xf32>, vector<2x8x8xf32> -> vector<2x8x8xf32>
    "tpu.trace_stop"() : () -> ()
    %cst_25 = arith.constant 5.000000e-01 : f32
    %45 = vector.broadcast %cst_25 : f32 to vector<2x8x8xf32>
    %46 = arith.mulf %44, %45 : vector<2x8x8xf32>
    %cst_26 = arith.constant dense<0xFF800000> : vector<2x8xf32>
    %47 = vector.multi_reduction <maximumf>, %46, %cst_26 [2] : vector<2x8x8xf32> to vector<2x8xf32>
    %48 = vector.shape_cast %47 : vector<2x8xf32> to vector<2x8x1xf32>
    %49 = vector.broadcast %48 : vector<2x8x1xf32> to vector<2x8x8xf32>
    %50 = arith.subf %46, %49 : vector<2x8x8xf32>
    %51 = math.exp %50 : vector<2x8x8xf32>
    %cst_27 = arith.constant dense<0.000000e+00> : vector<2x8xf32>
    %52 = vector.multi_reduction <add>, %51, %cst_27 [2] : vector<2x8x8xf32> to vector<2x8xf32>
    %53 = vector.shape_cast %52 : vector<2x8xf32> to vector<2x8x1xf32>
    %54 = vector.broadcast %53 : vector<2x8x1xf32> to vector<2x8x8xf32>
    %55 = arith.divf %51, %54 : vector<2x8x8xf32>
    "tpu.trace_start"() <{level = 10 : i32, message = "bqk,bkd->bqd"}> : () -> ()
    %cst_28 = arith.constant dense<0.000000e+00> : vector<2x8x4xf32>
    %56 = tpu.matmul %55, %43, %cst_28 {dimension_numbers = #tpu.dot_dimension_numbers<[2], [1], [1], [2], [0, 0, 0, 1, 1, 2], [0], [0]>} : vector<2x8x8xf32>, vector<2x8x4xf32>, vector<2x8x4xf32> -> vector<2x8x4xf32>
    "tpu.trace_stop"() : () -> ()
    %57 = vector.shape_cast %56 : vector<2x8x4xf32> to vector<16x4xf32>
    %c0_29 = arith.constant 0 : index
    %c4 = arith.constant 4 : index
    %c0_30 = arith.constant 0 : index
    %58 = vector.load %arg7[%c0_29, %c4, %c0_30] : memref<1x16x16xf32, #tpu.memory_space<vmem>>, vector<1x4x16xf32>
    %59 = vector.shape_cast %58 : vector<1x4x16xf32> to vector<4x16xf32>
    %cst_31 = arith.constant dense<0.000000e+00> : vector<16x16xf32>
    %60 = tpu.matmul %57, %59, %cst_31 {dimension_numbers = #tpu.dot_dimension_numbers<[1], [0], [0], [1], [0, 0, 1, 1], [], []>} : vector<16x4xf32>, vector<4x16xf32>, vector<16x16xf32> -> vector<16x16xf32>
    %61 = arith.addf %40, %60 : vector<16x16xf32>
    %62 = vector.extract_strided_slice %20 {offsets = [0, 0, 8], sizes = [2, 8, 4], strides = [1, 1, 1]} : vector<2x8x48xf32> to vector<2x8x4xf32>
    %63 = vector.extract_strided_slice %20 {offsets = [0, 0, 24], sizes = [2, 8, 4], strides = [1, 1, 1]} : vector<2x8x48xf32> to vector<2x8x4xf32>
    %64 = vector.extract_strided_slice %20 {offsets = [0, 0, 40], sizes = [2, 8, 4], strides = [1, 1, 1]} : vector<2x8x48xf32> to vector<2x8x4xf32>
    "tpu.trace_start"() <{level = 10 : i32, message = "bqd,bkd->bqk"}> : () -> ()
    %cst_32 = arith.constant dense<0.000000e+00> : vector<2x8x8xf32>
    %65 = tpu.matmul %62, %63, %cst_32 {dimension_numbers = #tpu.dot_dimension_numbers<[2], [2], [1], [1], [0, 0, 0, 1, 1, 1], [0], [0]>} : vector<2x8x4xf32>, vector<2x8x4xf32>, vector<2x8x8xf32> -> vector<2x8x8xf32>
    "tpu.trace_stop"() : () -> ()
    %cst_33 = arith.constant 5.000000e-01 : f32
    %66 = vector.broadcast %cst_33 : f32 to vector<2x8x8xf32>
    %67 = arith.mulf %65, %66 : vector<2x8x8xf32>
    %cst_34 = arith.constant dense<0xFF800000> : vector<2x8xf32>
    %68 = vector.multi_reduction <maximumf>, %67, %cst_34 [2] : vector<2x8x8xf32> to vector<2x8xf32>
    %69 = vector.shape_cast %68 : vector<2x8xf32> to vector<2x8x1xf32>
    %70 = vector.broadcast %69 : vector<2x8x1xf32> to vector<2x8x8xf32>
    %71 = arith.subf %67, %70 : vector<2x8x8xf32>
    %72 = math.exp %71 : vector<2x8x8xf32>
    %cst_35 = arith.constant dense<0.000000e+00> : vector<2x8xf32>
    %73 = vector.multi_reduction <add>, %72, %cst_35 [2] : vector<2x8x8xf32> to vector<2x8xf32>
    %74 = vector.shape_cast %73 : vector<2x8xf32> to vector<2x8x1xf32>
    %75 = vector.broadcast %74 : vector<2x8x1xf32> to vector<2x8x8xf32>
    %76 = arith.divf %72, %75 : vector<2x8x8xf32>
    "tpu.trace_start"() <{level = 10 : i32, message = "bqk,bkd->bqd"}> : () -> ()
    %cst_36 = arith.constant dense<0.000000e+00> : vector<2x8x4xf32>
    %77 = tpu.matmul %76, %64, %cst_36 {dimension_numbers = #tpu.dot_dimension_numbers<[2], [1], [1], [2], [0, 0, 0, 1, 1, 2], [0], [0]>} : vector<2x8x8xf32>, vector<2x8x4xf32>, vector<2x8x4xf32> -> vector<2x8x4xf32>
    "tpu.trace_stop"() : () -> ()
    %78 = vector.shape_cast %77 : vector<2x8x4xf32> to vector<16x4xf32>
    %c0_37 = arith.constant 0 : index
    %c8 = arith.constant 8 : index
    %c0_38 = arith.constant 0 : index
    %79 = vector.load %arg7[%c0_37, %c8, %c0_38] : memref<1x16x16xf32, #tpu.memory_space<vmem>>, vector<1x4x16xf32>
    %80 = vector.shape_cast %79 : vector<1x4x16xf32> to vector<4x16xf32>
    %cst_39 = arith.constant dense<0.000000e+00> : vector<16x16xf32>
    %81 = tpu.matmul %78, %80, %cst_39 {dimension_numbers = #tpu.dot_dimension_numbers<[1], [0], [0], [1], [0, 0, 1, 1], [], []>} : vector<16x4xf32>, vector<4x16xf32>, vector<16x16xf32> -> vector<16x16xf32>
    %82 = arith.addf %61, %81 : vector<16x16xf32>
    %83 = vector.extract_strided_slice %20 {offsets = [0, 0, 12], sizes = [2, 8, 4], strides = [1, 1, 1]} : vector<2x8x48xf32> to vector<2x8x4xf32>
    %84 = vector.extract_strided_slice %20 {offsets = [0, 0, 28], sizes = [2, 8, 4], strides = [1, 1, 1]} : vector<2x8x48xf32> to vector<2x8x4xf32>
    %85 = vector.extract_strided_slice %20 {offsets = [0, 0, 44], sizes = [2, 8, 4], strides = [1, 1, 1]} : vector<2x8x48xf32> to vector<2x8x4xf32>
    "tpu.trace_start"() <{level = 10 : i32, message = "bqd,bkd->bqk"}> : () -> ()
    %cst_40 = arith.constant dense<0.000000e+00> : vector<2x8x8xf32>
    %86 = tpu.matmul %83, %84, %cst_40 {dimension_numbers = #tpu.dot_dimension_numbers<[2], [2], [1], [1], [0, 0, 0, 1, 1, 1], [0], [0]>} : vector<2x8x4xf32>, vector<2x8x4xf32>, vector<2x8x8xf32> -> vector<2x8x8xf32>
    "tpu.trace_stop"() : () -> ()
    %cst_41 = arith.constant 5.000000e-01 : f32
    %87 = vector.broadcast %cst_41 : f32 to vector<2x8x8xf32>
    %88 = arith.mulf %86, %87 : vector<2x8x8xf32>
    %cst_42 = arith.constant dense<0xFF800000> : vector<2x8xf32>
    %89 = vector.multi_reduction <maximumf>, %88, %cst_42 [2] : vector<2x8x8xf32> to vector<2x8xf32>
    %90 = vector.shape_cast %89 : vector<2x8xf32> to vector<2x8x1xf32>
    %91 = vector.broadcast %90 : vector<2x8x1xf32> to vector<2x8x8xf32>
    %92 = arith.subf %88, %91 : vector<2x8x8xf32>
    %93 = math.exp %92 : vector<2x8x8xf32>
    %cst_43 = arith.constant dense<0.000000e+00> : vector<2x8xf32>
    %94 = vector.multi_reduction <add>, %93, %cst_43 [2] : vector<2x8x8xf32> to vector<2x8xf32>
    %95 = vector.shape_cast %94 : vector<2x8xf32> to vector<2x8x1xf32>
    %96 = vector.broadcast %95 : vector<2x8x1xf32> to vector<2x8x8xf32>
    %97 = arith.divf %93, %96 : vector<2x8x8xf32>
    "tpu.trace_start"() <{level = 10 : i32, message = "bqk,bkd->bqd"}> : () -> ()
    %cst_44 = arith.constant dense<0.000000e+00> : vector<2x8x4xf32>
    %98 = tpu.matmul %97, %85, %cst_44 {dimension_numbers = #tpu.dot_dimension_numbers<[2], [1], [1], [2], [0, 0, 0, 1, 1, 2], [0], [0]>} : vector<2x8x8xf32>, vector<2x8x4xf32>, vector<2x8x4xf32> -> vector<2x8x4xf32>
    "tpu.trace_stop"() : () -> ()
    %99 = vector.shape_cast %98 : vector<2x8x4xf32> to vector<16x4xf32>
    %c0_45 = arith.constant 0 : index
    %c12 = arith.constant 12 : index
    %c0_46 = arith.constant 0 : index
    %100 = vector.load %arg7[%c0_45, %c12, %c0_46] : memref<1x16x16xf32, #tpu.memory_space<vmem>>, vector<1x4x16xf32>
    %101 = vector.shape_cast %100 : vector<1x4x16xf32> to vector<4x16xf32>
    %cst_47 = arith.constant dense<0.000000e+00> : vector<16x16xf32>
    %102 = tpu.matmul %99, %101, %cst_47 {dimension_numbers = #tpu.dot_dimension_numbers<[1], [0], [0], [1], [0, 0, 1, 1], [], []>} : vector<16x4xf32>, vector<4x16xf32>, vector<16x16xf32> -> vector<16x16xf32>
    %103 = arith.addf %82, %102 : vector<16x16xf32>
    %c0_48 = arith.constant 0 : index
    %c0_49 = arith.constant 0 : index
    %c0_50 = arith.constant 0 : index
    %104 = vector.load %arg8[%c0_48, %c0_49, %c0_50] : memref<1x6x16xf32, #tpu.memory_space<vmem>>, vector<1x1x16xf32>
    %105 = vector.shape_cast %104 : vector<1x1x16xf32> to vector<1x16xf32>
    %106 = vector.broadcast %105 : vector<1x16xf32> to vector<16x16xf32>
    %107 = arith.addf %103, %106 : vector<16x16xf32>
    %108 = arith.addf %12, %107 : vector<16x16xf32>
    %cst_51 = arith.constant dense<0.000000e+00> : vector<16xf32>
    %109 = vector.multi_reduction <add>, %108, %cst_51 [1] : vector<16x16xf32> to vector<16xf32>
    %110 = vector.shape_cast %109 : vector<16xf32> to vector<16x1xf32>
    %cst_52 = arith.constant 1.600000e+01 : f32
    %111 = vector.broadcast %cst_52 : f32 to vector<16x1xf32>
    %112 = arith.divf %110, %111 : vector<16x1xf32>
    %113 = vector.broadcast %112 : vector<16x1xf32> to vector<16x16xf32>
    %114 = arith.subf %108, %113 : vector<16x16xf32>
    %115 = arith.mulf %114, %114 : vector<16x16xf32>
    %cst_53 = arith.constant dense<0.000000e+00> : vector<16xf32>
    %116 = vector.multi_reduction <add>, %115, %cst_53 [1] : vector<16x16xf32> to vector<16xf32>
    %117 = vector.shape_cast %116 : vector<16xf32> to vector<16x1xf32>
    %cst_54 = arith.constant 1.600000e+01 : f32
    %118 = vector.broadcast %cst_54 : f32 to vector<16x1xf32>
    %119 = arith.divf %117, %118 : vector<16x1xf32>
    %120 = vector.broadcast %112 : vector<16x1xf32> to vector<16x16xf32>
    %121 = arith.subf %108, %120 : vector<16x16xf32>
    %cst_55 = arith.constant 9.99999974E-6 : f32
    %122 = vector.broadcast %cst_55 : f32 to vector<16x1xf32>
    %123 = arith.addf %119, %122 : vector<16x1xf32>
    %124 = math.rsqrt %123 : vector<16x1xf32>
    %125 = vector.broadcast %124 : vector<16x1xf32> to vector<16x16xf32>
    %126 = arith.mulf %121, %125 : vector<16x16xf32>
    %c0_56 = arith.constant 0 : index
    %c1 = arith.constant 1 : index
    %c0_57 = arith.constant 0 : index
    %127 = vector.load %arg8[%c0_56, %c1, %c0_57] : memref<1x6x16xf32, #tpu.memory_space<vmem>>, vector<1x1x16xf32>
    %128 = vector.shape_cast %127 : vector<1x1x16xf32> to vector<1x16xf32>
    %129 = vector.broadcast %128 : vector<1x16xf32> to vector<16x16xf32>
    %130 = arith.mulf %126, %129 : vector<16x16xf32>
    %c0_58 = arith.constant 0 : index
    %c2 = arith.constant 2 : index
    %c0_59 = arith.constant 0 : index
    %131 = vector.load %arg8[%c0_58, %c2, %c0_59] : memref<1x6x16xf32, #tpu.memory_space<vmem>>, vector<1x1x16xf32>
    %132 = vector.shape_cast %131 : vector<1x1x16xf32> to vector<1x16xf32>
    %133 = vector.broadcast %132 : vector<1x16xf32> to vector<16x16xf32>
    %134 = arith.addf %130, %133 : vector<16x16xf32>
    %c0_60 = arith.constant 0 : index
    %c0_61 = arith.constant 0 : index
    %c0_62 = arith.constant 0 : index
    %135 = vector.load %arg9[%c0_60, %c0_61, %c0_62] : memref<1x16x2048xf32, #tpu.memory_space<vmem>>, vector<1x16x2048xf32>
    %136 = vector.shape_cast %135 : vector<1x16x2048xf32> to vector<16x2048xf32>
    %cst_63 = arith.constant dense<0.000000e+00> : vector<16x2048xf32>
    %137 = tpu.matmul %134, %136, %cst_63 {dimension_numbers = #tpu.dot_dimension_numbers<[1], [0], [0], [1], [0, 0, 1, 1], [], []>} : vector<16x16xf32>, vector<16x2048xf32>, vector<16x2048xf32> -> vector<16x2048xf32>
    %c0_64 = arith.constant 0 : index
    %c0_65 = arith.constant 0 : index
    %c0_66 = arith.constant 0 : index
    %138 = vector.load %arg10[%c0_64, %c0_65, %c0_66] : memref<1x1x2048xf32, #tpu.memory_space<vmem>>, vector<1x1x2048xf32>
    %139 = vector.shape_cast %138 : vector<1x1x2048xf32> to vector<1x2048xf32>
    %140 = vector.broadcast %139 : vector<1x2048xf32> to vector<16x2048xf32>
    %141 = arith.addf %137, %140 : vector<16x2048xf32>
    %cst_67 = arith.constant 0.000000e+00 : f32
    %142 = vector.broadcast %cst_67 : f32 to vector<16x2048xf32>
    %143 = arith.maximumf %141, %142 : vector<16x2048xf32>
    %c0_68 = arith.constant 0 : index
    %c0_69 = arith.constant 0 : index
    %c0_70 = arith.constant 0 : index
    %144 = vector.load %arg11[%c0_68, %c0_69, %c0_70] : memref<1x2048x16xf32, #tpu.memory_space<vmem>>, vector<1x2048x16xf32>
    %145 = vector.shape_cast %144 : vector<1x2048x16xf32> to vector<2048x16xf32>
    %cst_71 = arith.constant dense<0.000000e+00> : vector<16x16xf32>
    %146 = tpu.matmul %143, %145, %cst_71 {dimension_numbers = #tpu.dot_dimension_numbers<[1], [0], [0], [1], [0, 0, 1, 1], [], []>} : vector<16x2048xf32>, vector<2048x16xf32>, vector<16x16xf32> -> vector<16x16xf32>
    %c0_72 = arith.constant 0 : index
    %c3 = arith.constant 3 : index
    %c0_73 = arith.constant 0 : index
    %147 = vector.load %arg8[%c0_72, %c3, %c0_73] : memref<1x6x16xf32, #tpu.memory_space<vmem>>, vector<1x1x16xf32>
    %148 = vector.shape_cast %147 : vector<1x1x16xf32> to vector<1x16xf32>
    %149 = vector.broadcast %148 : vector<1x16xf32> to vector<16x16xf32>
    %150 = arith.addf %146, %149 : vector<16x16xf32>
    %151 = arith.addf %134, %150 : vector<16x16xf32>
    %cst_74 = arith.constant dense<0.000000e+00> : vector<16xf32>
    %152 = vector.multi_reduction <add>, %151, %cst_74 [1] : vector<16x16xf32> to vector<16xf32>
    %153 = vector.shape_cast %152 : vector<16xf32> to vector<16x1xf32>
    %cst_75 = arith.constant 1.600000e+01 : f32
    %154 = vector.broadcast %cst_75 : f32 to vector<16x1xf32>
    %155 = arith.divf %153, %154 : vector<16x1xf32>
    %156 = vector.broadcast %155 : vector<16x1xf32> to vector<16x16xf32>
    %157 = arith.subf %151, %156 : vector<16x16xf32>
    %158 = arith.mulf %157, %157 : vector<16x16xf32>
    %cst_76 = arith.constant dense<0.000000e+00> : vector<16xf32>
    %159 = vector.multi_reduction <add>, %158, %cst_76 [1] : vector<16x16xf32> to vector<16xf32>
    %160 = vector.shape_cast %159 : vector<16xf32> to vector<16x1xf32>
    %cst_77 = arith.constant 1.600000e+01 : f32
    %161 = vector.broadcast %cst_77 : f32 to vector<16x1xf32>
    %162 = arith.divf %160, %161 : vector<16x1xf32>
    %163 = vector.broadcast %155 : vector<16x1xf32> to vector<16x16xf32>
    %164 = arith.subf %151, %163 : vector<16x16xf32>
    %cst_78 = arith.constant 9.99999974E-6 : f32
    %165 = vector.broadcast %cst_78 : f32 to vector<16x1xf32>
    %166 = arith.addf %162, %165 : vector<16x1xf32>
    %167 = math.rsqrt %166 : vector<16x1xf32>
    %168 = vector.broadcast %167 : vector<16x1xf32> to vector<16x16xf32>
    %169 = arith.mulf %164, %168 : vector<16x16xf32>
    %c0_79 = arith.constant 0 : index
    %c4_80 = arith.constant 4 : index
    %c0_81 = arith.constant 0 : index
    %170 = vector.load %arg8[%c0_79, %c4_80, %c0_81] : memref<1x6x16xf32, #tpu.memory_space<vmem>>, vector<1x1x16xf32>
    %171 = vector.shape_cast %170 : vector<1x1x16xf32> to vector<1x16xf32>
    %172 = vector.broadcast %171 : vector<1x16xf32> to vector<16x16xf32>
    %173 = arith.mulf %169, %172 : vector<16x16xf32>
    %c0_82 = arith.constant 0 : index
    %c5 = arith.constant 5 : index
    %c0_83 = arith.constant 0 : index
    %174 = vector.load %arg8[%c0_82, %c5, %c0_83] : memref<1x6x16xf32, #tpu.memory_space<vmem>>, vector<1x1x16xf32>
    %175 = vector.shape_cast %174 : vector<1x1x16xf32> to vector<1x16xf32>
    %176 = vector.broadcast %175 : vector<1x16xf32> to vector<16x16xf32>
    %177 = arith.addf %173, %176 : vector<16x16xf32>
    %c0_84 = arith.constant 0 : index
    %c0_85 = arith.constant 0 : index
    %178 = vector.load %arg13[%c0_84, %c0_85] : memref<16x16xf32, #tpu.memory_space<vmem>>, vector<16x16xf32>
    tpu.vector_store %arg13[%c0_84, %c0_85], %177 {strides = array<i32>} : memref<16x16xf32, #tpu.memory_space<vmem>>, vector<16x16xf32>,
    %c0_86 = arith.constant 0 : index
    %c0_87 = arith.constant 0 : index
    %179 = vector.load %arg4[%c0_86, %c0_87] : memref<16x16xf32, #tpu.memory_space<vmem>>, vector<16x16xf32>
    %cst_88 = arith.constant dense<0.000000e+00> : vector<16x16xf32>
    %180 = tpu.matmul %179, %177, %cst_88 {dimension_numbers = #tpu.dot_dimension_numbers<[1], [0], [0], [1], [0, 0, 1, 1], [], []>} : vector<16x16xf32>, vector<16x16xf32>, vector<16x16xf32> -> vector<16x16xf32>
    %c0_89 = arith.constant 0 : index
    %c0_90 = arith.constant 0 : index
    %181 = vector.load %arg12[%c0_89, %c0_90] : memref<16x16xf32, #tpu.memory_space<vmem>>, vector<16x16xf32>
    tpu.vector_store %arg12[%c0_89, %c0_90], %180 {strides = array<i32>} : memref<16x16xf32, #tpu.memory_space<vmem>>, vector<16x16xf32>,
    return
  }
  func.func @transform_0(%arg0: i32) -> (i32, i32, i32) {
    %c0_i32 = arith.constant 0 : i32
    %c0_i32_0 = arith.constant 0 : i32
    %c0_i32_1 = arith.constant 0 : i32
    %c0_i32_2 = arith.constant 0 : i32
    return %c0_i32, %c0_i32_0, %c0_i32_1 : i32, i32, i32
  }
  func.func @transform_1(%arg0: i32) -> (i32, i32) {
    %c0_i32 = arith.constant 0 : i32
    %c0_i32_0 = arith.constant 0 : i32
    %c0_i32_1 = arith.constant 0 : i32
    return %c0_i32, %c0_i32_0 : i32, i32
  }
  func.func @transform_2(%arg0: i32) -> (i32, i32) {
    %c0_i32 = arith.constant 0 : i32
    %c0_i32_0 = arith.constant 0 : i32
    %c0_i32_1 = arith.constant 0 : i32
    return %c0_i32, %c0_i32_0 : i32, i32
  }
  func.func @transform_3(%arg0: i32) -> (i32, i32) {
    %c0_i32 = arith.constant 0 : i32
    %c0_i32_0 = arith.constant 0 : i32
    %c0_i32_1 = arith.constant 0 : i32
    return %c0_i32, %c0_i32_0 : i32, i32
  }
  func.func @transform_4(%arg0: i32) -> (i32, i32, i32) {
    %c0_i32 = arith.constant 0 : i32
    %c0_i32_0 = arith.constant 0 : i32
    %c0_i32_1 = arith.constant 0 : i32
    return %arg0, %c0_i32, %c0_i32_0 : i32, i32, i32
  }
  func.func @transform_5(%arg0: i32) -> (i32, i32, i32) {
    %c0_i32 = arith.constant 0 : i32
    %c0_i32_0 = arith.constant 0 : i32
    %c0_i32_1 = arith.constant 0 : i32
    return %arg0, %c0_i32, %c0_i32_0 : i32, i32, i32
  }
  func.func @transform_6(%arg0: i32) -> (i32, i32, i32) {
    %c0_i32 = arith.constant 0 : i32
    %c0_i32_0 = arith.constant 0 : i32
    %c0_i32_1 = arith.constant 0 : i32
    return %arg0, %c0_i32, %c0_i32_0 : i32, i32, i32
  }
  func.func @transform_7(%arg0: i32) -> (i32, i32, i32) {
    %c0_i32 = arith.constant 0 : i32
    %c0_i32_0 = arith.constant 0 : i32
    %c0_i32_1 = arith.constant 0 : i32
    return %arg0, %c0_i32, %c0_i32_0 : i32, i32, i32
  }
  func.func @transform_8(%arg0: i32) -> (i32, i32, i32) {
    %c0_i32 = arith.constant 0 : i32
    %c0_i32_0 = arith.constant 0 : i32
    %c0_i32_1 = arith.constant 0 : i32
    return %arg0, %c0_i32, %c0_i32_0 : i32, i32, i32
  }
  func.func @transform_9(%arg0: i32) -> (i32, i32, i32) {
    %c0_i32 = arith.constant 0 : i32
    %c0_i32_0 = arith.constant 0 : i32
    %c0_i32_1 = arith.constant 0 : i32
    return %arg0, %c0_i32, %c0_i32_0 : i32, i32, i32
  }
  func.func @transform_10(%arg0: i32) -> (i32, i32, i32) {
    %c0_i32 = arith.constant 0 : i32
    %c0_i32_0 = arith.constant 0 : i32
    %c0_i32_1 = arith.constant 0 : i32
    return %arg0, %c0_i32, %c0_i32_0 : i32, i32, i32
  }
  func.func @transform_11(%arg0: i32) -> (i32, i32) {
    %c0_i32 = arith.constant 0 : i32
    %c0_i32_0 = arith.constant 0 : i32
    %c0_i32_1 = arith.constant 0 : i32
    return %c0_i32, %c0_i32_0 : i32, i32
  }
}

module attributes {stable_mosaic.version = 11 : i64} {
  func.func @_head_decoder_kernel(%arg0: i32, %arg1: memref<2x128xf32, #tpu.memory_space<vmem>>, %arg2: memref<2x10xf32, #tpu.memory_space<vmem>>, %arg3: memref<128x23xf32, #tpu.memory_space<vmem>>, %arg4: memref<1x23xf32, #tpu.memory_space<vmem>>, %arg5: memref<1x1xf32, #tpu.memory_space<vmem>>, %arg6: memref<1x2xf32, #tpu.memory_space<vmem>>, %arg7: memref<3x20xf32, #tpu.memory_space<vmem>>, %arg8: memref<10x144xf32, #tpu.memory_space<vmem>>, %arg9: memref<1x144xf32, #tpu.memory_space<vmem>>, %arg10: memref<128x64xf32, #tpu.memory_space<vmem>>, %arg11: memref<1x64xf32, #tpu.memory_space<vmem>>, %arg12: memref<16x8xf32, #tpu.memory_space<vmem>>, %arg13: memref<1x8xf32, #tpu.memory_space<vmem>>, %arg14: memref<10x48xf32, #tpu.memory_space<vmem>>, %arg15: memref<8x48xf32, #tpu.memory_space<vmem>>, %arg16: memref<1x48xf32, #tpu.memory_space<vmem>>, %arg17: memref<48x24xf32, #tpu.memory_space<vmem>>, %arg18: memref<1x24xf32, #tpu.memory_space<vmem>>, %arg19: memref<2x1xf32, #tpu.memory_space<vmem>>, %arg20: memref<2x1xf32, #tpu.memory_space<vmem>>, %arg21: memref<2x1xf32, #tpu.memory_space<vmem>>, %arg22: memref<2x10xf32, #tpu.memory_space<vmem>>, %arg23: memref<2x10xf32, #tpu.memory_space<vmem>>, %arg24: memref<2x32xf32, #tpu.memory_space<vmem>>, %arg25: memref<2x32xf32, #tpu.memory_space<vmem>>, %arg26: memref<2x8xf32, #tpu.memory_space<vmem>>, %arg27: memref<2x8xf32, #tpu.memory_space<vmem>>, %arg28: memref<2x8xf32, #tpu.memory_space<vmem>>, %arg29: memref<2x8xf32, #tpu.memory_space<vmem>>, %arg30: memref<2x8xf32, #tpu.memory_space<vmem>>) attributes {dimension_semantics = [#tpu.dimension_semantics<arbitrary>], iteration_bounds = array<i64: 1>, scalar_prefetch = 0 : i64, scratch_operands = 0 : i64, tpu.core_type = #tpu.core_type<tc>, window_params = [{pipeline_mode = #tpu.pipeline_mode<synchronous>, transform_indices = @transform_0, window_bounds = array<i64: 2, 128>}, {pipeline_mode = #tpu.pipeline_mode<synchronous>, transform_indices = @transform_1, window_bounds = array<i64: 2, 10>}, {pipeline_mode = #tpu.pipeline_mode<synchronous>, transform_indices = @transform_2, window_bounds = array<i64: 128, 23>}, {pipeline_mode = #tpu.pipeline_mode<synchronous>, transform_indices = @transform_3, window_bounds = array<i64: 1, 23>}, {pipeline_mode = #tpu.pipeline_mode<synchronous>, transform_indices = @transform_4, window_bounds = array<i64: 1, 1>}, {pipeline_mode = #tpu.pipeline_mode<synchronous>, transform_indices = @transform_5, window_bounds = array<i64: 1, 2>}, {pipeline_mode = #tpu.pipeline_mode<synchronous>, transform_indices = @transform_6, window_bounds = array<i64: 3, 20>}, {pipeline_mode = #tpu.pipeline_mode<synchronous>, transform_indices = @transform_7, window_bounds = array<i64: 10, 144>}, {pipeline_mode = #tpu.pipeline_mode<synchronous>, transform_indices = @transform_8, window_bounds = array<i64: 1, 144>}, {pipeline_mode = #tpu.pipeline_mode<synchronous>, transform_indices = @transform_9, window_bounds = array<i64: 128, 64>}, {pipeline_mode = #tpu.pipeline_mode<synchronous>, transform_indices = @transform_10, window_bounds = array<i64: 1, 64>}, {pipeline_mode = #tpu.pipeline_mode<synchronous>, transform_indices = @transform_11, window_bounds = array<i64: 16, 8>}, {pipeline_mode = #tpu.pipeline_mode<synchronous>, transform_indices = @transform_12, window_bounds = array<i64: 1, 8>}, {pipeline_mode = #tpu.pipeline_mode<synchronous>, transform_indices = @transform_13, window_bounds = array<i64: 10, 48>}, {pipeline_mode = #tpu.pipeline_mode<synchronous>, transform_indices = @transform_14, window_bounds = array<i64: 8, 48>}, {pipeline_mode = #tpu.pipeline_mode<synchronous>, transform_indices = @transform_15, window_bounds = array<i64: 1, 48>}, {pipeline_mode = #tpu.pipeline_mode<synchronous>, transform_indices = @transform_16, window_bounds = array<i64: 48, 24>}, {pipeline_mode = #tpu.pipeline_mode<synchronous>, transform_indices = @transform_17, window_bounds = array<i64: 1, 24>}, {pipeline_mode = #tpu.pipeline_mode<synchronous>, transform_indices = @transform_18, window_bounds = array<i64: 2, 1>}, {pipeline_mode = #tpu.pipeline_mode<synchronous>, transform_indices = @transform_19, window_bounds = array<i64: 2, 1>}, {pipeline_mode = #tpu.pipeline_mode<synchronous>, transform_indices = @transform_20, window_bounds = array<i64: 2, 1>}, {pipeline_mode = #tpu.pipeline_mode<synchronous>, transform_indices = @transform_21, window_bounds = array<i64: 2, 10>}, {pipeline_mode = #tpu.pipeline_mode<synchronous>, transform_indices = @transform_22, window_bounds = array<i64: 2, 10>}, {pipeline_mode = #tpu.pipeline_mode<synchronous>, transform_indices = @transform_23, window_bounds = array<i64: 2, 32>}, {pipeline_mode = #tpu.pipeline_mode<synchronous>, transform_indices = @transform_24, window_bounds = array<i64: 2, 32>}, {pipeline_mode = #tpu.pipeline_mode<synchronous>, transform_indices = @transform_25, window_bounds = array<i64: 2, 8>}, {pipeline_mode = #tpu.pipeline_mode<synchronous>, transform_indices = @transform_26, window_bounds = array<i64: 2, 8>}, {pipeline_mode = #tpu.pipeline_mode<synchronous>, transform_indices = @transform_27, window_bounds = array<i64: 2, 8>}, {pipeline_mode = #tpu.pipeline_mode<synchronous>, transform_indices = @transform_28, window_bounds = array<i64: 2, 8>}, {pipeline_mode = #tpu.pipeline_mode<synchronous>, transform_indices = @transform_29, window_bounds = array<i64: 2, 8>}]} {
    %c0 = arith.constant 0 : index
    %c0_0 = arith.constant 0 : index
    %0 = vector.load %arg1[%c0, %c0_0] : memref<2x128xf32, #tpu.memory_space<vmem>>, vector<2x128xf32>
    %c0_1 = arith.constant 0 : index
    %c0_2 = arith.constant 0 : index
    %1 = vector.load %arg3[%c0_1, %c0_2] : memref<128x23xf32, #tpu.memory_space<vmem>>, vector<128x23xf32>
    %cst = arith.constant dense<0.000000e+00> : vector<2x23xf32>
    %2 = tpu.matmul %0, %1, %cst {dimension_numbers = #tpu.dot_dimension_numbers<[1], [0], [0], [1], [0, 0, 1, 1], [], []>} : vector<2x128xf32>, vector<128x23xf32>, vector<2x23xf32> -> vector<2x23xf32>
    %c0_3 = arith.constant 0 : index
    %c0_4 = arith.constant 0 : index
    %3 = vector.load %arg4[%c0_3, %c0_4] : memref<1x23xf32, #tpu.memory_space<vmem>>, vector<1x23xf32>
    %4 = vector.broadcast %3 : vector<1x23xf32> to vector<2x23xf32>
    %5 = arith.addf %2, %4 : vector<2x23xf32>
    %6 = vector.extract_strided_slice %5 {offsets = [0, 0], sizes = [2, 1], strides = [1, 1]} : vector<2x23xf32> to vector<2x1xf32>
    %7 = vector.extract_strided_slice %5 {offsets = [0, 1], sizes = [2, 1], strides = [1, 1]} : vector<2x23xf32> to vector<2x1xf32>
    %c0_5 = arith.constant 0 : index
    %c0_6 = arith.constant 0 : index
    %8 = vector.load %arg5[%c0_5, %c0_6] : memref<1x1xf32, #tpu.memory_space<vmem>>, vector<1x1xf32>
    %9 = vector.broadcast %8 : vector<1x1xf32> to vector<2x1xf32>
    %10 = arith.mulf %6, %9 : vector<2x1xf32>
    %11 = arith.addf %7, %10 : vector<2x1xf32>
    %cst_7 = arith.constant 0.000000e+00 : f32
    %12 = vector.broadcast %cst_7 : f32 to vector<2x1xf32>
    %13 = arith.subf %12, %11 : vector<2x1xf32>
    %14 = math.exp %13 : vector<2x1xf32>
    %cst_8 = arith.constant 1.000000e+00 : f32
    %15 = vector.broadcast %cst_8 : f32 to vector<2x1xf32>
    %16 = arith.addf %15, %14 : vector<2x1xf32>
    %cst_9 = arith.constant 1.000000e+00 : f32
    %17 = vector.broadcast %cst_9 : f32 to vector<2x1xf32>
    %18 = arith.divf %17, %16 : vector<2x1xf32>
    %c0_10 = arith.constant 0 : index
    %c0_11 = arith.constant 0 : index
    %19 = vector.load %arg6[%c0_10, %c0_11] : memref<1x2xf32, #tpu.memory_space<vmem>>, vector<1x2xf32>
    %20 = vector.extract_strided_slice %5 {offsets = [0, 2], sizes = [2, 1], strides = [1, 1]} : vector<2x23xf32> to vector<2x1xf32>
    %21 = vector.extract_strided_slice %19 {offsets = [0, 0], sizes = [1, 1], strides = [1, 1]} : vector<1x2xf32> to vector<1x1xf32>
    %22 = vector.broadcast %21 : vector<1x1xf32> to vector<2x1xf32>
    %23 = arith.mulf %6, %22 : vector<2x1xf32>
    %24 = arith.addf %20, %23 : vector<2x1xf32>
    %25 = vector.extract_strided_slice %19 {offsets = [0, 1], sizes = [1, 1], strides = [1, 1]} : vector<1x2xf32> to vector<1x1xf32>
    %26 = vector.broadcast %25 : vector<1x1xf32> to vector<2x1xf32>
    %27 = arith.mulf %18, %26 : vector<2x1xf32>
    %28 = arith.addf %24, %27 : vector<2x1xf32>
    %c0_12 = arith.constant 0 : index
    %c0_13 = arith.constant 0 : index
    %29 = vector.load %arg7[%c0_12, %c0_13] : memref<3x20xf32, #tpu.memory_space<vmem>>, vector<3x20xf32>
    %30 = vector.extract_strided_slice %5 {offsets = [0, 3], sizes = [2, 20], strides = [1, 1]} : vector<2x23xf32> to vector<2x20xf32>
    %31 = vector.extract_strided_slice %29 {offsets = [0, 0], sizes = [1, 20], strides = [1, 1]} : vector<3x20xf32> to vector<1x20xf32>
    %32 = vector.broadcast %6 : vector<2x1xf32> to vector<2x20xf32>
    %33 = vector.broadcast %31 : vector<1x20xf32> to vector<2x20xf32>
    %34 = arith.mulf %32, %33 : vector<2x20xf32>
    %35 = arith.addf %30, %34 : vector<2x20xf32>
    %36 = vector.extract_strided_slice %29 {offsets = [1, 0], sizes = [1, 20], strides = [1, 1]} : vector<3x20xf32> to vector<1x20xf32>
    %37 = vector.broadcast %18 : vector<2x1xf32> to vector<2x20xf32>
    %38 = vector.broadcast %36 : vector<1x20xf32> to vector<2x20xf32>
    %39 = arith.mulf %37, %38 : vector<2x20xf32>
    %40 = arith.addf %35, %39 : vector<2x20xf32>
    %41 = vector.extract_strided_slice %29 {offsets = [2, 0], sizes = [1, 20], strides = [1, 1]} : vector<3x20xf32> to vector<1x20xf32>
    %42 = vector.broadcast %28 : vector<2x1xf32> to vector<2x20xf32>
    %43 = vector.broadcast %41 : vector<1x20xf32> to vector<2x20xf32>
    %44 = arith.mulf %42, %43 : vector<2x20xf32>
    %45 = arith.addf %40, %44 : vector<2x20xf32>
    %46 = vector.extract_strided_slice %45 {offsets = [0, 0], sizes = [2, 10], strides = [1, 1]} : vector<2x20xf32> to vector<2x10xf32>
    %47 = vector.extract_strided_slice %45 {offsets = [0, 10], sizes = [2, 10], strides = [1, 1]} : vector<2x20xf32> to vector<2x10xf32>
    %c0_14 = arith.constant 0 : index
    %c0_15 = arith.constant 0 : index
    %48 = vector.load %arg19[%c0_14, %c0_15] : memref<2x1xf32, #tpu.memory_space<vmem>>, vector<2x1xf32>
    tpu.vector_store %arg19[%c0_14, %c0_15], %6 {strides = array<i32>} : memref<2x1xf32, #tpu.memory_space<vmem>>, vector<2x1xf32>,
    %c0_16 = arith.constant 0 : index
    %c0_17 = arith.constant 0 : index
    %49 = vector.load %arg20[%c0_16, %c0_17] : memref<2x1xf32, #tpu.memory_space<vmem>>, vector<2x1xf32>
    tpu.vector_store %arg20[%c0_16, %c0_17], %18 {strides = array<i32>} : memref<2x1xf32, #tpu.memory_space<vmem>>, vector<2x1xf32>,
    %c0_18 = arith.constant 0 : index
    %c0_19 = arith.constant 0 : index
    %50 = vector.load %arg21[%c0_18, %c0_19] : memref<2x1xf32, #tpu.memory_space<vmem>>, vector<2x1xf32>
    tpu.vector_store %arg21[%c0_18, %c0_19], %28 {strides = array<i32>} : memref<2x1xf32, #tpu.memory_space<vmem>>, vector<2x1xf32>,
    %c0_20 = arith.constant 0 : index
    %c0_21 = arith.constant 0 : index
    %51 = vector.load %arg22[%c0_20, %c0_21] : memref<2x10xf32, #tpu.memory_space<vmem>>, vector<2x10xf32>
    tpu.vector_store %arg22[%c0_20, %c0_21], %46 {strides = array<i32>} : memref<2x10xf32, #tpu.memory_space<vmem>>, vector<2x10xf32>,
    %c0_22 = arith.constant 0 : index
    %c0_23 = arith.constant 0 : index
    %52 = vector.load %arg23[%c0_22, %c0_23] : memref<2x10xf32, #tpu.memory_space<vmem>>, vector<2x10xf32>
    tpu.vector_store %arg23[%c0_22, %c0_23], %47 {strides = array<i32>} : memref<2x10xf32, #tpu.memory_space<vmem>>, vector<2x10xf32>,
    %c0_24 = arith.constant 0 : index
    %c0_25 = arith.constant 0 : index
    %53 = vector.load %arg2[%c0_24, %c0_25] : memref<2x10xf32, #tpu.memory_space<vmem>>, vector<2x10xf32>
    %cst_26 = arith.constant 5.000000e-01 : f32
    %54 = vector.broadcast %cst_26 : f32 to vector<2x10xf32>
    %55 = arith.mulf %54, %47 : vector<2x10xf32>
    %56 = math.exp %55 : vector<2x10xf32>
    %57 = arith.mulf %53, %56 : vector<2x10xf32>
    %58 = arith.addf %46, %57 : vector<2x10xf32>
    %c0_27 = arith.constant 0 : index
    %c0_28 = arith.constant 0 : index
    %59 = vector.load %arg8[%c0_27, %c0_28] : memref<10x144xf32, #tpu.memory_space<vmem>>, vector<10x144xf32>
    %cst_29 = arith.constant dense<0.000000e+00> : vector<2x144xf32>
    %60 = tpu.matmul %58, %59, %cst_29 {dimension_numbers = #tpu.dot_dimension_numbers<[1], [0], [0], [1], [0, 0, 1, 1], [], []>} : vector<2x10xf32>, vector<10x144xf32>, vector<2x144xf32> -> vector<2x144xf32>
    %c0_30 = arith.constant 0 : index
    %c0_31 = arith.constant 0 : index
    %61 = vector.load %arg9[%c0_30, %c0_31] : memref<1x144xf32, #tpu.memory_space<vmem>>, vector<1x144xf32>
    %62 = vector.broadcast %61 : vector<1x144xf32> to vector<2x144xf32>
    %63 = arith.addf %60, %62 : vector<2x144xf32>
    %cst_32 = arith.constant 0.000000e+00 : f32
    %64 = vector.broadcast %cst_32 : f32 to vector<2x144xf32>
    %65 = arith.maximumf %63, %64 : vector<2x144xf32>
    %66 = vector.extract_strided_slice %65 {offsets = [0, 0], sizes = [2, 128], strides = [1, 1]} : vector<2x144xf32> to vector<2x128xf32>
    %c0_33 = arith.constant 0 : index
    %c0_34 = arith.constant 0 : index
    %67 = vector.load %arg10[%c0_33, %c0_34] : memref<128x64xf32, #tpu.memory_space<vmem>>, vector<128x64xf32>
    %cst_35 = arith.constant dense<0.000000e+00> : vector<2x64xf32>
    %68 = tpu.matmul %66, %67, %cst_35 {dimension_numbers = #tpu.dot_dimension_numbers<[1], [0], [0], [1], [0, 0, 1, 1], [], []>} : vector<2x128xf32>, vector<128x64xf32>, vector<2x64xf32> -> vector<2x64xf32>
    %c0_36 = arith.constant 0 : index
    %c0_37 = arith.constant 0 : index
    %69 = vector.load %arg11[%c0_36, %c0_37] : memref<1x64xf32, #tpu.memory_space<vmem>>, vector<1x64xf32>
    %70 = vector.broadcast %69 : vector<1x64xf32> to vector<2x64xf32>
    %71 = arith.addf %68, %70 : vector<2x64xf32>
    %72 = vector.extract_strided_slice %65 {offsets = [0, 128], sizes = [2, 16], strides = [1, 1]} : vector<2x144xf32> to vector<2x16xf32>
    %c0_38 = arith.constant 0 : index
    %c0_39 = arith.constant 0 : index
    %73 = vector.load %arg12[%c0_38, %c0_39] : memref<16x8xf32, #tpu.memory_space<vmem>>, vector<16x8xf32>
    %cst_40 = arith.constant dense<0.000000e+00> : vector<2x8xf32>
    %74 = tpu.matmul %72, %73, %cst_40 {dimension_numbers = #tpu.dot_dimension_numbers<[1], [0], [0], [1], [0, 0, 1, 1], [], []>} : vector<2x16xf32>, vector<16x8xf32>, vector<2x8xf32> -> vector<2x8xf32>
    %c0_41 = arith.constant 0 : index
    %c0_42 = arith.constant 0 : index
    %75 = vector.load %arg13[%c0_41, %c0_42] : memref<1x8xf32, #tpu.memory_space<vmem>>, vector<1x8xf32>
    %76 = vector.broadcast %75 : vector<1x8xf32> to vector<2x8xf32>
    %77 = arith.addf %74, %76 : vector<2x8xf32>
    %78 = vector.extract_strided_slice %71 {offsets = [0, 0], sizes = [2, 32], strides = [1, 1]} : vector<2x64xf32> to vector<2x32xf32>
    %c0_43 = arith.constant 0 : index
    %c0_44 = arith.constant 0 : index
    %79 = vector.load %arg24[%c0_43, %c0_44] : memref<2x32xf32, #tpu.memory_space<vmem>>, vector<2x32xf32>
    tpu.vector_store %arg24[%c0_43, %c0_44], %78 {strides = array<i32>} : memref<2x32xf32, #tpu.memory_space<vmem>>, vector<2x32xf32>,
    %80 = vector.extract_strided_slice %71 {offsets = [0, 32], sizes = [2, 32], strides = [1, 1]} : vector<2x64xf32> to vector<2x32xf32>
    %c0_45 = arith.constant 0 : index
    %c0_46 = arith.constant 0 : index
    %81 = vector.load %arg25[%c0_45, %c0_46] : memref<2x32xf32, #tpu.memory_space<vmem>>, vector<2x32xf32>
    tpu.vector_store %arg25[%c0_45, %c0_46], %80 {strides = array<i32>} : memref<2x32xf32, #tpu.memory_space<vmem>>, vector<2x32xf32>,
    %c0_47 = arith.constant 0 : index
    %c0_48 = arith.constant 0 : index
    %82 = vector.load %arg26[%c0_47, %c0_48] : memref<2x8xf32, #tpu.memory_space<vmem>>, vector<2x8xf32>
    tpu.vector_store %arg26[%c0_47, %c0_48], %77 {strides = array<i32>} : memref<2x8xf32, #tpu.memory_space<vmem>>, vector<2x8xf32>,
    %c0_49 = arith.constant 0 : index
    %c0_50 = arith.constant 0 : index
    %83 = vector.load %arg14[%c0_49, %c0_50] : memref<10x48xf32, #tpu.memory_space<vmem>>, vector<10x48xf32>
    %cst_51 = arith.constant dense<0.000000e+00> : vector<2x48xf32>
    %84 = tpu.matmul %58, %83, %cst_51 {dimension_numbers = #tpu.dot_dimension_numbers<[1], [0], [0], [1], [0, 0, 1, 1], [], []>} : vector<2x10xf32>, vector<10x48xf32>, vector<2x48xf32> -> vector<2x48xf32>
    %c0_52 = arith.constant 0 : index
    %c0_53 = arith.constant 0 : index
    %85 = vector.load %arg15[%c0_52, %c0_53] : memref<8x48xf32, #tpu.memory_space<vmem>>, vector<8x48xf32>
    %cst_54 = arith.constant dense<0.000000e+00> : vector<2x48xf32>
    %86 = tpu.matmul %77, %85, %cst_54 {dimension_numbers = #tpu.dot_dimension_numbers<[1], [0], [0], [1], [0, 0, 1, 1], [], []>} : vector<2x8xf32>, vector<8x48xf32>, vector<2x48xf32> -> vector<2x48xf32>
    %87 = arith.addf %84, %86 : vector<2x48xf32>
    %c0_55 = arith.constant 0 : index
    %c0_56 = arith.constant 0 : index
    %88 = vector.load %arg16[%c0_55, %c0_56] : memref<1x48xf32, #tpu.memory_space<vmem>>, vector<1x48xf32>
    %89 = vector.broadcast %88 : vector<1x48xf32> to vector<2x48xf32>
    %90 = arith.addf %87, %89 : vector<2x48xf32>
    %cst_57 = arith.constant 0.000000e+00 : f32
    %91 = vector.broadcast %cst_57 : f32 to vector<2x48xf32>
    %92 = arith.maximumf %90, %91 : vector<2x48xf32>
    %c0_58 = arith.constant 0 : index
    %c0_59 = arith.constant 0 : index
    %93 = vector.load %arg17[%c0_58, %c0_59] : memref<48x24xf32, #tpu.memory_space<vmem>>, vector<48x24xf32>
    %cst_60 = arith.constant dense<0.000000e+00> : vector<2x24xf32>
    %94 = tpu.matmul %92, %93, %cst_60 {dimension_numbers = #tpu.dot_dimension_numbers<[1], [0], [0], [1], [0, 0, 1, 1], [], []>} : vector<2x48xf32>, vector<48x24xf32>, vector<2x24xf32> -> vector<2x24xf32>
    %c0_61 = arith.constant 0 : index
    %c0_62 = arith.constant 0 : index
    %95 = vector.load %arg18[%c0_61, %c0_62] : memref<1x24xf32, #tpu.memory_space<vmem>>, vector<1x24xf32>
    %96 = vector.broadcast %95 : vector<1x24xf32> to vector<2x24xf32>
    %97 = arith.addf %94, %96 : vector<2x24xf32>
    %98 = vector.extract_strided_slice %97 {offsets = [0, 0], sizes = [2, 8], strides = [1, 1]} : vector<2x24xf32> to vector<2x8xf32>
    %cst_63 = arith.constant 0.000000e+00 : f32
    %99 = vector.broadcast %cst_63 : f32 to vector<2x8xf32>
    %100 = arith.subf %99, %98 : vector<2x8xf32>
    %101 = math.exp %100 : vector<2x8xf32>
    %cst_64 = arith.constant 1.000000e+00 : f32
    %102 = vector.broadcast %cst_64 : f32 to vector<2x8xf32>
    %103 = arith.addf %102, %101 : vector<2x8xf32>
    %cst_65 = arith.constant 1.000000e+00 : f32
    %104 = vector.broadcast %cst_65 : f32 to vector<2x8xf32>
    %105 = arith.divf %104, %103 : vector<2x8xf32>
    %106 = vector.extract_strided_slice %97 {offsets = [0, 8], sizes = [2, 8], strides = [1, 1]} : vector<2x24xf32> to vector<2x8xf32>
    %107 = vector.extract_strided_slice %97 {offsets = [0, 16], sizes = [2, 8], strides = [1, 1]} : vector<2x24xf32> to vector<2x8xf32>
    %c0_66 = arith.constant 0 : index
    %c0_67 = arith.constant 0 : index
    %108 = vector.load %arg27[%c0_66, %c0_67] : memref<2x8xf32, #tpu.memory_space<vmem>>, vector<2x8xf32>
    tpu.vector_store %arg27[%c0_66, %c0_67], %105 {strides = array<i32>} : memref<2x8xf32, #tpu.memory_space<vmem>>, vector<2x8xf32>,
    %c0_68 = arith.constant 0 : index
    %c0_69 = arith.constant 0 : index
    %109 = vector.load %arg29[%c0_68, %c0_69] : memref<2x8xf32, #tpu.memory_space<vmem>>, vector<2x8xf32>
    tpu.vector_store %arg29[%c0_68, %c0_69], %106 {strides = array<i32>} : memref<2x8xf32, #tpu.memory_space<vmem>>, vector<2x8xf32>,
    %c0_70 = arith.constant 0 : index
    %c0_71 = arith.constant 0 : index
    %110 = vector.load %arg30[%c0_70, %c0_71] : memref<2x8xf32, #tpu.memory_space<vmem>>, vector<2x8xf32>
    tpu.vector_store %arg30[%c0_70, %c0_71], %107 {strides = array<i32>} : memref<2x8xf32, #tpu.memory_space<vmem>>, vector<2x8xf32>,
    %cst_72 = arith.constant 1.000000e+00 : f32
    %111 = vector.broadcast %cst_72 : f32 to vector<2x8xf32>
    %112 = arith.subf %111, %105 : vector<2x8xf32>
    %113 = arith.mulf %112, %106 : vector<2x8xf32>
    %114 = arith.mulf %105, %107 : vector<2x8xf32>
    %115 = arith.addf %113, %114 : vector<2x8xf32>
    %c0_73 = arith.constant 0 : index
    %c0_74 = arith.constant 0 : index
    %116 = vector.load %arg28[%c0_73, %c0_74] : memref<2x8xf32, #tpu.memory_space<vmem>>, vector<2x8xf32>
    tpu.vector_store %arg28[%c0_73, %c0_74], %115 {strides = array<i32>} : memref<2x8xf32, #tpu.memory_space<vmem>>, vector<2x8xf32>,
    return
  }
  func.func @transform_0(%arg0: i32) -> (i32, i32) {
    %c0_i32 = arith.constant 0 : i32
    %c0_i32_0 = arith.constant 0 : i32
    %c0_i32_1 = arith.constant 0 : i32
    return %c0_i32, %c0_i32_0 : i32, i32
  }
  func.func @transform_1(%arg0: i32) -> (i32, i32) {
    %c0_i32 = arith.constant 0 : i32
    %c0_i32_0 = arith.constant 0 : i32
    %c0_i32_1 = arith.constant 0 : i32
    return %c0_i32, %c0_i32_0 : i32, i32
  }
  func.func @transform_2(%arg0: i32) -> (i32, i32) {
    %c0_i32 = arith.constant 0 : i32
    %c0_i32_0 = arith.constant 0 : i32
    %c0_i32_1 = arith.constant 0 : i32
    return %c0_i32, %c0_i32_0 : i32, i32
  }
  func.func @transform_3(%arg0: i32) -> (i32, i32) {
    %c0_i32 = arith.constant 0 : i32
    %c0_i32_0 = arith.constant 0 : i32
    %c0_i32_1 = arith.constant 0 : i32
    return %c0_i32, %c0_i32_0 : i32, i32
  }
  func.func @transform_4(%arg0: i32) -> (i32, i32) {
    %c0_i32 = arith.constant 0 : i32
    %c0_i32_0 = arith.constant 0 : i32
    %c0_i32_1 = arith.constant 0 : i32
    return %c0_i32, %c0_i32_0 : i32, i32
  }
  func.func @transform_5(%arg0: i32) -> (i32, i32) {
    %c0_i32 = arith.constant 0 : i32
    %c0_i32_0 = arith.constant 0 : i32
    %c0_i32_1 = arith.constant 0 : i32
    return %c0_i32, %c0_i32_0 : i32, i32
  }
  func.func @transform_6(%arg0: i32) -> (i32, i32) {
    %c0_i32 = arith.constant 0 : i32
    %c0_i32_0 = arith.constant 0 : i32
    %c0_i32_1 = arith.constant 0 : i32
    return %c0_i32, %c0_i32_0 : i32, i32
  }
  func.func @transform_7(%arg0: i32) -> (i32, i32) {
    %c0_i32 = arith.constant 0 : i32
    %c0_i32_0 = arith.constant 0 : i32
    %c0_i32_1 = arith.constant 0 : i32
    return %c0_i32, %c0_i32_0 : i32, i32
  }
  func.func @transform_8(%arg0: i32) -> (i32, i32) {
    %c0_i32 = arith.constant 0 : i32
    %c0_i32_0 = arith.constant 0 : i32
    %c0_i32_1 = arith.constant 0 : i32
    return %c0_i32, %c0_i32_0 : i32, i32
  }
  func.func @transform_9(%arg0: i32) -> (i32, i32) {
    %c0_i32 = arith.constant 0 : i32
    %c0_i32_0 = arith.constant 0 : i32
    %c0_i32_1 = arith.constant 0 : i32
    return %c0_i32, %c0_i32_0 : i32, i32
  }
  func.func @transform_10(%arg0: i32) -> (i32, i32) {
    %c0_i32 = arith.constant 0 : i32
    %c0_i32_0 = arith.constant 0 : i32
    %c0_i32_1 = arith.constant 0 : i32
    return %c0_i32, %c0_i32_0 : i32, i32
  }
  func.func @transform_11(%arg0: i32) -> (i32, i32) {
    %c0_i32 = arith.constant 0 : i32
    %c0_i32_0 = arith.constant 0 : i32
    %c0_i32_1 = arith.constant 0 : i32
    return %c0_i32, %c0_i32_0 : i32, i32
  }
  func.func @transform_12(%arg0: i32) -> (i32, i32) {
    %c0_i32 = arith.constant 0 : i32
    %c0_i32_0 = arith.constant 0 : i32
    %c0_i32_1 = arith.constant 0 : i32
    return %c0_i32, %c0_i32_0 : i32, i32
  }
  func.func @transform_13(%arg0: i32) -> (i32, i32) {
    %c0_i32 = arith.constant 0 : i32
    %c0_i32_0 = arith.constant 0 : i32
    %c0_i32_1 = arith.constant 0 : i32
    return %c0_i32, %c0_i32_0 : i32, i32
  }
  func.func @transform_14(%arg0: i32) -> (i32, i32) {
    %c0_i32 = arith.constant 0 : i32
    %c0_i32_0 = arith.constant 0 : i32
    %c0_i32_1 = arith.constant 0 : i32
    return %c0_i32, %c0_i32_0 : i32, i32
  }
  func.func @transform_15(%arg0: i32) -> (i32, i32) {
    %c0_i32 = arith.constant 0 : i32
    %c0_i32_0 = arith.constant 0 : i32
    %c0_i32_1 = arith.constant 0 : i32
    return %c0_i32, %c0_i32_0 : i32, i32
  }
  func.func @transform_16(%arg0: i32) -> (i32, i32) {
    %c0_i32 = arith.constant 0 : i32
    %c0_i32_0 = arith.constant 0 : i32
    %c0_i32_1 = arith.constant 0 : i32
    return %c0_i32, %c0_i32_0 : i32, i32
  }
  func.func @transform_17(%arg0: i32) -> (i32, i32) {
    %c0_i32 = arith.constant 0 : i32
    %c0_i32_0 = arith.constant 0 : i32
    %c0_i32_1 = arith.constant 0 : i32
    return %c0_i32, %c0_i32_0 : i32, i32
  }
  func.func @transform_18(%arg0: i32) -> (i32, i32) {
    %c0_i32 = arith.constant 0 : i32
    %c0_i32_0 = arith.constant 0 : i32
    %c0_i32_1 = arith.constant 0 : i32
    return %c0_i32, %c0_i32_0 : i32, i32
  }
  func.func @transform_19(%arg0: i32) -> (i32, i32) {
    %c0_i32 = arith.constant 0 : i32
    %c0_i32_0 = arith.constant 0 : i32
    %c0_i32_1 = arith.constant 0 : i32
    return %c0_i32, %c0_i32_0 : i32, i32
  }
  func.func @transform_20(%arg0: i32) -> (i32, i32) {
    %c0_i32 = arith.constant 0 : i32
    %c0_i32_0 = arith.constant 0 : i32
    %c0_i32_1 = arith.constant 0 : i32
    return %c0_i32, %c0_i32_0 : i32, i32
  }
  func.func @transform_21(%arg0: i32) -> (i32, i32) {
    %c0_i32 = arith.constant 0 : i32
    %c0_i32_0 = arith.constant 0 : i32
    %c0_i32_1 = arith.constant 0 : i32
    return %c0_i32, %c0_i32_0 : i32, i32
  }
  func.func @transform_22(%arg0: i32) -> (i32, i32) {
    %c0_i32 = arith.constant 0 : i32
    %c0_i32_0 = arith.constant 0 : i32
    %c0_i32_1 = arith.constant 0 : i32
    return %c0_i32, %c0_i32_0 : i32, i32
  }
  func.func @transform_23(%arg0: i32) -> (i32, i32) {
    %c0_i32 = arith.constant 0 : i32
    %c0_i32_0 = arith.constant 0 : i32
    %c0_i32_1 = arith.constant 0 : i32
    return %c0_i32, %c0_i32_0 : i32, i32
  }
  func.func @transform_24(%arg0: i32) -> (i32, i32) {
    %c0_i32 = arith.constant 0 : i32
    %c0_i32_0 = arith.constant 0 : i32
    %c0_i32_1 = arith.constant 0 : i32
    return %c0_i32, %c0_i32_0 : i32, i32
  }
  func.func @transform_25(%arg0: i32) -> (i32, i32) {
    %c0_i32 = arith.constant 0 : i32
    %c0_i32_0 = arith.constant 0 : i32
    %c0_i32_1 = arith.constant 0 : i32
    return %c0_i32, %c0_i32_0 : i32, i32
  }
  func.func @transform_26(%arg0: i32) -> (i32, i32) {
    %c0_i32 = arith.constant 0 : i32
    %c0_i32_0 = arith.constant 0 : i32
    %c0_i32_1 = arith.constant 0 : i32
    return %c0_i32, %c0_i32_0 : i32, i32
  }
  func.func @transform_27(%arg0: i32) -> (i32, i32) {
    %c0_i32 = arith.constant 0 : i32
    %c0_i32_0 = arith.constant 0 : i32
    %c0_i32_1 = arith.constant 0 : i32
    return %c0_i32, %c0_i32_0 : i32, i32
  }
  func.func @transform_28(%arg0: i32) -> (i32, i32) {
    %c0_i32 = arith.constant 0 : i32
    %c0_i32_0 = arith.constant 0 : i32
    %c0_i32_1 = arith.constant 0 : i32
    return %c0_i32, %c0_i32_0 : i32, i32
  }
  func.func @transform_29(%arg0: i32) -> (i32, i32) {
    %c0_i32 = arith.constant 0 : i32
    %c0_i32_0 = arith.constant 0 : i32
    %c0_i32_1 = arith.constant 0 : i32
    return %c0_i32, %c0_i32_0 : i32, i32
  }
}

</mosaic_0001>

<bundles_post_ra>
// kernel: cevt_forward.3
= control target key start
LH: loop header
LB: loop body
LE: loop exit
PB: predicated region body
PF: predicated region fallthrough
CT: control target
= control target key end

     0   :  { %s1484_s6 = smov 1   ;;  %s1485_s10 = smov 2   ;;  %s1898_s0 = inlined_call_operand.smem [shape: u32[30], index: -1, kind: input, shape index: {}] }
   0x1   :  { %s1545_s5 = sld [smem:[%s1898_s0]]   ;;  %s1486_s14 = smov 3  }
   0x2   :  { %s1550_s9 = sld [smem:[%s1898_s0 + %s1484_s6]]   ;;  %s1487_s18 = smov 4  }
   0x3   :  { %s1555_s13 = sld [smem:[%s1898_s0 + %s1485_s10]]   ;;  %s1488_s22 = smov 5  }
   0x4   :  { %s1560_s17 = sld [smem:[%s1898_s0 + %s1486_s14]]   ;;  %s1489_s26 = smov 6  }
   0x5   :  { %s991_s21 = sld [smem:[%s1898_s0 + %s1487_s18]]   ;;  %s1490_s30 = smov 7  }
   0x6   :  { %s1568_s25 = sld [smem:[%s1898_s0 + %s1488_s22]]   ;;  %s1491_s4 = smov 8  }
   0x7   :  { %s1573_s29 = sld [smem:[%s1898_s0 + %s1489_s26]]   ;;  %s1492_s10 = smov 9  }
   0x8   :  { %s1578_s3 = sld [smem:[%s1898_s0 + %s1490_s30]]   ;;  %s1493_s15 = smov 10  }
   0x9   :  { %s1583_s8 = sld [smem:[%s1898_s0 + %s1491_s4]]   ;;  %s1494_s20 = smov 11  }
   0xa   :  { %s1588_s14 = sld [smem:[%s1898_s0 + %s1492_s10]]   ;;  %s1495_s26 = smov 12  }
   0xb   :  { %s1593_s19 = sld [smem:[%s1898_s0 + %s1493_s15]]   ;;  %v65_v0 = vstv %s991_s21  ;;  %s1496_s1 = smov 13  }
   0xc   :  { %s1598_s24 = sld [smem:[%s1898_s0 + %s1494_s20]]   ;;  %66 = vst [vmem:[#allocation2] sm:$0x1] %v65_v0  ;;  %s1497_s21 = smov 14  }
   0xd   :  { %s1603_s30 = sld [smem:[%s1898_s0 + %s1495_s26]]   ;;  %s1498_s12 = smov 15  }
   0xe   :  { %s1608_s6 = sld [smem:[%s1898_s0 + %s1496_s1]]   ;;  %s1499_s20 = smov 16  }
   0xf   :  { %s1613_s11 = sld [smem:[%s1898_s0 + %s1497_s21]]   ;;  %s1500_s27 = smov 17  }
  0x10   :  { %s1618_s18 = sld [smem:[%s1898_s0 + %s1498_s12]]   ;;  %s1501_s4 = smov 18  }
  0x11   :  { %s1623_s26 = sld [smem:[%s1898_s0 + %s1499_s20]]   ;;  %s1502_s12 = smov 19  }
  0x12   :  { %s1628_s2 = sld [smem:[%s1898_s0 + %s1500_s27]]   ;;  %s1503_s20 = smov 20  }
  0x13   :  { %1903 = sst [smem:[#allocation18_spill]] %s1603_s30  ;;  %s1504_s27 = smov 21  }
  0x14   :  { %s1633_s10 = sld [smem:[%s1898_s0 + %s1501_s4]]   ;;  %s1505_s4 = smov 22  }
  0x15   :  { %s1643_s30 = sld [smem:[%s1898_s0 + %s1503_s20]]   ;;  %s1507_s20 = smov 24  }
  0x16   :  { %1904 = sst [smem:[#allocation19_spill]] %s1618_s18 }
  0x17   :  { %1905 = sst [smem:[#allocation20_spill]] %s1623_s26 }
  0x18   :  { %1906 = sst [smem:[#allocation21_spill]] %s1628_s2 }
  0x19   :  { %s1638_s18 = sld [smem:[%s1898_s0 + %s1502_s12]]   ;;  %s1506_s12 = smov 23  }
  0x1a   :  { %s1648_s2 = sld [smem:[%s1898_s0 + %s1504_s27]]   ;;  %s1508_s27 = smov 25  }
  0x1b   :  { %1908 = sst [smem:[#allocation23_spill]] %s1643_s30 }
  0x1c   :  { %s1653_s26 = sld [smem:[%s1898_s0 + %s1505_s4]]   ;;  %s1509_s4 = smov 26  }
  0x1d   :  { %s1663_s30 = sld [smem:[%s1898_s0 + %s1507_s20]]   ;;  %s1511_s20 = smov 28  }
  0x1f   :  { %1907 = sst [smem:[#allocation22_spill]] %s1638_s18 }
  0x20   :  { %1909 = sst [smem:[#allocation24_spill]] %s1648_s2 }
  0x21   :  { %s1658_s18 = sld [smem:[%s1898_s0 + %s1506_s12]]   ;;  %s1510_s12 = smov 27  }
  0x22   :  { %1910 = sst [smem:[#allocation25_spill]] %s1653_s26 }
  0x23   :  { %1912 = sst [smem:[#allocation27_spill]] %s1663_s30 }
  0x24   :  { %s1668_s2 = sld [smem:[%s1898_s0 + %s1508_s27]]   ;;  %s1512_s27 = smov 29  }
  0x25   :  { %s1673_s26 = sld [smem:[%s1898_s0 + %s1509_s4]]  }
  0x26   :  { %s1683_s30 = sld [smem:[%s1898_s0 + %s1511_s20]]  }
  0x27   :  { %1911 = sst [smem:[#allocation26_spill]] %s1658_s18 }
  0x28   :  { %s1678_s18 = sld [smem:[%s1898_s0 + %s1510_s12]]  }
  0x2a   :  { %1913 = sst [smem:[#allocation28_spill]] %s1668_s2 }
  0x2b   :  { %s1688_s2 = sld [smem:[%s1898_s0 + %s1512_s27]]  }
  0x2c   :  { %67 = vsyncpa [#allocation4], 0 }
  0x2d   :  { %68 = vsyncpa [#allocation6], 0 }
  0x2e   :  { %69 = vsyncpa [#allocation9], 0  ;;  %v108_v1 = vld [vmem:[%s1555_s13] sm:$0xff]  ;;  %v109_v2 = vld [vmem:[%s1555_s13 + $0x8] sm:$0xff]  ;;  %v1513_v4 = vmov 0.0|0.0   ;;  %vm1514_vm0 = vmmov 0  }
  0x2f   :  { %v110_v3 = vld [vmem:[%s1555_s13 + $0x10] sm:$0xff]  ;;  %1185 = vmatprep.subr.bf16.mxu0 %v1513_v4  ;;  %v1186_v5 = vpack.c.bf16 %v109_v2, %v108_v1  ;;  %v111_v6 = vld [vmem:[%s1555_s13 + $0x18] sm:$0xff]  ;;  %v1515_v7 = vmov 0.0   ;;  %v112_v9 = vld [vmem:[%s1555_s13 + $0x20] sm:$0xff] }
  0x30   :  { %1113 = vmatprep.mubr.msk.f32.mxu0 %vm1514_vm0, %v1515_v7  ;;  %412 = vmatprep.mubr.f32.mxu1 %v1515_v7  ;;  %v1189_v8 = vpack.c.bf16 %v111_v6, %v110_v3  ;;  %v113_v10 = vld [vmem:[%s1555_s13 + $0x28] sm:$0xff] }
  0x31   :  { %1187 = vmatpush3.bf16.msra.mxu0 %v1186_v5 }
  0x32   :  { %1188 = vmatprep.subr.bf16.mxu0 %v1513_v4 }
  0x33   :  { %70 = vsyncpa [#allocation12], 0  ;;  %v1192_v11 = vpack.c.bf16 %v113_v10, %v112_v9  ;;  %v114_v12 = vld [vmem:[%s1555_s13 + $0x30] sm:$0xff]  ;;  %v115_v13 = vld [vmem:[%s1555_s13 + $0x38] sm:$0xff]  ;;  %vm285_vm1 = vcmask 1024   ;;  %s1516_s0 = smov 1   ;;  %v245_v48 = vlaneseq }
  0x34   :  { %v1195_v14 = vpack.c.bf16 %v115_v13, %v114_v12  ;;  %v116_v15 = vld [vmem:[%s1555_s13 + $0x40] sm:$0xff]  ;;  %v117_v16 = vld [vmem:[%s1555_s13 + $0x48] sm:$0xff]  ;;  %v118_v18 = vld [vmem:[%s1555_s13 + $0x50] sm:$0xff]  ;;  %v1518_v36 = vmov 1   ;;  %v1519_v37 = vmov 0   ;;  %v1520_v46 = vmov 2  }
  0x35   :  { %1190 = vmatpush3.bf16.msra.mxu0 %v1189_v8  ;;  %v1198_v17 = vpack.c.bf16 %v117_v16, %v116_v15  ;;  %v119_v19 = vld [vmem:[%s1555_s13 + $0x58] sm:$0xff]  ;;  %v120_v21 = vld [vmem:[%s1555_s13 + $0x60] sm:$0xff]  ;;  %v121_v22 = vld [vmem:[%s1555_s13 + $0x68] sm:$0xff]  ;;  %1309 = vset.pattern.permute.xlu0 %v1518_v36  ;;  %v1729_v51 = vshrl.u32 %v245_v48, 7  ;;  %vm341_vm2 = vcmask 1041408   ;;  %vm1523_vm3 = vmmov 1  }
  0x36   :  { %1191 = vmatprep.subr.bf16.mxu0 %v1513_v4  ;;  %v1201_v20 = vpack.c.bf16 %v119_v19, %v118_v18  ;;  %v1204_v23 = vpack.c.bf16 %v121_v22, %v120_v21  ;;  %v122_v24 = vld [vmem:[%s1555_s13 + $0x70] sm:$0xff]  ;;  %v123_v25 = vld [vmem:[%s1555_s13 + $0x78] sm:$0xff]  ;;  %v107_v27 = vld [vmem:[%s1545_s5] sm:$0x3]  ;;  %s1517_s5 = smov 2   ;;  %1308 = vset.pattern.permute.xlu1 %v1519_v37  ;;  %s1521_s13 = smov 3  }
  0x37   :  { %v1207_v26 = vpack.c.bf16 %v123_v25, %v122_v24  ;;  %v1017_v28 = vld [vmem:[%s1560_s17] ss:$0 sm:$0xff]  ;;  %v262_v53 = vsub.s32 1, %v1729_v51  ;;  %v247_v56 = vsub.s32 0, %v1729_v51  ;;  %v277_v62 = vsub.s32 2, %v1729_v51  ;;  %s1522_s17 = smov 115   ;;  %vm1751_vm4 = vmpackc.low %vm341_vm2, %vm1523_vm3 }
  0x38   :  { %v1018_v30 = vld [vmem:[#allocation2] ss:$0 sm:$0xff]  ;;  %v320_v13 = vld [vmem:[%s1578_s3 + $0x8] sm:$0xff]  ;;  %v321_v18 = vld [vmem:[%s1578_s3 + $0x10] sm:$0x3]  ;;  %vm299_vm5 = vcmask 74752  }
  0x39   :  { %1193 = vmatpush3.bf16.msra.mxu0 %v1192_v11  ;;  %v1019_v34 = vld [vmem:[%s1568_s25] ss:$0 sm:$0xff]  ;;  %s1524_s25 = smov 125   ;;  %vm338_vm6 = vcmask 80896   ;;  %v427_v36 = vld [vmem:[%s1588_s14 + $0x30] sm:$0xff]  ;;  %v428_v37 = vld [vmem:[%s1588_s14 + $0x38] sm:$0xff] }
  0x3a   :  { %1194 = vmatprep.subr.bf16.mxu0 %v1513_v4  ;;  %v239_v54 = vld [vmem:[%s1573_s29] sm:$0x7]  ;;  %vm523_vm7 = vcmask 130048   ;;  %s1917_s29 = sld [smem:[#allocation18_spill]]  ;;  %vm597_vm8 = vcmask 254976   ;;  %vm609_vm9 = vcmask 64512  }
  0x3b   :  { %v263_v55 = vrot.slane %v239_v54, %v262_v53  ;;  %v248_v59 = vrot.slane %v239_v54, %v247_v56  ;;  %v278_v63 = vrot.slane %v239_v54, %v277_v62  ;;  %v319_v15 = vld [vmem:[%s1578_s3] sm:$0xff]  ;;  %vm604_vm10 = vcmask 58368  }
  0x3c   :  { %v1212_v19 = vpack.c.bf16 %v321_v18, %v319_v15  ;;  %vm778_vm11 = vcmask 392192  }
  0x3d   :  { %1196 = vmatpush3.bf16.msra.mxu0 %v1195_v14  ;;  %v322_v14 = vld [vmem:[%s1578_s3 + $0x18] sm:$0x3]  ;;  %s1918_s3 = sld [smem:[#allocation26_spill]] }
  0x3e   :  { %1197 = vmatprep.subr.bf16.mxu0 %v1513_v4  ;;  %v1209_v16 = vpack.c.bf16 %v322_v14, %v320_v13 }
  0x40   :  { %1211 = vmatprep.subr.msk.bf16.mxu1 %vm1751_vm4, %v1209_v16  ;;  %v1024_v14 = vld [vmem:[%s1917_s29] ss:$0 sm:$0xff] }
  0x41   :  { %1199 = vmatpush3.bf16.msra.mxu0 %v1198_v17  ;;  %1214 = vmatpush1.bf16.msk.msra.mxu1 %vm1751_vm4, %v1212_v19 }
  0x42   :  { %1200 = vmatprep.subr.bf16.mxu0 %v1513_v4  ;;  %1215 = vmatprep.subr.bf16.mxu1 %v1513_v4 }
  0x45   :  { %1202 = vmatpush3.bf16.msra.mxu0 %v1201_v20  ;;  %v305_v20 = vld [vmem:[%s1550_s9] sm:$0x3]  ;;  %s1916_s9 = sld [smem:[#allocation20_spill]] }
  0x46   :  { %1203 = vmatprep.subr.bf16.mxu0 %v1513_v4 }
  0x49   :  { %1205 = vmatpush3.bf16.msra.mxu0 %v1204_v23 }
  0x4a   :  { %1206 = vmatprep.subr.bf16.mxu0 %v1513_v4 }
  0x4b   :  { %v766_v13 = vld [vmem:[%s1916_s9 + $0x8] sm:$0xff] }
  0x4d   :  { %1208 = vmatpush3.bf16.msra.mxu0 %v1207_v26  ;;  %v421_v26 = vld [vmem:[%s1588_s14] sm:$0xff] }
  0x4e   :  { %1158 = vmatprep.subr.mxu0 %v1515_v7 }
  0x50   :  { %1114 = vmatmul.mubr.f32.vlgmr.msra.gmra.mrb[0].mxu0 %v107_v27  ;;  %v422_v27 = vld [vmem:[%s1588_s14 + $0x8] sm:$0xff] }
  0x51   :  { %1160 = vmatprep.mubr.msk.f32.mxu0 %vm1514_vm0, %v1515_v7 }
 0x123   :  { %v197_v29 = vpop.f32.mrb[0].mxu0 }
 0x124   :  { %v198_v31 = vadd.f32 %v1017_v28, %v197_v29  ;;  %v1115_v32 = vpop.f32.mrb[1].mxu0  ;;  %v1216_v28 = vpack.c.bf16 %v422_v27, %v421_v26  ;;  %v423_v29 = vld [vmem:[%s1588_s14 + $0x10] sm:$0xff] }
 0x126   :  { %v208_v33 = vmul.f32 %v1018_v30, %v198_v31  ;;  %286 = vst.msk [vmem:[%s1633_s10] sm:$0x3] %vm285_vm1, %v198_v31  ;;  %v227_v35 = vmul.f32 %v1019_v34, %v198_v31  ;;  %v424_v30 = vld [vmem:[%s1588_s14 + $0x18] sm:$0xff] }
 0x127   :  { %v1219_v32 = vpack.c.bf16 %v424_v30, %v423_v29 }
 0x128   :  { %210 = vrot.lane.b32.xlu0 %v208_v33, %s1516_s0  ;;  %v425_v33 = vld [vmem:[%s1588_s14 + $0x20] sm:$0xff] }
 0x12c   :  { %229 = vrot.lane.b32.xlu0 %v227_v35, %s1517_s5 }
 0x19a   :  { %v211_v38 = vpop.permute.xlu0 %210 }
 0x19b   :  { %v213_v39 = vadd.f32 %v211_v38, %v198_v31  ;;  %v1225_v38 = vpack.c.bf16 %v428_v37, %v427_v36 }
 0x19d   :  { %v214_v40 = vsub.f32 0.0, %v213_v39  ;;  %v429_v39 = vld [vmem:[%s1588_s14 + $0x40] sm:$0xff] }
 0x19e   :  { %v230_v47 = vpop.permute.xlu0 %229 }
 0x19f   :  { %v215_v41 = vmul.f32 1.442695, %v214_v40  ;;  %v232_v49 = vadd.f32 %v230_v47, %v198_v31  ;;  %v430_v40 = vld [vmem:[%s1588_s14 + $0x48] sm:$0xff] }
 0x1a0   :  { %v434_v47 = vld [vmem:[%s1588_s14 + $0x68] sm:$0xff] }
 0x1a1   :  { %1312 = vpow2.f32 %v215_v41  ;;  %v1228_v41 = vpack.c.bf16 %v430_v40, %v429_v39 }
 0x1ab   :  { %v1313_v42 = vpop.eup %1312 }
 0x1ac   :  { %v217_v43 = vadd.f32 1.0, %v1313_v42  ;;  %v431_v42 = vld [vmem:[%s1588_s14 + $0x50] sm:$0xff] }
 0x1ae   :  { %1314 = vrcp.f32 %v217_v43  ;;  %v432_v43 = vld [vmem:[%s1588_s14 + $0x58] sm:$0xff] }
 0x1b8   :  { %v1725_v44 = vpop.eup %1314 }
 0x1b9   :  { %257 = vperm.xlu0 %1309, %v1725_v44   ;;  %v233_v45 = vmul.f32 %v1725_v44, %v1019_v34  ;;  %v426_v34 = vld [vmem:[%s1588_s14 + $0x28] sm:$0xff] }
 0x1ba   :  { %v1222_v35 = vpack.c.bf16 %v426_v34, %v425_v33 }
 0x1bb   :  { %235 = vrot.lane.b32.xlu1 %v233_v45, %s1516_s0  ;;  %v1231_v45 = vpack.c.bf16 %v432_v43, %v431_v42 }
 0x1bd   :  { %1311 = vset.pattern.permute.xlu0 %v1520_v46 }
 0x1bf   :  { %242 = vperm.xlu1 %1308, %v198_v31  }
 0x1c3   :  { %1310 = vset.pattern.permute.xlu1 %v1520_v46  ;;  %v433_v46 = vld [vmem:[%s1588_s14 + $0x60] sm:$0xff] }
 0x1c4   :  { %v1234_v48 = vpack.c.bf16 %v434_v47, %v433_v46 }
 0x22d   :  { %v236_v50 = vpop.permute.xlu1 %235 }
 0x22e   :  { %v1731_v52 = vadd.f32 %v236_v50, %v232_v49  ;;  %v435_v49 = vld [vmem:[%s1588_s14 + $0x70] sm:$0xff]  ;;  %v436_v50 = vld [vmem:[%s1588_s14 + $0x78] sm:$0xff]  ;;  %s1525_s14 = smov [#allocation5]  }
 0x22f   :  { %v1237_v54 = vpack.c.bf16 %v436_v50, %v435_v49 }
 0x230   :  { %272 = vperm.xlu1 %1310, %v1731_v52  }
 0x238   :  { %v258_v57 = vpop.permute.xlu0 %257 }
 0x239   :  { %v264_v58 = vmul.f32 %v263_v55, %v258_v57  ;;  %v323_v55 = vld [vmem:[%s1583_s8] sm:$0x3]  ;;  %s1919_s8 = sld [smem:[#allocation19_spill]] }
 0x23a   :  { %v328_v57 = vrot.slane %v323_v55, %v247_v56  ;;  %v608_v56 = vld [vmem:[%s1613_s11] sm:$0xff] }
 0x23b   :  { %266 = vrot.lane.b32.xlu0 %v264_v58, %s1521_s13  ;;  %v332_v58 = vrot.slane %v323_v55, %v262_v53  ;;  %1159 = vmatpush3.msra.mxu0 %v608_v56 }
 0x23c   :  { %1246 = vmatprep.subr.bf16.mxu0 %v1513_v4 }
 0x23e   :  { %v243_v60 = vpop.permute.xlu1 %242 }
 0x23f   :  { %v249_v61 = vmul.f32 %v248_v59, %v243_v60  ;;  %v514_v59 = vld [vmem:[%s1598_s24] sm:$0xff]  ;;  %v515_v60 = vld [vmem:[%s1598_s24 + $0x8] sm:$0xff] }
 0x241   :  { %251 = vrot.lane.b32.xlu1 %v249_v61, %s1521_s13 }
 0x2ad   :  { %v267_v5 = vpop.permute.xlu0 %266 }
 0x2af   :  { %v273_v0 = vpop.permute.xlu1 %272 }
 0x2b0   :  { %v279_v1 = vmul.f32 %v278_v63, %v273_v0  ;;  %v1240_v0 = vpack.c.bf16 %v515_v60, %v514_v59 }
 0x2b2   :  { %281 = vrot.lane.b32.xlu1 %v279_v1, %s1521_s13 }
 0x2b3   :  { %v252_v2 = vpop.permute.xlu1 %251 }
 0x2b4   :  { %v254_v3 = vadd.f32 %v252_v2, %v198_v31 }
 0x2b6   :  { %v269_v6 = vadd.f32 %v267_v5, %v254_v3  ;;  %v606_v3 = vld [vmem:[%s1608_s6] sm:$0xff]  ;;  %v607_v5 = vld [vmem:[%s1608_s6 + $0x8] sm:$0x3] }
 0x2b7   :  { %v1243_v51 = vpack.c.bf16 %v607_v5, %v606_v3 }
 0x324   :  { %v282_v8 = vpop.permute.xlu1 %281 }
 0x325   :  { %v1745_v9 = vadd.f32 %v282_v8, %v269_v6  ;;  %v1023_v6 = vld [vmem:[%s1593_s19] ss:$0 sm:$0xff]  ;;  %s895_s19 = sshll.u32 %s1525_s14, 4  ;;  %s896_s19 = int_to_ptr.vmem [resolvable:$true] %s895_s19 }
 0x326   :  { %s1322_s24 = scalar_lea.vmem %s896_s19, 32  ;;  %p1327_p1 = scmp.lt.s32.totalorder %s896_s19, %s896_s19 }
 0x327   :  { %v306_v10 = vmul.f32 0.5, %v1745_v9  ;;  %p1323_p0 = scmp.ne.s32.totalorder %s896_s19, %s1322_s24  ;;  %p1328_p2 = scmp.lt.s32.totalorder %s1322_s24, %s1322_s24 }
 0x329   :  { %v307_v11 = vmul.f32 1.442695, %v306_v10  ;;  %p1329_p3 = por %p1328_p2, %p1327_p1 }
 0x32b   :  { %1316 = vpow2.f32 %v307_v11  ;;  %p1330_p4 = pnand %p1329_p3, %p1323_p0 }
 0x335   :  { %v1317_v12 = vpop.eup %1316 }
 0x336   :  { %310 = vrot.lane.b32.xlu0 %v1317_v12, %s1522_s17  ;;  %v765_v12 = vld [vmem:[%s1916_s9] sm:$0xff] }
 0x337   :  { %v1247_v16 = vpack.c.bf16 %v766_v13, %v765_v12 }
 0x3a8   :  { %v311_v21 = vpop.permute.xlu0 %310 }
 0x3a9   :  { %v313_v22 = vmul.f32 %v311_v21, %v305_v20  ;;  %v767_v21 = vld [vmem:[%s1916_s9 + $0x10] sm:$0xff] }
 0x3ab   :  { %315 = vrot.lane.b32.xlu1 %v313_v22, %s1521_s13  ;;  %v768_v22 = vld [vmem:[%s1916_s9 + $0x18] sm:$0xff] }
 0x3af   :  { %301 = vrot.lane.b32.xlu1 %v1745_v9, %s1522_s17 }
 0x41d   :  { %v316_v23 = vpop.permute.xlu1 %315 }
 0x41e   :  { %v318_v24 = vadd.f32 %v316_v23, %v1745_v9  ;;  %v1250_v23 = vpack.c.bf16 %v768_v22, %v767_v21 }
 0x420   :  { %336 = vrot.lane.b32.xlu0 %v318_v24, %s1524_s25  ;;  %v769_v24 = vld [vmem:[%s1916_s9 + $0x20] sm:$0xff] }
 0x421   :  { %v302_v25 = vpop.permute.xlu1 %301 }
 0x422   :  { %304 = vst.msk [vmem:[#allocation5] sm:$0x3] %vm299_vm5, %v302_v25  ;;  %v770_v25 = vld [vmem:[%s1916_s9 + $0x28] sm:$0xff] }
 0x423   :  { %v1253_v26 = vpack.c.bf16 %v770_v25, %v769_v24 }
 0x492   :  { %v337_v31 = vpop.permute.xlu0 %336 }
 0x493   :  { %1022 = vmatmul.mubr.msk.f32.vlgmr.msra.gmra.mrb[0].mxu1 %vm338_vm6, %v337_v31 }
 0x494   :  { %1217 = vmatpush3.bf16.msra.mxu1 %v1216_v28  ;;  %1148 = vmatprep.mubr.msk.f32.mxu1 %vm1514_vm0, %v1515_v7  ;;  %v1029_v28 = vld [vmem:[%s1919_s8] ss:$0 sm:$0xff] }
 0x495   :  { %1218 = vmatprep.subr.bf16.mxu1 %v1513_v4 }
 0x498   :  { %1220 = vmatpush3.bf16.msra.mxu1 %v1219_v32 }
 0x499   :  { %1221 = vmatprep.subr.bf16.mxu1 %v1513_v4 }
 0x49c   :  { %1223 = vmatpush3.bf16.msra.mxu1 %v1222_v35 }
 0x49d   :  { %1224 = vmatprep.subr.bf16.mxu1 %v1513_v4 }
 0x4a0   :  { %1226 = vmatpush3.bf16.msra.mxu1 %v1225_v38 }
 0x4a1   :  { %1227 = vmatprep.subr.bf16.mxu1 %v1513_v4 }
 0x4a4   :  { %1229 = vmatpush3.bf16.msra.mxu1 %v1228_v41 }
 0x4a5   :  { %1230 = vmatprep.subr.bf16.mxu1 %v1513_v4 }
 0x4a8   :  { %1232 = vmatpush3.bf16.msra.mxu1 %v1231_v45 }
 0x4a9   :  { %1233 = vmatprep.subr.bf16.mxu1 %v1513_v4 }
 0x4ac   :  { %1235 = vmatpush3.bf16.msra.mxu1 %v1234_v48 }
 0x4ad   :  { %1236 = vmatprep.subr.bf16.mxu1 %v1513_v4 }
 0x4b0   :  { %1238 = vmatpush3.bf16.msra.mxu1 %v1237_v54 }
 0x4b1   :  { %1239 = vmatprep.subr.bf16.mxu1 %v1513_v4 }
 0x566   :  { %v414_v61 = vpop.f32.mrb[0].mxu1 }
 0x567   :  { %v415_v62 = vadd.f32 %v414_v61, %v328_v57  ;;  %v416_v63 = vpop.f32.mrb[1].mxu1 }
 0x568   :  { %v417_v2 = vadd.f32 %v416_v63, %v332_v58 }
 0x569   :  { %v419_v1 = vmax.f32 %v415_v62, 0.0 }
 0x56a   :  { %v420_v53 = vmax.f32 %v417_v2, 0.0 }
 0x56b   :  { %1149 = vmatmul.mubr.f32.vlgmr.msra.gmra.mrb[2].mxu1 %v419_v1 }
 0x56c   :  { %1241 = vmatpush3.bf16.msra.mxu1 %v1240_v0  ;;  %1155 = vmatprep.mubr.msk.f32.mxu1 %vm1514_vm0, %v1515_v7 }
 0x56d   :  { %1242 = vmatprep.subr.bf16.mxu1 %v1513_v4 }
 0x56f   :  { %1156 = vmatmul.mubr.msk.f32.vlgmr.msra.gmra.mrb[4].mxu1 %vm523_vm7, %v420_v53 }
 0x570   :  { %1245 = vmatpush3.bf16.msk.msra.mxu1 %vm1751_vm4, %v1243_v51  ;;  %1167 = vmatprep.mubr.msk.f32.mxu1 %vm1514_vm0, %v1515_v7 }
 0x573   :  { %1168 = vmatmul.mubr.msk.f32.vlgmr.msra.gmra.mrb[6].mxu1 %vm338_vm6, %v337_v31 }
 0x63e   :  { %v510_v8 = vpop.f32.mrb[2].mxu1 }
 0x63f   :  { %v1814_v10 = vadd.f32 %v1023_v6, %v510_v8  ;;  %v1150_v11 = vpop.f32.mrb[3].mxu1 }
 0x641   :  { %598 = vst.msk [vmem:[%s1918_s3] sm:$0x3] %vm597_vm8, %v1814_v10 }
 0x642   :  { %v593_v15 = vpop.f32.mrb[4].mxu1 }
 0x643   :  { %v594_v17 = vadd.f32 %v1024_v14, %v593_v15  ;;  %v1157_v18 = vpop.f32.mrb[5].mxu1 }
 0x645   :  { %1161 = vmatmul.mubr.msk.f32.vlgmr.msra.gmra.mrb[2].mxu0 %vm609_vm9, %v594_v17  ;;  %605 = vst.msk [vmem:[#allocation7] sm:$0x3] %vm604_vm10, %v594_v17 }
 0x646   :  { %v752_v19 = vpop.f32.mrb[6].mxu1  ;;  %1248 = vmatpush3.bf16.msra.mxu0 %v1247_v16  ;;  %1182 = vmatprep.mubr.msk.f32.mxu0 %vm1514_vm0, %v1515_v7 }
 0x647   :  { %v1169_v20 = vpop.f32.mrb[7].mxu1  ;;  %1249 = vmatprep.subr.bf16.mxu0 %v1513_v4 }
 0x64a   :  { %1251 = vmatpush3.bf16.msra.mxu0 %v1250_v23 }
 0x64b   :  { %1252 = vmatprep.subr.bf16.mxu0 %v1513_v4 }
 0x64e   :  { %1254 = vmatpush3.bf16.msra.mxu0 %v1253_v26 }
 0x718   :  { %v679_v27 = vpop.f32.mrb[2].mxu0 }
 0x719   :  { %v753_v29 = vadd.f32 %v752_v19, %v679_v27  ;;  %v1162_v30 = vpop.f32.mrb[3].mxu0 }
 0x71b   :  { %v763_v31 = vadd.f32 %v1029_v28, %v753_v29 }
 0x71d   :  { %v764_v7 = vmax.f32 %v763_v31, 0.0 }
 0x71f   :  { %1183 = vmatmul.mubr.msk.f32.vlgmr.msra.gmra.mrb[4].mxu0 %vm778_vm11, %v764_v7 }
 0x720   :  { %1333 = shalt.err (!%p1330_p4)
}
 0x721   :  { %s1920_s6 = sld [smem:[#allocation25_spill]] }
 0x727   :  { %s1334_s11 = scalar_lea.hbm %s1920_s6, 32 }
 0x728   :  { %p1335_p5 = scmp.ne.s32.totalorder %s1920_s6, %s1334_s11  ;;  %p1338_p6 = scmp.lt.u32.totalorder %s1334_s11, %s1920_s6 }
 0x72a   :  { %p1340_p7 = pnand %p1338_p6, %p1335_p5 }
 0x72c   :  { %1343 = shalt.err (!%p1340_p7)
}
 0x72d   :  { %s1921_s10 = sld [smem:[#allocation21_spill]]  ;;  %s1526_s4 = smov [#allocation7]  }
 0x72e   :  { %898 = dma.vmem_to_hbm [thread:$0]  %s896_s19, 32, %s1920_s6, [#allocation6]  }
 0x72f   :  { %s909_s21 = sshll.u32 %s1526_s4, 4  ;;  %s1527_s7 = smov 112   ;;  %s910_s21 = int_to_ptr.vmem [resolvable:$true] %s909_s21 }
 0x730   :  { %s1528_s12 = smov 120   ;;  %s1344_s15 = scalar_lea.vmem %s910_s21, 32 }
 0x731   :  { %p1345_p8 = scmp.ne.s32.totalorder %s910_s21, %s1344_s15  ;;  %p1349_p9 = scmp.lt.s32.totalorder %s910_s21, %s910_s21 }
 0x732   :  { %p1350_p10 = scmp.lt.s32.totalorder %s1344_s15, %s1344_s15 }
 0x733   :  { %v1030_v4 = vld [vmem:[%s1921_s10] ss:$0 sm:$0xff] }
 0x734   :  { %p1351_p11 = por %p1350_p10, %p1349_p9 }
 0x736   :  { %p1352_p12 = pnand %p1351_p11, %p1345_p8 }
 0x7f2   :  { %v848_v32 = vpop.f32.mrb[4].mxu0 }
 0x7f3   :  { %v849_v33 = vadd.f32 %v1030_v4, %v848_v32  ;;  %v1184_v34 = vpop.f32.mrb[5].mxu0 }
 0x7f5   :  { %v852_v35 = vsub.f32 0.0, %v849_v33  ;;  %864 = vrot.lane.b32.xlu0 %v849_v33, %s1527_s7  ;;  %860 = vrot.lane.b32.xlu1 %v849_v33, %s1528_s12 }
 0x7f6   :  { %1355 = shalt.err (!%p1352_p12)
}
 0x7f7   :  { %s1922_s16 = sld [smem:[#allocation28_spill]] }
 0x7fd   :  { %s1356_s20 = scalar_lea.hbm %s1922_s16, 32 }
 0x7fe   :  { %p1357_p13 = scmp.ne.s32.totalorder %s1922_s16, %s1356_s20  ;;  %p1360_p0 = scmp.lt.u32.totalorder %s1356_s20, %s1922_s16 }
 0x800   :  { %p1362_p1 = pnand %p1360_p0, %p1357_p13 }
 0x802   :  { %1365 = shalt.err (!%p1362_p1)
}
 0x803   :  { %912 = dma.vmem_to_hbm [thread:$0]  %s910_s21, 32, %s1922_s16, [#allocation6]   ;;  %v853_v36 = vmul.f32 1.442695, %v852_v35  ;;  %296 = vrot.lane.b32.xlu0 %v1745_v9, %s1524_s25 }
 0x804   :  { %s1529_s22 = smov 127   ;;  %s1530_s23 = smov 126  }
 0x805   :  { %1318 = vpow2.f32 %v853_v36  ;;  %287 = vrot.lane.b32.xlu1 %v1725_v44, %s1529_s22  ;;  %s1531_s27 = smov 96   ;;  %s1532_s28 = smov [#allocation8]  }
 0x806   :  { %s919_s1 = sshll.u32 %s1532_s28, 4  ;;  %s920_s1 = int_to_ptr.vmem [resolvable:$true] %s919_s1 }
 0x807   :  { %291 = vrot.lane.b32.xlu0 %v1731_v52, %s1530_s23  ;;  %s1366_s0 = scalar_lea.vmem %s920_s1, 32  ;;  %p1371_p3 = scmp.lt.s32.totalorder %s920_s1, %s920_s1 }
 0x808   :  { %p1367_p2 = scmp.ne.s32.totalorder %s920_s1, %s1366_s0  ;;  %p1372_p4 = scmp.lt.s32.totalorder %s1366_s0, %s1366_s0 }
 0x809   :  { %600 = vrot.lane.b32.xlu1 %v1814_v10, %s1531_s27 }
 0x80a   :  { %p1373_p5 = por %p1372_p4, %p1371_p3 }
 0x80c   :  { %p1374_p6 = pnand %p1373_p5, %p1367_p2 }
 0x80f   :  { %v1319_v37 = vpop.eup %1318 }
 0x810   :  { %v855_v38 = vadd.f32 1.0, %v1319_v37 }
 0x812   :  { %1320 = vrcp.f32 %v855_v38 }
 0x81c   :  { %v1321_v39 = vpop.eup %1320 }
 0x81d   :  { %858 = vst.msk [vmem:[#allocation8] sm:$0x3] %vm604_vm10, %v1321_v39 }
 0x81e   :  { %1377 = shalt.err (!%p1374_p6)
}
 0x81f   :  { %s1378_s5 = scalar_lea.hbm %s1673_s26, 32 }
 0x820   :  { %p1379_p7 = scmp.ne.s32.totalorder %s1673_s26, %s1378_s5  ;;  %p1382_p8 = scmp.lt.u32.totalorder %s1378_s5, %s1673_s26 }
 0x822   :  { %p1384_p9 = pnand %p1382_p8, %p1379_p7 }
 0x824   :  { %1387 = shalt.err (!%p1384_p9)
}
 0x825   :  { %922 = dma.vmem_to_hbm [thread:$0]  %s920_s1, 32, %s1673_s26, [#allocation9]   ;;  %v868_v44 = vsub.f32 1.0, %v1321_v39 }
 0x826   :  { %s1533_s13 = smov [#allocation11]   ;;  %s1534_s25 = smov [#allocation13]  }
 0x827   :  { %s939_s17 = sshll.u32 %s1533_s13, 4  ;;  %s949_s9 = sshll.u32 %s1534_s25, 4  ;;  %s940_s17 = int_to_ptr.vmem [resolvable:$true] %s939_s17  ;;  %s1851_s9 = int_to_ptr.vmem [resolvable:$true] %s949_s9 }
 0x828   :  { %s1535_s29 = smov [#allocation3]   ;;  %s1536_s26 = smov [#allocation10]  }
 0x829   :  { %s885_s3 = sshll.u32 %s1535_s29, 4  ;;  %s929_s8 = sshll.u32 %s1536_s26, 4  ;;  %s1855_s3 = int_to_ptr.vmem [resolvable:$true] %s885_s3  ;;  %s1870_s8 = int_to_ptr.vmem [resolvable:$true] %s929_s8 }
 0x82a   :  { %s1388_s14 = scalar_lea.vmem %s940_s17, 32  ;;  %p1393_p11 = scmp.lt.s32.totalorder %s940_s17, %s940_s17 }
 0x82b   :  { %p1389_p10 = scmp.ne.s32.totalorder %s940_s17, %s1388_s14  ;;  %p1394_p12 = scmp.lt.s32.totalorder %s1388_s14, %s1388_s14 }
 0x82d   :  { %p1395_p13 = por %p1394_p12, %p1393_p11 }
 0x82f   :  { %p1396_p0 = pnand %p1395_p13, %p1389_p10 }
 0x867   :  { %v865_v52 = vpop.permute.xlu0 %864  ;;  %v861_v9 = vpop.permute.xlu1 %860 }
 0x868   :  { %v870_v40 = vmul.f32 %v1321_v39, %v865_v52  ;;  %v869_v41 = vmul.f32 %v868_v44, %v861_v9  ;;  %863 = vst.msk [vmem:[#allocation11] sm:$0x3] %vm604_vm10, %v861_v9  ;;  %867 = vst.msk [vmem:[#allocation13] sm:$0x3] %vm604_vm10, %v865_v52 }
 0x869   :  { %1399 = shalt.err (!%p1396_p0)
}
 0x86a   :  { %s1400_s19 = scalar_lea.hbm %s1683_s30, 32 }
 0x86b   :  { %p1401_p1 = scmp.ne.s32.totalorder %s1683_s30, %s1400_s19  ;;  %p1404_p2 = scmp.lt.u32.totalorder %s1400_s19, %s1683_s30 }
 0x86d   :  { %p1406_p3 = pnand %p1404_p2, %p1401_p1 }
 0x86f   :  { %1409 = shalt.err (!%p1406_p3)
}
 0x870   :  { %942 = dma.vmem_to_hbm [thread:$0]  %s940_s17, 32, %s1683_s30, [#allocation12]   ;;  %v871_v42 = vadd.f32 %v870_v40, %v869_v41 }
 0x871   :  { %s1410_s24 = scalar_lea.vmem %s1851_s9, 32  ;;  %p1415_p5 = scmp.lt.s32.totalorder %s1851_s9, %s1851_s9 }
 0x872   :  { %p1411_p4 = scmp.ne.s32.totalorder %s1851_s9, %s1410_s24  ;;  %p1416_p6 = scmp.lt.s32.totalorder %s1410_s24, %s1410_s24 }
 0x874   :  { %p1417_p7 = por %p1416_p6, %p1415_p5 }
 0x876   :  { %p1418_p8 = pnand %p1417_p7, %p1411_p4 }
 0x878   :  { %1421 = shalt.err (!%p1418_p8)
}
 0x879   :  { %s1422_s6 = scalar_lea.hbm %s1688_s2, 32 }
 0x87a   :  { %p1423_p9 = scmp.ne.s32.totalorder %s1688_s2, %s1422_s6  ;;  %p1426_p10 = scmp.lt.u32.totalorder %s1422_s6, %s1688_s2 }
 0x87c   :  { %p1428_p11 = pnand %p1426_p10, %p1423_p9 }
 0x87e   :  { %1431 = shalt.err (!%p1428_p11)
}
 0x87f   :  { %s1923_s30 = sld [smem:[#allocation22_spill]]  ;;  %v297_v43 = vpop.permute.xlu0 %296  ;;  %v288_v45 = vpop.permute.xlu1 %287  ;;  %872 = vst.msk [vmem:[#allocation10] sm:$0x3] %vm604_vm10, %v871_v42  ;;  %s1432_s11 = scalar_lea.vmem %s1855_s3, 32 }
 0x880   :  { %952 = dma.vmem_to_hbm [thread:$0]  %s1851_s9, 32, %s1688_s2, [#allocation12]   ;;  %300 = vst.msk [vmem:[#allocation3] sm:$0x3] %vm299_vm5, %v297_v43 }
 0x881   :  { %p1433_p12 = scmp.ne.s32.totalorder %s1855_s3, %s1432_s11  ;;  %p1437_p13 = scmp.lt.s32.totalorder %s1855_s3, %s1855_s3 }
 0x882   :  { %p1438_p0 = scmp.lt.s32.totalorder %s1432_s11, %s1432_s11 }
 0x884   :  { %p1439_p1 = por %p1438_p0, %p1437_p13 }
 0x885   :  { %290 = vst.msk [vmem:[%s1923_s30] sm:$0x3] %vm285_vm1, %v288_v45 }
 0x886   :  { %p1440_p2 = pnand %p1439_p1, %p1433_p12 }
 0x888   :  { %1443 = shalt.err (!%p1440_p2)
}
 0x889   :  { %s1924_s10 = sld [smem:[#allocation24_spill]] }
 0x88f   :  { %s1444_s2 = scalar_lea.hbm %s1924_s10, 32 }
 0x890   :  { %p1445_p3 = scmp.ne.s32.totalorder %s1924_s10, %s1444_s2  ;;  %p1448_p4 = scmp.lt.u32.totalorder %s1444_s2, %s1924_s10 }
 0x892   :  { %p1450_p5 = pnand %p1448_p4, %p1445_p3 }
 0x894   :  { %1453 = shalt.err (!%p1450_p5)
}
 0x895   :  { %888 = dma.vmem_to_hbm [thread:$0]  %s1855_s3, 32, %s1924_s10, [#allocation4]  }
 0x896   :  { %s1454_s4 = scalar_lea.vmem %s1870_s8, 32  ;;  %p1459_p7 = scmp.lt.s32.totalorder %s1870_s8, %s1870_s8 }
 0x897   :  { %p1455_p6 = scmp.ne.s32.totalorder %s1870_s8, %s1454_s4  ;;  %p1460_p8 = scmp.lt.s32.totalorder %s1454_s4, %s1454_s4 }
 0x899   :  { %p1461_p9 = por %p1460_p8, %p1459_p7 }
 0x89b   :  { %p1462_p10 = pnand %p1461_p9, %p1455_p6 }
 0x89d   :  { %1465 = shalt.err (!%p1462_p10)
}
 0x89e   :  { %s1466_s21 = scalar_lea.hbm %s1678_s18, 32 }
 0x89f   :  { %p1467_p11 = scmp.ne.s32.totalorder %s1678_s18, %s1466_s21  ;;  %p1470_p12 = scmp.lt.u32.totalorder %s1466_s21, %s1678_s18 }
 0x8a1   :  { %p1472_p13 = pnand %p1470_p12, %p1467_p11 }
 0x8a3   :  { %1475 = shalt.err (!%p1472_p13)
}
 0x8a4   :  { %s1925_s7 = sld [smem:[#allocation23_spill]]  ;;  %s1926_s12 = sld [smem:[#allocation27_spill]]  ;;  %v292_v46 = vpop.permute.xlu0 %291  ;;  %v601_v47 = vpop.permute.xlu1 %600 }
 0x8a5   :  { %932 = dma.vmem_to_hbm [thread:$0]  %s1870_s8, 32, %s1678_s18, [#allocation9]  }
 0x8aa   :  { %294 = vst.msk [vmem:[%s1925_s7] sm:$0x3] %vm285_vm1, %v292_v46 }
 0x8ab   :  { %603 = vst.msk [vmem:[%s1926_s12] sm:$0x3] %vm597_vm8, %v601_v47 }
 0x8ac   :  { %1476 = dma.done.wait [#allocation4], 32  }
 0x8ad   :  { %1477 = vsyncadd [#allocation4], 4294967264 }
 0x8ae   :  { %1478 = dma.done.wait [#allocation6], 64  }
 0x8af   :  { %1479 = vsyncadd [#allocation6], 4294967232 }
 0x8b0   :  { %1480 = dma.done.wait [#allocation9], 64  }
 0x8b1   :  { %1481 = vsyncadd [#allocation9], 4294967232 }
 0x8b2   :  { %1482 = dma.done.wait [#allocation12], 64  }
 0x8b3   :  { %1483 = vsyncadd [#allocation12], 4294967232 }
 0x8b4   :  { %984 = vsyncpa [#allocation4], 1 }
 0x8b5   :  { %985 = vsyncpa [#allocation6], 1 }
 0x8b6   :  { %986 = vsyncpa [#allocation9], 1 }
 0x8b7   :  { %987 = vsyncpa [#allocation12], 1 }

// kernel: cevt_forward.2
= control target key start
LH: loop header
LB: loop body
LE: loop exit
PB: predicated region body
PF: predicated region fallthrough
CT: control target
= control target key end

     0   :  { %s5257_s17 = smov 0   ;;  %s5995_s0 = inlined_call_operand.vmem [shape: f32[2,8,4], index: 0, kind: input, shape index: {}]   ;;  %s5996_s1 = inlined_call_operand.vmem [shape: f32[4,16], index: 1, kind: input, shape index: {}]   ;;  %s5997_s2 = inlined_call_operand.vmem [shape: f32[8,16], index: 2, kind: input, shape index: {}]   ;;  %s5998_s3 = inlined_call_operand.vmem [shape: f32[16,16], index: 3, kind: input, shape index: {}]   ;;  %s5999_s4 = inlined_call_operand.vmem [shape: f32[2,16,48], index: 4, kind: input, shape index: {}]   ;;  %s6000_s5 = inlined_call_operand.vmem [shape: f32[2,1,48], index: 5, kind: input, shape index: {}]   ;;  %s6001_s6 = inlined_call_operand.vmem [shape: f32[2,16,16], index: 6, kind: input, shape index: {}]   ;;  %s6002_s7 = inlined_call_operand.vmem [shape: f32[2,6,16], index: 7, kind: input, shape index: {}]   ;;  %s6003_s8 = inlined_call_operand.vmem [shape: f32[2,16,2048], index: 8, kind: input, shape index: {}]   ;;  %s6004_s9 = inlined_call_operand.vmem [shape: f32[2,1,2048], index: 9, kind: input, shape index: {}]   ;;  %s6005_s10 = inlined_call_operand.vmem [shape: f32[2,2048,16], index: 10, kind: input, shape index: {}]   ;;  %s6006_s11 = inlined_call_operand.vmem [shape: f32[16,16], index: 11, kind: output, shape index: {}]  }
   0x1 LB: > { %s4249_s18 = sadd.s32 4294967295, %s5182_s17   ;;  %p4252_p0 = scmp.ge.s32.totalorder %s5182_s17, 1  ;;  %s5182_s17 = sphi %s5257_s17, %s21_s17  }
   0x2   : > { %p388_p1 = scmp.lt.s32.totalorder %s5182_s17, 3 }
   0x4   : > { %p389_p2 = pnand %p4252_p0, %p388_p1 }
   0x5   : > { %v482_v0 = vld [vmem:[%s5996_s1] sm:$0xf] (!%p389_p2)  ;;  %vm490_vm0 = vcmask (!%p389_p2), 1043456   ;;  %vm483_vm1 = vcmask (!%p389_p2), 31744   ;;  %v481_v2 = vld [vmem:[%s5995_s0 + $0x8] sm:$0xff] (!%p389_p2)  ;;  %p449_p3 = scmp.lt.s32.totalorder (!%p389_p2), %s4249_s18, 1 }
   0x6   : > { %392 = sbr.rel (%p389_p2) target bundleno = 4713 (0x1269), region = 64  ;;  %v480_v1 = vld [vmem:[%s5995_s0] sm:$0xff] (!%p389_p2)  ;;  %4694 = vmatprep.subr.msk.mxu0 (!%p389_p2), %vm490_vm0, %v482_v0  ;;  %p572_p4 = scmp.eq.s32.totalorder (!%p389_p2), %s4249_s18, 0  ;;  %vm589_vm3 = vcmask (!%p389_p2), 130048   ;;  %v574_v13 = vld [vmem:[#allocation2 + $0x8] sm:$0xff] (!%p389_p2)  ;;  %v5184_v16 = vmov (!%p389_p2), 0.0  }
   0x7   : > { %4696 = vmatprep.mubr.msk.f32.mxu0 (!%p389_p2), %vm483_vm1, %v480_v1  ;;  %4695 = vmatpush3.msk.msra.mxu0 (!%p389_p2), %vm490_vm0, %v482_v0  ;;  %v569_v6 = vld [vmem:[%s5997_s2] sm:$0xff] (!%p389_p2)  ;;  %vm5185_vm4 = vmmov (!%p389_p2), 0   ;;  %s5187_s19 = smov (!%p389_p2), 96   ;;  %s5188_s20 = smov (!%p389_p2), 124   ;;  %vm827_vm5 = vcmask (!%p389_p2), 64512  }
   0x8   : > { %4697 = vmatmul.mubr.msk.f32.vlgmr.msra.gmra.mrb[0].mxu0 (!%p389_p2), %vm483_vm1, %v481_v2  ;;  %v573_v11 = vld [vmem:[#allocation2] sm:$0xff] (!%p389_p2)  ;;  %4706 = vmatprep.subr.mxu0 (!%p389_p2), %v5184_v16  ;;  %s5189_s21 = smov (!%p389_p2), 108   ;;  %s5190_s22 = smov (!%p389_p2), 104  }
   0x9   : > { %4708 = vmatprep.mubr.msk.f32.mxu0 (!%p389_p2), %vm5185_vm4, %v5184_v16  ;;  %s5191_s23 = smov (!%p389_p2), 92   ;;  %s5192_s24 = smov (!%p389_p2), 120  }
   0xa   : > { %s5193_s27 = smov (!%p389_p2), 88   ;;  %s5194_s28 = smov (!%p389_p2), 100  }
   0xb   : > { %s5196_s14 = smov (!%p389_p2), 84  }
   0xd   : > { %s5278_s25 = scalar_select %p449_p3, %s4249_s18, 1 }
   0xe   : > { %s575_s30 = scalar_select %p572_p4, 1, 0 }
   0xf   : > { %s5281_s26 = sshll.u32 %s5278_s25, 4  ;;  %s456_s16 = scalar_lea.vmem %s6000_s5, %s5278_s25 }
  0x10   : > { %s453_s29 = scalar_lea.vmem %s5999_s4, %s5281_s26  ;;  %v576_v7 = vstv %s575_s30  ;;  %v4266_v17 = vld [vmem:[%s456_s16] ss:$0 sm:$0xff]  ;;  %s5186_s18 = smov 112  }
  0x11   : > { %v580_v3 = vld [vmem:[%s453_s29] sm:$0xff]  ;;  %v581_v4 = vld [vmem:[%s453_s29 + $0x8] sm:$0xff]  ;;  %vm577_vm2 = vcmp.eq.s32.totalorder %v576_v7, 1  ;;  %s5195_s29 = smov 116   ;;  %s5395_s13 = scalar_lea.vmem %s6001_s6, %s5281_s26 }
  0x12   : > { %v4813_v5 = vpack.c.bf16 %v581_v4, %v580_v3  ;;  %s4257_s15 = sshll.u32 %s5278_s25, 3  ;;  %s5639_s12 = scalar_lea.vmem %s6004_s9, %s5281_s26 }
  0x14   : > { %4814 = vmatprep.subr.bf16.mxu1 %v4813_v5 }
  0x15   : > { %4816 = vmatpush3.bf16.msra.mxu1 %v4813_v5 }
  0x16   : > { %4711 = vmatprep.subr.mxu1 %v5184_v16 }
  0xdb   : > { %v4698_v8 = vpop.f32.mrb[0].mxu0 }
  0xdc   : > { %v571_v9 = vadd.f32 %v4698_v8, %v569_v6  ;;  %v560_v10 = vpop.f32.mrb[1].mxu0 }
  0xdd   : > { %v570_v12 = vadd.f32 %v569_v6, %v560_v10 }
  0xde   : > { %v5294_v15 = vsel %vm577_vm2, %v571_v9, %v574_v13 }
  0xdf   : > { %v5290_v14 = vsel %vm577_vm2, %v570_v12, %v573_v11 }
  0xe0   : > { %4703 = vmatprep.mubr.msk.f32.mxu1 %vm589_vm3, %v5290_v14 }
  0xe1   : > { %4704 = vmatmul.mubr.msk.f32.vlgmr.msra.gmra.mrb[0].mxu1 %vm589_vm3, %v5294_v15 }
  0xe2   : > { %4713 = vmatprep.mubr.msk.f32.mxu1 %vm5185_vm4, %v5184_v16 }
 0x1b4   : > { %v4705_v18 = vpop.f32.mrb[0].mxu1 }
 0x1b5   : > { %v5308_v19 = vadd.f32 %v4705_v18, %v4266_v17  ;;  %v662_v20 = vpop.f32.mrb[1].mxu1 }
 0x1b6   : > { %v5311_v21 = vadd.f32 %v4266_v17, %v662_v20 }
 0x1b7   : > { %749 = vrot.lane.b32.xlu0 %v5308_v19, %s5186_s18 }
 0x1bb   : > { %672 = vrot.lane.b32.xlu0 %v5311_v21, %s5186_s18 }
 0x1bf   : > { %926 = vrot.lane.b32.xlu0 %v5308_v19, %s5187_s19 }
 0x1c3   : > { %1081 = vrot.lane.b32.xlu0 %v5308_v19, %s5188_s20 }
 0x229   : > { %v750_v22 = vpop.permute.xlu0 %749 }
 0x22a   : > { %4712 = vmatpush3.xpose.msk.msra.mxu1 %vm483_vm1, %v750_v22 }
 0x22b   : > { %4721 = vmatprep.subr.mxu1 %v5184_v16 }
 0x22d   : > { %4714 = vmatmul.mubr.msk.f32.vlgmr.msra.gmra.mrb[2].mxu1 %vm483_vm1, %v5308_v19  ;;  %v673_v23 = vpop.permute.xlu0 %672 }
 0x22e   : > { %4707 = vmatpush3.xpose.msk.msra.mxu0 %vm483_vm1, %v673_v23  ;;  %4723 = vmatprep.mubr.msk.f32.mxu1 %vm5185_vm4, %v5184_v16 }
 0x22f   : > { %4716 = vmatprep.subr.mxu0 %v5184_v16 }
 0x231   : > { %4709 = vmatmul.mubr.msk.f32.vlgmr.msra.gmra.mrb[2].mxu0 %vm483_vm1, %v5311_v21  ;;  %v927_v24 = vpop.permute.xlu0 %926 }
 0x232   : > { %4722 = vmatpush3.msra.mxu1 %v927_v24  ;;  %4718 = vmatprep.mubr.msk.f32.mxu0 %vm5185_vm4, %v5184_v16 }
 0x233   : > { %4731 = vmatprep.subr.mxu1 %v5184_v16 }
 0x235   : > { %v1082_v33 = vpop.permute.xlu0 %1081 }
 0x300   : > { %v821_v25 = vpop.f32.mrb[2].mxu1 }
 0x301   : > { %v826_v26 = vmul.f32 0.5, %v821_v25  ;;  %v4715_v27 = vpop.f32.mrb[3].mxu1 }
 0x303   : > { %v831_v28 = vsel %vm827_vm5, %v826_v26, -inf }
 0x304   : > { %832 = vmax.xlane.f32.xlu1 %v831_v28  ;;  %v744_v29 = vpop.f32.mrb[2].mxu0 }
 0x305   : > { %v825_v30 = vmul.f32 0.5, %v744_v29  ;;  %v4710_v31 = vpop.f32.mrb[3].mxu0  ;;  %v1335_v29 = vld [vmem:[%s5395_s13 + $0x4] sm:$0xf] }
 0x307   : > { %v828_v32 = vsel %vm827_vm5, %v825_v30, -inf }
 0x308   : > { %829 = vmax.xlane.f32.xlu0 %v828_v32 }
 0x31e   : > { %850 = vrot.lane.b32.xlu0 %v5311_v21, %s5187_s19  ;;  %s5460_s19 = scalar_lea.vmem %s6002_s7, %s4257_s15 }
 0x322   : > { %1003 = vrot.lane.b32.xlu0 %v5311_v21, %s5188_s20  ;;  %s4333_s20 = sshll.u32 %s5278_s25, 8 }
 0x391   : > { %v833_v34 = vpop.xlane.xlu1 %832 }
 0x392   : > { %v835_v35 = vsub.f32 %v826_v26, %v833_v34 }
 0x394   : > { %v838_v36 = vmul.f32 1.442695, %v835_v35 }
 0x395   : > { %v830_v37 = vpop.xlane.xlu0 %829 }
 0x396   : > { %5136 = vpow2.f32 %v838_v36  ;;  %v834_v41 = vsub.f32 %v825_v30, %v830_v37  ;;  %v1002_v30 = vld [vmem:[%s5395_s13] sm:$0xf] }
 0x398   : > { %v836_v42 = vmul.f32 1.442695, %v834_v41 }
 0x399   : > { %v851_v38 = vpop.permute.xlu0 %850 }
 0x39a   : > { %4717 = vmatpush3.msra.mxu0 %v851_v38  ;;  %5138 = vpow2.f32 %v836_v42 }
 0x39b   : > { %4726 = vmatprep.subr.mxu0 %v5184_v16 }
 0x39d   : > { %v1004_v53 = vpop.permute.xlu0 %1003 }
 0x3a0   : > { %v5137_v39 = vpop.eup %5136 }
 0x3a1   : > { %v843_v40 = vsel %vm827_vm5, %v5137_v39, 0.0 }
 0x3a2   : > { %844 = vadd.xlane.f32.xlu1 %v843_v40 }
 0x3a4   : > { %v5139_v43 = vpop.eup %5138 }
 0x3a5   : > { %v840_v44 = vsel %vm827_vm5, %v5139_v43, 0.0 }
 0x3b3   : > { %1083 = vrot.lane.b32.xlu1 %v5308_v19, %s5189_s21 }
 0x3d7   : > { %841 = vadd.xlane.f32.xlu1 %v840_v44 }
 0x3e8   : > { %1005 = vrot.lane.b32.xlu1 %v5311_v21, %s5189_s21 }
 0x3ec   : > { %1506 = vrot.lane.b32.xlu1 %v5311_v21, %s5190_s22 }
 0x42f   : > { %v845_v45 = vpop.xlane.xlu1 %844 }
 0x430   : > { %5140 = vrcp.f32 %v845_v45 }
 0x433   : > { %v1084_v48 = vpop.permute.xlu1 %1083 }
 0x43a   : > { %v5141_v46 = vpop.eup %5140 }
 0x43b   : > { %v849_v47 = vmul.f32 %v5141_v46, %v5137_v39 }
 0x43d   : > { %4724 = vmatmul.mubr.msk.f32.vlgmr.msra.gmra.mrb[4].mxu1 %vm827_vm5, %v849_v47 }
 0x43e   : > { %4732 = vmatpush3.xpose.msk.msra.mxu1 %vm483_vm1, %v1084_v48  ;;  %4733 = vmatprep.mubr.msk.f32.mxu1 %vm5185_vm4, %v5184_v16 }
 0x43f   : > { %4741 = vmatprep.subr.mxu1 %v5184_v16 }
 0x441   : > { %4734 = vmatmul.mubr.msk.f32.vlgmr.msra.gmra.mrb[6].mxu1 %vm483_vm1, %v1082_v33 }
 0x442   : > { %4743 = vmatprep.mubr.msk.f32.mxu1 %vm5185_vm4, %v5184_v16 }
 0x464   : > { %v842_v49 = vpop.xlane.xlu1 %841 }
 0x465   : > { %5142 = vrcp.f32 %v842_v49 }
 0x468   : > { %v1006_v52 = vpop.permute.xlu1 %1005 }
 0x46c   : > { %v1507_v20 = vpop.permute.xlu1 %1506 }
 0x46f   : > { %v5143_v50 = vpop.eup %5142 }
 0x470   : > { %v847_v51 = vmul.f32 %v5143_v50, %v5139_v43 }
 0x472   : > { %4719 = vmatmul.mubr.msk.f32.vlgmr.msra.gmra.mrb[4].mxu0 %vm827_vm5, %v847_v51 }
 0x473   : > { %4727 = vmatpush3.xpose.msk.msra.mxu0 %vm483_vm1, %v1006_v52  ;;  %4728 = vmatprep.mubr.msk.f32.mxu0 %vm5185_vm4, %v5184_v16 }
 0x474   : > { %4736 = vmatprep.subr.mxu0 %v5184_v16 }
 0x476   : > { %4729 = vmatmul.mubr.msk.f32.vlgmr.msra.gmra.mrb[6].mxu0 %vm483_vm1, %v1004_v53 }
 0x477   : > { %4738 = vmatprep.mubr.msk.f32.mxu0 %vm5185_vm4, %v5184_v16 }
 0x510   : > { %v5356_v54 = vpop.f32.mrb[4].mxu1 }
 0x511   : > { %v4725_v55 = vpop.f32.mrb[5].mxu1 }
 0x514   : > { %v1155_v56 = vpop.f32.mrb[6].mxu1 }
 0x515   : > { %v1160_v57 = vmul.f32 0.5, %v1155_v56  ;;  %v4735_v58 = vpop.f32.mrb[7].mxu1 }
 0x517   : > { %v1164_v59 = vsel %vm827_vm5, %v1160_v57, -inf }
 0x518   : > { %1165 = vmax.xlane.f32.xlu0 %v1164_v59 }
 0x52e   : > { %1259 = vrot.lane.b32.xlu0 %v5308_v19, %s5191_s23 }
 0x532   : > { %1504 = vrot.lane.b32.xlu0 %v5311_v21, %s5192_s24 }
 0x536   : > { %1584 = vrot.lane.b32.xlu0 %v5308_v19, %s5190_s22 }
 0x545   : > { %v5363_v60 = vpop.f32.mrb[4].mxu0 }
 0x546   : > { %v4720_v61 = vpop.f32.mrb[5].mxu0 }
 0x549   : > { %v1077_v62 = vpop.f32.mrb[6].mxu0 }
 0x54a   : > { %v4730_v63 = vpop.f32.mrb[7].mxu0  ;;  %v1159_v0 = vmul.f32 0.5, %v1077_v62 }
 0x54c   : > { %v1161_v1 = vsel %vm827_vm5, %v1159_v0, -inf }
 0x555   : > { %1162 = vmax.xlane.f32.xlu0 %v1161_v1 }
 0x56b   : > { %1183 = vrot.lane.b32.xlu0 %v5311_v21, %s5191_s23  ;;  %s5473_s23 = scalar_lea.vmem %s6003_s8, %s4333_s20 }
 0x56f   : > { %1684 = vrot.lane.b32.xlu0 %v5311_v21, %s5193_s27 }
 0x573   : > { %1925 = vrot.lane.b32.xlu0 %v5311_v21, %s5194_s28 }
 0x577   : > { %2003 = vrot.lane.b32.xlu0 %v5308_v19, %s5194_s28 }
 0x57b   : > { %1923 = vrot.lane.b32.xlu0 %v5311_v21, %s5195_s29 }
 0x57f   : > { %2001 = vrot.lane.b32.xlu0 %v5308_v19, %s5195_s29 }
 0x5a5   : > { %v1166_v2 = vpop.xlane.xlu0 %1165 }
 0x5a6   : > { %v1168_v3 = vsub.f32 %v1160_v57, %v1166_v2 }
 0x5a8   : > { %v1171_v4 = vmul.f32 1.442695, %v1168_v3 }
 0x5a9   : > { %v1260_v5 = vpop.permute.xlu0 %1259 }
 0x5aa   : > { %5144 = vpow2.f32 %v1171_v4  ;;  %4742 = vmatpush3.msra.mxu1 %v1260_v5 }
 0x5ab   : > { %4756 = vmatprep.subr.mxu1 %v5184_v16 }
 0x5ad   : > { %v1505_v8 = vpop.permute.xlu0 %1504 }
 0x5b1   : > { %v1585_v9 = vpop.permute.xlu0 %1584 }
 0x5b4   : > { %v5145_v6 = vpop.eup %5144 }
 0x5b5   : > { %v1176_v7 = vsel %vm827_vm5, %v5145_v6, 0.0 }
 0x5b6   : > { %1177 = vadd.xlane.f32.xlu1 %v1176_v7 }
 0x5c7   : > { %1582 = vrot.lane.b32.xlu1 %v5308_v19, %s5192_s24  ;;  %s4334_s24 = sshll.u32 %s5278_s25, 11 }
 0x5c8   : > { %s5525_s29 = scalar_lea.vmem %s6005_s10, %s4334_s24 }
 0x5e2   : > { %v1163_v10 = vpop.xlane.xlu0 %1162 }
 0x5e3   : > { %v1167_v11 = vsub.f32 %v1159_v0, %v1163_v10 }
 0x5e5   : > { %v1169_v12 = vmul.f32 1.442695, %v1167_v11 }
 0x5e6   : > { %v1184_v13 = vpop.permute.xlu0 %1183 }
 0x5e7   : > { %5146 = vpow2.f32 %v1169_v12  ;;  %4737 = vmatpush3.msra.mxu0 %v1184_v13 }
 0x5e8   : > { %4746 = vmatprep.subr.msk.mxu0 %vm490_vm0, %v1335_v29 }
 0x5ea   : > { %v1685_v43 = vpop.permute.xlu0 %1684 }
 0x5ee   : > { %v1926_v58 = vpop.permute.xlu0 %1925 }
 0x5f1   : > { %v5147_v17 = vpop.eup %5146 }
 0x5f2   : > { %v1173_v18 = vsel %vm827_vm5, %v5147_v17, 0.0  ;;  %v2004_v62 = vpop.permute.xlu0 %2003 }
 0x5f3   : > { %1174 = vadd.xlane.f32.xlu1 %v1173_v18 }
 0x5f6   : > { %v1924_v0 = vpop.permute.xlu0 %1923 }
 0x5fa   : > { %v2002_v5 = vpop.permute.xlu0 %2001 }
 0x643   : > { %v1178_v22 = vpop.xlane.xlu1 %1177 }
 0x644   : > { %5148 = vrcp.f32 %v1178_v22 }
 0x647   : > { %v1583_v25 = vpop.permute.xlu1 %1582 }
 0x64e   : > { %v5149_v23 = vpop.eup %5148 }
 0x64f   : > { %v1182_v24 = vmul.f32 %v5149_v23, %v5145_v6 }
 0x651   : > { %4744 = vmatmul.mubr.msk.f32.vlgmr.msra.gmra.mrb[8].mxu1 %vm827_vm5, %v1182_v24 }
 0x652   : > { %4757 = vmatpush3.xpose.msk.msra.mxu1 %vm483_vm1, %v1507_v20  ;;  %4758 = vmatprep.mubr.msk.f32.mxu1 %vm5185_vm4, %v5184_v16 }
 0x653   : > { %4761 = vmatprep.subr.mxu1 %v5184_v16 }
 0x655   : > { %4759 = vmatmul.mubr.msk.f32.vlgmr.msra.gmra.mrb[10].mxu1 %vm483_vm1, %v1505_v8 }
 0x656   : > { %4762 = vmatpush3.xpose.msk.msra.mxu1 %vm483_vm1, %v1585_v9  ;;  %4763 = vmatprep.mubr.msk.f32.mxu1 %vm5185_vm4, %v5184_v16 }
 0x657   : > { %4771 = vmatprep.subr.mxu1 %v5184_v16 }
 0x659   : > { %4764 = vmatmul.mubr.msk.f32.vlgmr.msra.gmra.mrb[12].mxu1 %vm483_vm1, %v1583_v25 }
 0x65a   : > { %4773 = vmatprep.mubr.msk.f32.mxu1 %vm5185_vm4, %v5184_v16 }
 0x680   : > { %v1175_v26 = vpop.xlane.xlu1 %1174 }
 0x681   : > { %5150 = vrcp.f32 %v1175_v26 }
 0x68b   : > { %v5151_v27 = vpop.eup %5150 }
 0x68c   : > { %v1180_v28 = vmul.f32 %v5151_v27, %v5147_v17 }
 0x68e   : > { %4739 = vmatmul.mubr.msk.f32.vlgmr.msra.gmra.mrb[8].mxu0 %vm827_vm5, %v1180_v28 }
 0x68f   : > { %4747 = vmatpush3.msk.msra.mxu0 %vm490_vm0, %v1335_v29 }
 0x690   : > { %4751 = vmatprep.subr.msk.mxu0 %vm490_vm0, %v1002_v30 }
 0x724   : > { %v1331_v31 = vpop.f32.mrb[8].mxu1 }
 0x725   : > { %v4745_v32 = vpop.f32.mrb[9].mxu1 }
 0x728   : > { %v1578_v33 = vpop.f32.mrb[10].mxu1 }
 0x729   : > { %v1660_v34 = vmul.f32 0.5, %v1578_v33  ;;  %v4760_v35 = vpop.f32.mrb[11].mxu1  ;;  %v2255_v33 = vld [vmem:[%s5395_s13 + $0xc] sm:$0xf] }
 0x72b   : > { %v1662_v36 = vsel %vm827_vm5, %v1660_v34, -inf }
 0x72c   : > { %v1656_v37 = vpop.f32.mrb[12].mxu1  ;;  %1663 = vmax.xlane.f32.xlu1 %v1662_v36 }
 0x72d   : > { %v1661_v38 = vmul.f32 0.5, %v1656_v37  ;;  %v4765_v39 = vpop.f32.mrb[13].mxu1 }
 0x72f   : > { %v1665_v40 = vsel %vm827_vm5, %v1661_v38, -inf }
 0x730   : > { %1666 = vmax.xlane.f32.xlu1 %v1665_v40  ;;  %v4305_v40 = vld [vmem:[%s5460_s19] ss:$0 sm:$0xff] }
 0x761   : > { %v1255_v41 = vpop.f32.mrb[8].mxu0 }
 0x762   : > { %v4740_v42 = vpop.f32.mrb[9].mxu0  ;;  %4748 = vmatprep.mubr.msk.f32.mxu0 %vm483_vm1, %v1255_v41 }
 0x763   : > { %4749 = vmatmul.mubr.msk.f32.vlgmr.msra.gmra.mrb[10].mxu0 %vm483_vm1, %v1331_v31 }
 0x764   : > { %4753 = vmatprep.mubr.msk.f32.mxu0 %vm483_vm1, %v5363_v60  ;;  %4752 = vmatpush3.msk.msra.mxu0 %vm490_vm0, %v1002_v30 }
 0x765   : > { %4766 = vmatprep.subr.mxu0 %v5184_v16 }
 0x76b   : > { %4754 = vmatmul.mubr.msk.f32.vlgmr.msra.gmra.mrb[10].mxu0 %vm483_vm1, %v5356_v54  ;;  %v1836_v54 = vld [vmem:[%s5395_s13 + $0x8] sm:$0xf] }
 0x76c   : > { %4767 = vmatpush3.msra.mxu0 %v1685_v43  ;;  %4768 = vmatprep.mubr.msk.f32.mxu0 %vm5185_vm4, %v5184_v16 }
 0x76d   : > { %4776 = vmatprep.subr.msk.mxu0 %vm490_vm0, %v1836_v54 }
 0x7b9   : > { %v1664_v44 = vpop.xlane.xlu1 %1663 }
 0x7ba   : > { %v1668_v45 = vsub.f32 %v1660_v34, %v1664_v44 }
 0x7bc   : > { %v1670_v46 = vmul.f32 1.442695, %v1668_v45 }
 0x7bd   : > { %v1667_v47 = vpop.xlane.xlu1 %1666 }
 0x7be   : > { %5152 = vpow2.f32 %v1670_v46  ;;  %v1669_v48 = vsub.f32 %v1661_v38, %v1667_v47 }
 0x7c0   : > { %v1672_v49 = vmul.f32 1.442695, %v1669_v48 }
 0x7c2   : > { %5154 = vpow2.f32 %v1672_v49 }
 0x7c8   : > { %v5153_v50 = vpop.eup %5152 }
 0x7c9   : > { %v1674_v51 = vsel %vm827_vm5, %v5153_v50, 0.0 }
 0x7ca   : > { %1675 = vadd.xlane.f32.xlu1 %v1674_v51 }
 0x7cc   : > { %v5155_v52 = vpop.eup %5154 }
 0x7cd   : > { %v1677_v53 = vsel %vm827_vm5, %v5155_v52, 0.0 }
 0x7ce   : > { %1678 = vadd.xlane.f32.xlu1 %v1677_v53 }
 0x7df   : > { %1760 = vrot.lane.b32.xlu1 %v5308_v19, %s5193_s27 }
 0x857   : > { %v1676_v55 = vpop.xlane.xlu1 %1675 }
 0x858   : > { %5156 = vrcp.f32 %v1676_v55 }
 0x85b   : > { %v1679_v56 = vpop.xlane.xlu1 %1678 }
 0x85c   : > { %5158 = vrcp.f32 %v1679_v56 }
 0x85f   : > { %v1761_v57 = vpop.permute.xlu1 %1760 }
 0x860   : > { %4772 = vmatpush3.msra.mxu1 %v1761_v57 }
 0x861   : > { %4781 = vmatprep.subr.mxu1 %v5184_v16 }
 0x862   : > { %v5157_v59 = vpop.eup %5156 }
 0x863   : > { %v1681_v60 = vmul.f32 %v5157_v59, %v5153_v50  ;;  %v2395_v59 = vld [vmem:[%s5473_s23 + $0x18] sm:$0xff] }
 0x865   : > { %4769 = vmatmul.mubr.msk.f32.vlgmr.msra.gmra.mrb[12].mxu0 %vm827_vm5, %v1681_v60 }
 0x866   : > { %v5159_v61 = vpop.eup %5158  ;;  %4777 = vmatpush3.msk.msra.mxu0 %vm490_vm0, %v1836_v54 }
 0x867   : > { %v1683_v63 = vmul.f32 %v5159_v61, %v5155_v52  ;;  %4786 = vmatprep.subr.mxu0 %v5184_v16  ;;  %v2411_v61 = vld [vmem:[%s5473_s23 + $0x98] sm:$0xff] }
 0x869   : > { %4774 = vmatmul.mubr.msk.f32.vlgmr.msra.gmra.mrb[14].mxu1 %vm827_vm5, %v1683_v63  ;;  %v2408_v63 = vld [vmem:[%s5473_s23 + $0x80] sm:$0xff] }
 0x86a   : > { %4782 = vmatpush3.xpose.msk.msra.mxu1 %vm483_vm1, %v1926_v58  ;;  %4783 = vmatprep.mubr.msk.f32.mxu1 %vm5185_vm4, %v5184_v16  ;;  %v2409_v58 = vld [vmem:[%s5473_s23 + $0x88] sm:$0xff] }
 0x86b   : > { %4791 = vmatprep.subr.mxu1 %v5184_v16 }
 0x86d   : > { %4784 = vmatmul.mubr.msk.f32.vlgmr.msra.gmra.mrb[16].mxu1 %vm483_vm1, %v1924_v0  ;;  %v4821_v0 = vpack.c.bf16 %v2411_v61, %v2395_v59  ;;  %v3211_v59 = vld [vmem:[%s5525_s29 + $0x188] sm:$0xff] }
 0x86e   : > { %4793 = vmatprep.mubr.msk.f32.mxu1 %vm5185_vm4, %v5184_v16 }
 0x938   : > { %v1756_v1 = vpop.f32.mrb[12].mxu0 }
 0x939   : > { %v4770_v2 = vpop.f32.mrb[13].mxu0  ;;  %4778 = vmatprep.mubr.msk.f32.mxu0 %vm483_vm1, %v1756_v1 }
 0x93a   : > { %v2394_v2 = vld [vmem:[%s5473_s23 + $0x10] sm:$0xff] }
 0x93c   : > { %v1832_v3 = vpop.f32.mrb[14].mxu1 }
 0x93d   : > { %v4775_v4 = vpop.f32.mrb[15].mxu1  ;;  %4779 = vmatmul.mubr.msk.f32.vlgmr.msra.gmra.mrb[10].mxu0 %vm483_vm1, %v1832_v3  ;;  %v2410_v3 = vld [vmem:[%s5473_s23 + $0x90] sm:$0xff] }
 0x93e   : > { %4787 = vmatpush3.xpose.msk.msra.mxu0 %vm483_vm1, %v2004_v62  ;;  %4788 = vmatprep.mubr.msk.f32.mxu0 %vm5185_vm4, %v5184_v16  ;;  %v2392_v62 = vld [vmem:[%s5473_s23] sm:$0xff]  ;;  %v4823_v4 = vpack.c.bf16 %v2410_v3, %v2394_v2  ;;  %v3195_v3 = vld [vmem:[%s5525_s29 + $0x108] sm:$0xff] }
 0x93f   : > { %4796 = vmatprep.subr.mxu0 %v5184_v16  ;;  %v4819_v1 = vpack.c.bf16 %v2408_v63, %v2392_v62  ;;  %v3194_v2 = vld [vmem:[%s5525_s29 + $0x100] sm:$0xff] }
 0x940   : > { %v1997_v6 = vpop.f32.mrb[16].mxu1 }
 0x941   : > { %v2079_v7 = vmul.f32 0.5, %v1997_v6  ;;  %v4785_v8 = vpop.f32.mrb[17].mxu1  ;;  %4789 = vmatmul.mubr.msk.f32.vlgmr.msra.gmra.mrb[14].mxu0 %vm483_vm1, %v2002_v5  ;;  %v2397_v5 = vld [vmem:[%s5473_s23 + $0x28] sm:$0xff] }
 0x942   : > { %4798 = vmatprep.mubr.msk.f32.mxu0 %vm5185_vm4, %v5184_v16  ;;  %v2413_v6 = vld [vmem:[%s5473_s23 + $0xa8] sm:$0xff] }
 0x943   : > { %v2081_v9 = vsel %vm827_vm5, %v2079_v7, -inf  ;;  %v4825_v8 = vpack.c.bf16 %v2413_v6, %v2397_v5  ;;  %v3181_v5 = vld [vmem:[%s5525_s29 + $0x98] sm:$0xff]  ;;  %v3212_v6 = vld [vmem:[%s5525_s29 + $0x190] sm:$0xff] }
 0x944   : > { %2082 = vmax.xlane.f32.xlu1 %v2081_v9  ;;  %v2415_v9 = vld [vmem:[%s5473_s23 + $0xb8] sm:$0xff] }
 0x9d1   : > { %v2083_v10 = vpop.xlane.xlu1 %2082 }
 0x9d2   : > { %v2087_v11 = vsub.f32 %v2079_v7, %v2083_v10  ;;  %v2399_v7 = vld [vmem:[%s5473_s23 + $0x38] sm:$0xff] }
 0x9d3   : > { %v4829_v10 = vpack.c.bf16 %v2415_v9, %v2399_v7  ;;  %v3213_v7 = vld [vmem:[%s5525_s29 + $0x198] sm:$0xff]  ;;  %v4883_v9 = vpack.c.bf16 %v3195_v3, %v3194_v2  ;;  %v3190_v2 = vld [vmem:[%s5525_s29 + $0xe0] sm:$0xff]  ;;  %v3191_v3 = vld [vmem:[%s5525_s29 + $0xe8] sm:$0xff] }
 0x9d4   : > { %v2089_v12 = vmul.f32 1.442695, %v2087_v11 }
 0x9d6   : > { %5160 = vpow2.f32 %v2089_v12 }
 0x9e0   : > { %v5161_v22 = vpop.eup %5160 }
 0x9e1   : > { %v2093_v23 = vsel %vm827_vm5, %v5161_v22, 0.0 }
 0xa14   : > { %v2075_v13 = vpop.f32.mrb[14].mxu0 }
 0xa15   : > { %v2080_v17 = vmul.f32 0.5, %v2075_v13  ;;  %v4790_v18 = vpop.f32.mrb[15].mxu0 }
 0xa17   : > { %v2084_v20 = vsel %vm827_vm5, %v2080_v17, -inf }
 0xa18   : > { %2085 = vmax.xlane.f32.xlu0 %v2084_v20 }
 0xa1c   : > { %2094 = vadd.xlane.f32.xlu0 %v2093_v23 }
 0xa32   : > { %2103 = vrot.lane.b32.xlu0 %v5311_v21, %s5196_s14 }
 0xaa5   : > { %v2086_v24 = vpop.xlane.xlu0 %2085 }
 0xaa6   : > { %v2088_v25 = vsub.f32 %v2080_v17, %v2086_v24  ;;  %v4306_v24 = vld [vmem:[%s5460_s19 + $0x1] ss:$0 sm:$0xff] }
 0xaa8   : > { %v2091_v26 = vmul.f32 1.442695, %v2088_v25  ;;  %v4307_v25 = vld [vmem:[%s5460_s19 + $0x2] ss:$0 sm:$0xff] }
 0xaa9   : > { %v2095_v27 = vpop.xlane.xlu0 %2094 }
 0xaaa   : > { %5162 = vpow2.f32 %v2091_v26 }
 0xaab   : > { %5164 = vrcp.f32 %v2095_v27 }
 0xaad   : > { %v2104_v28 = vpop.permute.xlu0 %2103 }
 0xaae   : > { %4792 = vmatpush3.msra.mxu1 %v2104_v28  ;;  %v2396_v28 = vld [vmem:[%s5473_s23 + $0x20] sm:$0xff] }
 0xab4   : > { %v5163_v29 = vpop.eup %5162 }
 0xab5   : > { %v5165_v30 = vpop.eup %5164  ;;  %v2096_v31 = vsel %vm827_vm5, %v5163_v29, 0.0 }
 0xab6   : > { %v2100_v32 = vmul.f32 %v5165_v30, %v5161_v22  ;;  %2097 = vadd.xlane.f32.xlu1 %v2096_v31  ;;  %v2398_v30 = vld [vmem:[%s5473_s23 + $0x30] sm:$0xff] }
 0xab7   : > { %v2414_v31 = vld [vmem:[%s5473_s23 + $0xb0] sm:$0xff] }
 0xab8   : > { %4794 = vmatmul.mubr.msk.f32.vlgmr.msra.gmra.mrb[18].mxu1 %vm827_vm5, %v2100_v32  ;;  %v2401_v32 = vld [vmem:[%s5473_s23 + $0x48] sm:$0xff] }
 0xab9   : > { %2578 = vmatprep.mubr.f32.mxu1 %v5184_v16 }
 0xac7   : > { %2179 = vrot.lane.b32.xlu1 %v5308_v19, %s5196_s14 }
 0xb43   : > { %v2098_v21 = vpop.xlane.xlu1 %2097 }
 0xb44   : > { %5166 = vrcp.f32 %v2098_v21 }
 0xb47   : > { %v2180_v34 = vpop.permute.xlu1 %2179 }
 0xb48   : > { %4797 = vmatpush3.msra.mxu0 %v2180_v34  ;;  %v2403_v34 = vld [vmem:[%s5473_s23 + $0x58] sm:$0xff] }
 0xb49   : > { %4801 = vmatprep.subr.msk.mxu0 %vm490_vm0, %v2255_v33 }
 0xb4e   : > { %v5167_v35 = vpop.eup %5166 }
 0xb4f   : > { %v2102_v36 = vmul.f32 %v5167_v35, %v5163_v29  ;;  %v2412_v29 = vld [vmem:[%s5473_s23 + $0xa0] sm:$0xff]  ;;  %v2419_v35 = vld [vmem:[%s5473_s23 + $0xd8] sm:$0xff] }
 0xb51   : > { %4799 = vmatmul.mubr.msk.f32.vlgmr.msra.gmra.mrb[16].mxu0 %vm827_vm5, %v2102_v36 }
 0xb52   : > { %4802 = vmatpush3.msk.msra.mxu0 %vm490_vm0, %v2255_v33  ;;  %v2417_v33 = vld [vmem:[%s5473_s23 + $0xc8] sm:$0xff] }
 0xb53   : > { %4822 = vmatprep.subr.bf16.mxu0 %v4821_v0  ;;  %v3162_v0 = vld [vmem:[%s5525_s29] sm:$0xff] }
 0xb8b   : > { %v2175_v37 = vpop.f32.mrb[18].mxu1 }
 0xb8c   : > { %v4795_v38 = vpop.f32.mrb[19].mxu1  ;;  %4803 = vmatprep.mubr.msk.f32.mxu0 %vm483_vm1, %v2175_v37 }
 0xb8d   : > { %v4827_v38 = vpack.c.bf16 %v2412_v29, %v2396_v28  ;;  %v3167_v28 = vld [vmem:[%s5525_s29 + $0x28] sm:$0xff] }
 0xc24   : > { %v2251_v39 = vpop.f32.mrb[16].mxu0 }
 0xc25   : > { %v4800_v19 = vpop.f32.mrb[17].mxu0  ;;  %4804 = vmatmul.mubr.msk.f32.vlgmr.msra.gmra.mrb[10].mxu0 %vm483_vm1, %v2251_v39  ;;  %v4831_v39 = vpack.c.bf16 %v2414_v31, %v2398_v30  ;;  %v3198_v31 = vld [vmem:[%s5525_s29 + $0x120] sm:$0xff] }
 0xc26   : > { %2655 = vmatprep.mubr.f32.mxu0 %v5184_v16  ;;  %4824 = vmatpush1.bf16.msra.mxu0 %v4823_v4  ;;  %v4833_v19 = vpack.c.bf16 %v2417_v33, %v2401_v32  ;;  %v3180_v4 = vld [vmem:[%s5525_s29 + $0x90] sm:$0xff]  ;;  %v3199_v32 = vld [vmem:[%s5525_s29 + $0x128] sm:$0xff] }
 0xc27   : > { %4830 = vmatprep.subr.bf16.mxu0 %v4829_v10  ;;  %v3164_v10 = vld [vmem:[%s5525_s29 + $0x10] sm:$0xff] }
 0xc28   : > { %v3216_v33 = vld [vmem:[%s5525_s29 + $0x1b0] sm:$0xff] }
 0xcf8   : > { %v4805_v41 = vpop.f32.mrb[10].mxu0 }
 0xcf9   : > { %v2348_v42 = vadd.f32 %v4805_v41, %v4305_v40  ;;  %v2331_v43 = vpop.f32.mrb[11].mxu0 }
 0xcfa   : > { %v2347_v44 = vadd.f32 %v4305_v40, %v2331_v43  ;;  %v4837_v40 = vpack.c.bf16 %v2419_v35, %v2403_v34  ;;  %v2416_v43 = vld [vmem:[%s5473_s23 + $0xc0] sm:$0xff]  ;;  %v3217_v34 = vld [vmem:[%s5525_s29 + $0x1b8] sm:$0xff] }
 0xcfb   : > { %v2350_v45 = vadd.f32 %v2348_v42, %v5294_v15  ;;  %v2393_v15 = vld [vmem:[%s5473_s23 + $0x8] sm:$0xff]  ;;  %v2400_v42 = vld [vmem:[%s5473_s23 + $0x40] sm:$0xff] }
 0xcfc   : > { %v2349_v46 = vadd.f32 %v2347_v44, %v5290_v14  ;;  %v4817_v60 = vpack.c.bf16 %v2409_v58, %v2393_v15  ;;  %v2402_v44 = vld [vmem:[%s5473_s23 + $0x50] sm:$0xff]  ;;  %v3179_v15 = vld [vmem:[%s5525_s29 + $0x88] sm:$0xff]  ;;  %v3210_v58 = vld [vmem:[%s5525_s29 + $0x180] sm:$0xff] }
 0xcfd   : > { %v2354_v47 = vsel %vm589_vm3, %v2350_v45, 0.0  ;;  %v4881_v63 = vpack.c.bf16 %v3211_v59, %v3210_v58 }
 0xcfe   : > { %2355 = vadd.xlane.f32.xlu0 %v2354_v47  ;;  %v2351_v48 = vsel %vm589_vm3, %v2349_v46, 0.0  ;;  %4818 = vmatprep.subr.bf16.mxu1 %v4817_v60  ;;  %v2421_v47 = vld [vmem:[%s5473_s23 + $0xe8] sm:$0xff] }
 0xcff   : > { %2352 = vadd.xlane.f32.xlu1 %v2351_v48  ;;  %4820 = vmatpush1.bf16.msra.mxu1 %v4819_v1  ;;  %v2407_v48 = vld [vmem:[%s5473_s23 + $0x78] sm:$0xff]  ;;  %v3163_v1 = vld [vmem:[%s5525_s29 + $0x8] sm:$0xff] }
 0xd00   : > { %4826 = vmatprep.subr.bf16.mxu1 %v4825_v8  ;;  %v4851_v8 = vpack.c.bf16 %v3163_v1, %v3162_v0  ;;  %v3204_v0 = vld [vmem:[%s5525_s29 + $0x150] sm:$0xff]  ;;  %v3205_v1 = vld [vmem:[%s5525_s29 + $0x158] sm:$0xff] }
 0xd8b   : > { %v2356_v49 = vpop.xlane.xlu0 %2355 }
 0xd8c   : > { %v2359_v50 = vmul.f32 0.0625, %v2356_v49  ;;  %v2353_v51 = vpop.xlane.xlu1 %2352  ;;  %v2423_v49 = vld [vmem:[%s5473_s23 + $0xf8] sm:$0xff] }
 0xd8d   : > { %v2358_v52 = vmul.f32 0.0625, %v2353_v51 }
 0xd8e   : > { %v2361_v53 = vsub.f32 %v2350_v45, %v2359_v50  ;;  %v2418_v45 = vld [vmem:[%s5473_s23 + $0xd0] sm:$0xff]  ;;  %v4835_v50 = vpack.c.bf16 %v2416_v43, %v2400_v42  ;;  %v3201_v43 = vld [vmem:[%s5525_s29 + $0x138] sm:$0xff] }
 0xd8f   : > { %v2360_v54 = vsub.f32 %v2349_v46, %v2358_v52  ;;  %v2405_v46 = vld [vmem:[%s5473_s23 + $0x68] sm:$0xff]  ;;  %v4839_v51 = vpack.c.bf16 %v2418_v45, %v2402_v44  ;;  %v3200_v42 = vld [vmem:[%s5525_s29 + $0x130] sm:$0xff]  ;;  %v3186_v44 = vld [vmem:[%s5525_s29 + $0xc0] sm:$0xff] }
 0xd90   : > { %v2363_v55 = vmul.f32 %v2361_v53, %v2361_v53  ;;  %v4841_v52 = vpack.c.bf16 %v2421_v47, %v2405_v46  ;;  %v3187_v45 = vld [vmem:[%s5525_s29 + $0xc8] sm:$0xff]  ;;  %v3218_v46 = vld [vmem:[%s5525_s29 + $0x1c0] sm:$0xff] }
 0xd91   : > { %v2362_v56 = vmul.f32 %v2360_v54, %v2360_v54  ;;  %v3219_v47 = vld [vmem:[%s5525_s29 + $0x1c8] sm:$0xff] }
 0xd92   : > { %v2367_v57 = vsel %vm589_vm3, %v2363_v55, 0.0  ;;  %v2420_v55 = vld [vmem:[%s5473_s23 + $0xe0] sm:$0xff] }
 0xd93   : > { %2368 = vadd.xlane.f32.xlu1 %v2367_v57  ;;  %v2364_v14 = vsel %vm589_vm3, %v2362_v56, 0.0  ;;  %v2406_v56 = vld [vmem:[%s5473_s23 + $0x70] sm:$0xff] }
 0xd94   : > { %2365 = vadd.xlane.f32.xlu0 %v2364_v14  ;;  %v2422_v57 = vld [vmem:[%s5473_s23 + $0xf0] sm:$0xff]  ;;  %v3178_v14 = vld [vmem:[%s5525_s29 + $0x80] sm:$0xff] }
 0xd95   : > { %v4847_v61 = vpack.c.bf16 %v2422_v57, %v2406_v56  ;;  %v4849_v62 = vpack.c.bf16 %v3179_v15, %v3178_v14  ;;  %v3188_v56 = vld [vmem:[%s5525_s29 + $0xd0] sm:$0xff]  ;;  %v3189_v57 = vld [vmem:[%s5525_s29 + $0xd8] sm:$0xff] }
 0xd96   : > { %v3220_v14 = vld [vmem:[%s5525_s29 + $0x1d0] sm:$0xff]  ;;  %v3221_v15 = vld [vmem:[%s5525_s29 + $0x1d8] sm:$0xff] }
 0xe20   : > { %v2369_v11 = vpop.xlane.xlu1 %2368 }
 0xe21   : > { %v2371_v12 = vmul.f32 0.0625, %v2369_v11  ;;  %v2366_v13 = vpop.xlane.xlu0 %2365  ;;  %v3165_v11 = vld [vmem:[%s5525_s29 + $0x18] sm:$0xff] }
 0xe22   : > { %v2370_v17 = vmul.f32 0.0625, %v2366_v13  ;;  %v4885_v13 = vpack.c.bf16 %v3213_v7, %v3212_v6  ;;  %v4903_v7 = vpack.c.bf16 %v3205_v1, %v3204_v0 }
 0xe23   : > { %v2373_v18 = vadd.f32 1e-05, %v2371_v12  ;;  %v4853_v12 = vpack.c.bf16 %v3181_v5, %v3180_v4  ;;  %v3222_v4 = vld [vmem:[%s5525_s29 + $0x1e0] sm:$0xff]  ;;  %v3223_v5 = vld [vmem:[%s5525_s29 + $0x1e8] sm:$0xff] }
 0xe24   : > { %v2372_v20 = vadd.f32 1e-05, %v2370_v17  ;;  %v3196_v17 = vld [vmem:[%s5525_s29 + $0x110] sm:$0xff] }
 0xe25   : > { %5168 = vrsqrt.f32 %v2373_v18  ;;  %v3197_v18 = vld [vmem:[%s5525_s29 + $0x118] sm:$0xff] }
 0xe26   : > { %5170 = vrsqrt.f32 %v2372_v20  ;;  %v3182_v20 = vld [vmem:[%s5525_s29 + $0xa0] sm:$0xff] }
 0xe2f   : > { %v5169_v22 = vpop.eup %5168 }
 0xe30   : > { %v5171_v23 = vpop.eup %5170  ;;  %v2377_v26 = vmul.f32 %v5169_v22, %v2361_v53  ;;  %v4845_v53 = vpack.c.bf16 %v2423_v49, %v2407_v48  ;;  %v3183_v22 = vld [vmem:[%s5525_s29 + $0xa8] sm:$0xff]  ;;  %v4895_v49 = vpack.c.bf16 %v3201_v43, %v3200_v42  ;;  %v5644_v42 = vld [vmem:[%s5639_s12] sm:$0xff] }
 0xe31   : > { %v2376_v27 = vmul.f32 %v5171_v23, %v2360_v54  ;;  %v2404_v54 = vld [vmem:[%s5473_s23 + $0x60] sm:$0xff]  ;;  %v4857_v29 = vpack.c.bf16 %v3183_v22, %v3182_v20  ;;  %v3192_v20 = vld [vmem:[%s5525_s29 + $0xf0] sm:$0xff]  ;;  %v3193_v22 = vld [vmem:[%s5525_s29 + $0xf8] sm:$0xff] }
 0xe32   : > { %v2384_v36 = vmul.f32 %v4306_v24, %v2377_v26  ;;  %v4843_v60 = vpack.c.bf16 %v2420_v55, %v2404_v54  ;;  %v3214_v23 = vld [vmem:[%s5525_s29 + $0x1a0] sm:$0xff]  ;;  %v4887_v26 = vpack.c.bf16 %v3197_v18, %v3196_v17  ;;  %v3203_v55 = vld [vmem:[%s5525_s29 + $0x148] sm:$0xff] }
 0xe33   : > { %v2383_v21 = vmul.f32 %v4306_v24, %v2376_v27  ;;  %v3215_v24 = vld [vmem:[%s5525_s29 + $0x1a8] sm:$0xff]  ;;  %v3166_v27 = vld [vmem:[%s5525_s29 + $0x20] sm:$0xff] }
 0xe34   : > { %v5505_v41 = vadd.f32 %v4307_v25, %v2384_v36  ;;  %v4889_v30 = vpack.c.bf16 %v3215_v24, %v3214_v23  ;;  %v4859_v35 = vpack.c.bf16 %v3167_v28, %v3166_v27  ;;  %v4891_v36 = vpack.c.bf16 %v3199_v32, %v3198_v31  ;;  %v3202_v54 = vld [vmem:[%s5525_s29 + $0x140] sm:$0xff]  ;;  %v3224_v23 = vld [vmem:[%s5525_s29 + $0x1f0] sm:$0xff]  ;;  %v3177_v27 = vld [vmem:[%s5525_s29 + $0x78] sm:$0xff] }
 0xe35   : > { %v5497_v37 = vadd.f32 %v4307_v25, %v2383_v21  ;;  %v4855_v25 = vpack.c.bf16 %v3165_v11, %v3164_v10  ;;  %v3184_v21 = vld [vmem:[%s5525_s29 + $0xb0] sm:$0xff]  ;;  %v4899_v59 = vpack.c.bf16 %v3203_v55, %v3202_v54  ;;  %v4905_v10 = vpack.c.bf16 %v3223_v5, %v3222_v4  ;;  %v3175_v11 = vld [vmem:[%s5525_s29 + $0x68] sm:$0xff]  ;;  %v3209_v31 = vld [vmem:[%s5525_s29 + $0x178] sm:$0xff] }
 0xe36   : > { %v4877_v24 = vpack.c.bf16 %v3193_v22, %v3192_v20  ;;  %v3258_v54 = vld [vmem:[%s5525_s29 + $0x300] sm:$0xff]  ;;  %v3259_v55 = vld [vmem:[%s5525_s29 + $0x308] sm:$0xff]  ;;  %v3228_v4 = vld [vmem:[%s5525_s29 + $0x210] sm:$0xff] }
 0xe37   : > { %4308 = vmatmul.mubr.msk.f32.vlgmr.msra.gmra.mrb[20].mxu1 %vm589_vm3, %v5497_v37  ;;  %4310 = vmatmul.mubr.msk.f32.vlgmr.msra.gmra.mrb[18].mxu0 %vm589_vm3, %v5497_v37 }
 0xe38   : > { %2584 = vmatprep.mubr.f32.mxu1 %v5184_v16  ;;  %2661 = vmatprep.mubr.f32.mxu0 %v5184_v16 }
 0xe39   : > { %4828 = vmatpush1.bf16.msra.mxu1 %v4827_v38  ;;  %4832 = vmatpush1.bf16.msra.mxu0 %v4831_v39  ;;  %v3168_v38 = vld [vmem:[%s5525_s29 + $0x30] sm:$0xff]  ;;  %v3169_v39 = vld [vmem:[%s5525_s29 + $0x38] sm:$0xff] }
 0xe3a   : > { %4834 = vmatprep.subr.bf16.mxu1 %v4833_v19  ;;  %4838 = vmatprep.subr.bf16.mxu0 %v4837_v40  ;;  %v4893_v40 = vpack.c.bf16 %v3217_v34, %v3216_v33  ;;  %v4863_v48 = vpack.c.bf16 %v3169_v39, %v3168_v38  ;;  %v3274_v33 = vld [vmem:[%s5525_s29 + $0x380] sm:$0xff]  ;;  %v2428_v38 = vlaneseq }
 0xe3b   : > { %4309 = vmatmul.mubr.msk.f32.gmra.mrb[22].mxu1 %vm589_vm3, %v5505_v41  ;;  %4311 = vmatmul.mubr.msk.f32.gmra.mrb[20].mxu0 %vm589_vm3, %v5505_v41 }
 0xe3c   : > { %2732 = vmatprep.mubr.f32.mxu1 %v5184_v16  ;;  %2809 = vmatprep.mubr.f32.mxu0 %v5184_v16  ;;  %v5633_v39 = vshrl.u32 %v2428_v38, 7 }
 0xe3e   : > { %v2434_v43 = vsub.s32 1, %v5633_v39  ;;  %v2458_v0 = vsub.s32 7, %v5633_v39 }
 0xe3f   : > { %4312 = vmatmul.mubr.msk.f32.vlgmr.msra.gmra.mrb[24].mxu1 %vm589_vm3, %v5497_v37  ;;  %4314 = vmatmul.mubr.msk.f32.vlgmr.msra.gmra.mrb[22].mxu0 %vm589_vm3, %v5497_v37 }
 0xe40   : > { %2738 = vmatprep.mubr.f32.mxu1 %v5184_v16  ;;  %2815 = vmatprep.mubr.f32.mxu0 %v5184_v16 }
 0xe41   : > { %4836 = vmatpush1.bf16.msra.mxu1 %v4835_v50  ;;  %4840 = vmatpush1.bf16.msra.mxu0 %v4839_v51  ;;  %v3170_v50 = vld [vmem:[%s5525_s29 + $0x40] sm:$0xff]  ;;  %v3171_v51 = vld [vmem:[%s5525_s29 + $0x48] sm:$0xff] }
 0xe42   : > { %4842 = vmatprep.subr.bf16.mxu1 %v4841_v52  ;;  %4846 = vmatprep.subr.bf16.mxu0 %v4845_v53  ;;  %v4865_v52 = vpack.c.bf16 %v3187_v45, %v3186_v44  ;;  %v4897_v53 = vpack.c.bf16 %v3219_v47, %v3218_v46  ;;  %v4867_v58 = vpack.c.bf16 %v3171_v51, %v3170_v50  ;;  %v2442_v44 = vsub.s32 3, %v5633_v39  ;;  %v3227_v50 = vld [vmem:[%s5525_s29 + $0x208] sm:$0xff] }
 0xe43   : > { %4313 = vmatmul.mubr.msk.f32.gmra.mrb[26].mxu1 %vm589_vm3, %v5505_v41  ;;  %4315 = vmatmul.mubr.msk.f32.gmra.mrb[24].mxu0 %vm589_vm3, %v5505_v41  ;;  %v2435_v47 = vrot.slane %v5644_v42, %v2434_v43  ;;  %v2450_v51 = vsub.s32 5, %v5633_v39 }
 0xe44   : > { %2886 = vmatprep.mubr.f32.mxu1 %v5184_v16  ;;  %2963 = vmatprep.mubr.f32.mxu0 %v5184_v16 }
 0xe47   : > { %4316 = vmatmul.mubr.msk.f32.vlgmr.msra.gmra.mrb[28].mxu1 %vm589_vm3, %v5497_v37  ;;  %4318 = vmatmul.mubr.msk.f32.vlgmr.msra.gmra.mrb[26].mxu0 %vm589_vm3, %v5497_v37 }
 0xe48   : > { %2892 = vmatprep.mubr.f32.mxu1 %v5184_v16  ;;  %2969 = vmatprep.mubr.f32.mxu0 %v5184_v16 }
 0xe49   : > { %4844 = vmatpush1.bf16.msra.mxu1 %v4843_v60  ;;  %4848 = vmatpush1.bf16.msra.mxu0 %v4847_v61  ;;  %v3172_v60 = vld [vmem:[%s5525_s29 + $0x50] sm:$0xff]  ;;  %v3173_v61 = vld [vmem:[%s5525_s29 + $0x58] sm:$0xff] }
 0xe4a   : > { %4850 = vmatprep.subr.bf16.mxu1 %v4849_v62  ;;  %4882 = vmatprep.subr.bf16.mxu0 %v4881_v63  ;;  %v4869_v62 = vpack.c.bf16 %v3189_v57, %v3188_v56  ;;  %v4901_v63 = vpack.c.bf16 %v3221_v15, %v3220_v14  ;;  %v4871_v6 = vpack.c.bf16 %v3173_v61, %v3172_v60  ;;  %v3244_v56 = vld [vmem:[%s5525_s29 + $0x290] sm:$0xff]  ;;  %v3277_v61 = vld [vmem:[%s5525_s29 + $0x398] sm:$0xff] }
 0xe4b   : > { %4317 = vmatmul.mubr.msk.f32.gmra.mrb[30].mxu1 %vm589_vm3, %v5505_v41  ;;  %4319 = vmatmul.mubr.msk.f32.gmra.mrb[28].mxu0 %vm589_vm3, %v5505_v41  ;;  %v3276_v60 = vld [vmem:[%s5525_s29 + $0x390] sm:$0xff] }
 0xe4c   : > { %3040 = vmatprep.mubr.f32.mxu1 %v5184_v16  ;;  %3117 = vmatprep.mubr.f32.mxu0 %v5184_v16 }
 0xe4f   : > { %4320 = vmatmul.mubr.msk.f32.vlgmr.msra.gmra.mrb[32].mxu1 %vm589_vm3, %v5497_v37  ;;  %4322 = vmatmul.mubr.msk.f32.vlgmr.msra.gmra.mrb[30].mxu0 %vm589_vm3, %v5497_v37 }
 0xe50   : > { %3046 = vmatprep.mubr.f32.mxu1 %v5184_v16  ;;  %3123 = vmatprep.mubr.f32.mxu0 %v5184_v16  ;;  %v3185_v16 = vld [vmem:[%s5525_s29 + $0xb8] sm:$0xff] }
 0xe51   : > { %4852 = vmatpush3.bf16.msra.mxu1 %v4851_v8  ;;  %4884 = vmatpush3.bf16.msra.mxu0 %v4883_v9  ;;  %v4861_v19 = vpack.c.bf16 %v3185_v16, %v3184_v21  ;;  %v3174_v8 = vld [vmem:[%s5525_s29 + $0x60] sm:$0xff]  ;;  %v4873_v9 = vpack.c.bf16 %v3191_v3, %v3190_v2  ;;  %v3243_v16 = vld [vmem:[%s5525_s29 + $0x288] sm:$0xff]  ;;  %v4947_v2 = vpack.c.bf16 %v3259_v55, %v3258_v54  ;;  %v3248_v55 = vld [vmem:[%s5525_s29 + $0x2b0] sm:$0xff] }
 0xe52   : > { %4854 = vmatprep.subr.bf16.mxu1 %v4853_v12  ;;  %4886 = vmatprep.subr.bf16.mxu0 %v4885_v13  ;;  %v3206_v12 = vld [vmem:[%s5525_s29 + $0x160] sm:$0xff]  ;;  %v3207_v13 = vld [vmem:[%s5525_s29 + $0x168] sm:$0xff]  ;;  %v4875_v17 = vpack.c.bf16 %v3175_v11, %v3174_v8  ;;  %v5673_v3 = vrot.slane %v5644_v42, %v2450_v51  ;;  %v3229_v11 = vld [vmem:[%s5525_s29 + $0x218] sm:$0xff] }
 0xe53   : > { %4321 = vmatmul.mubr.msk.f32.gmra.mrb[34].mxu1 %vm589_vm3, %v5505_v41  ;;  %4323 = vmatmul.mubr.msk.f32.gmra.mrb[32].mxu0 %vm589_vm3, %v5505_v41  ;;  %v4907_v18 = vpack.c.bf16 %v3207_v13, %v3206_v12  ;;  %v3242_v21 = vld [vmem:[%s5525_s29 + $0x280] sm:$0xff]  ;;  %v3260_v12 = vld [vmem:[%s5525_s29 + $0x310] sm:$0xff]  ;;  %v3263_v54 = vld [vmem:[%s5525_s29 + $0x328] sm:$0xff] }
 0xe54   : > { %v4913_v34 = vpack.c.bf16 %v3243_v16, %v3242_v21  ;;  %v5690_v21 = vld [vmem:[%s5639_s12 + $0x8] sm:$0xff] }
 0xe55   : > { %4856 = vmatpush3.bf16.msra.mxu1 %v4855_v25  ;;  %4888 = vmatpush3.bf16.msra.mxu0 %v4887_v26  ;;  %v3225_v25 = vld [vmem:[%s5525_s29 + $0x1f8] sm:$0xff]  ;;  %v3176_v26 = vld [vmem:[%s5525_s29 + $0x70] sm:$0xff] }
 0xe56   : > { %4858 = vmatprep.subr.bf16.mxu1 %v4857_v29  ;;  %4890 = vmatprep.subr.bf16.mxu0 %v4889_v30  ;;  %v4909_v28 = vpack.c.bf16 %v3225_v25, %v3224_v23  ;;  %v4879_v29 = vpack.c.bf16 %v3177_v27, %v3176_v26  ;;  %v3208_v30 = vld [vmem:[%s5525_s29 + $0x170] sm:$0xff]  ;;  %v3246_v25 = vld [vmem:[%s5525_s29 + $0x2a0] sm:$0xff] }
 0xe57   : > { %v4911_v32 = vpack.c.bf16 %v3209_v31, %v3208_v30  ;;  %v3278_v30 = vld [vmem:[%s5525_s29 + $0x3a0] sm:$0xff]  ;;  %v3279_v31 = vld [vmem:[%s5525_s29 + $0x3a8] sm:$0xff] }
 0xe59   : > { %4860 = vmatpush3.bf16.msra.mxu1 %v4859_v35  ;;  %4892 = vmatpush3.bf16.msra.mxu0 %v4891_v36  ;;  %v3275_v35 = vld [vmem:[%s5525_s29 + $0x388] sm:$0xff] }
 0xe5a   : > { %4862 = vmatprep.subr.bf16.mxu1 %v4861_v19  ;;  %4894 = vmatprep.subr.bf16.mxu0 %v4893_v40  ;;  %v4945_v36 = vpack.c.bf16 %v3275_v35, %v3274_v33  ;;  %v2430_v19 = vsub.s32 0, %v5633_v39  ;;  %v2438_v40 = vsub.s32 2, %v5633_v39 }
 0xe5c   : > { %v2431_v45 = vrot.slane %v5644_v42, %v2430_v19  ;;  %v2439_v46 = vrot.slane %v5644_v42, %v2438_v40 }
 0xe5d   : > { %4864 = vmatpush3.bf16.msra.mxu1 %v4863_v48  ;;  %4896 = vmatpush3.bf16.msra.mxu0 %v4895_v49  ;;  %v2443_v48 = vrot.slane %v5644_v42, %v2442_v44  ;;  %v3226_v49 = vld [vmem:[%s5525_s29 + $0x200] sm:$0xff] }
 0xe5e   : > { %4866 = vmatprep.subr.bf16.mxu1 %v4865_v52  ;;  %4898 = vmatprep.subr.bf16.mxu0 %v4897_v53  ;;  %v4915_v1 = vpack.c.bf16 %v3227_v50, %v3226_v49 }
 0xe61   : > { %4868 = vmatpush3.bf16.msra.mxu1 %v4867_v58  ;;  %4900 = vmatpush3.bf16.msra.mxu0 %v4899_v59  ;;  %v3245_v59 = vld [vmem:[%s5525_s29 + $0x298] sm:$0xff] }
 0xe62   : > { %4870 = vmatprep.subr.bf16.mxu1 %v4869_v62  ;;  %4902 = vmatprep.subr.bf16.mxu0 %v4901_v63 }
 0xe65   : > { %4872 = vmatpush3.bf16.msra.mxu1 %v4871_v6  ;;  %4904 = vmatpush3.bf16.msra.mxu0 %v4903_v7 }
 0xe66   : > { %4874 = vmatprep.subr.bf16.mxu1 %v4873_v9  ;;  %4906 = vmatprep.subr.bf16.mxu0 %v4905_v10  ;;  %v4917_v9 = vpack.c.bf16 %v3245_v59, %v3244_v56  ;;  %v4949_v10 = vpack.c.bf16 %v3277_v61, %v3276_v60 }
 0xe69   : > { %4876 = vmatpush3.bf16.msra.mxu1 %v4875_v17  ;;  %4908 = vmatpush3.bf16.msra.mxu0 %v4907_v18 }
 0xe6a   : > { %4878 = vmatprep.subr.bf16.mxu1 %v4877_v24  ;;  %4910 = vmatprep.subr.bf16.mxu0 %v4909_v28  ;;  %v3261_v24 = vld [vmem:[%s5525_s29 + $0x318] sm:$0xff]  ;;  %v5683_v28 = vrot.slane %v5644_v42, %v2458_v0 }
 0xe6b   : > { %v4951_v38 = vpack.c.bf16 %v3261_v24, %v3260_v12  ;;  %v3250_v12 = vld [vmem:[%s5525_s29 + $0x2c0] sm:$0xff] }
 0xe6c   : > { %v3234_v24 = vld [vmem:[%s5525_s29 + $0x240] sm:$0xff] }
 0xe6d   : > { %4880 = vmatpush3.bf16.msra.mxu1 %v4879_v29  ;;  %4912 = vmatpush3.bf16.msra.mxu0 %v4911_v32  ;;  %v3247_v29 = vld [vmem:[%s5525_s29 + $0x2a8] sm:$0xff]  ;;  %v3230_v32 = vld [vmem:[%s5525_s29 + $0x220] sm:$0xff] }
 0xe6e   : > { %4914 = vmatprep.subr.bf16.mxu1 %v4913_v34  ;;  %4946 = vmatprep.subr.bf16.mxu0 %v4945_v36  ;;  %v4919_v36 = vpack.c.bf16 %v3229_v11, %v3228_v4  ;;  %v3233_v4 = vld [vmem:[%s5525_s29 + $0x238] sm:$0xff] }
 0xe6f   : > { %v3265_v11 = vld [vmem:[%s5525_s29 + $0x338] sm:$0xff] }
 0xf0a   : > { %v2580_v52 = vpop.f32.mrb[20].mxu1  ;;  %v2657_v53 = vpop.f32.mrb[18].mxu0 }
 0xf0b   : > { %v2581_v57 = vadd.f32 %v2580_v52, %v2431_v45  ;;  %v2658_v14 = vadd.f32 %v2657_v53, %v2439_v46  ;;  %v2582_v15 = vpop.f32.mrb[21].mxu1  ;;  %v2659_v58 = vpop.f32.mrb[19].mxu0  ;;  %v4921_v52 = vpack.c.bf16 %v3247_v29, %v3246_v25  ;;  %v4953_v53 = vpack.c.bf16 %v3279_v31, %v3278_v30  ;;  %v3235_v25 = vld [vmem:[%s5525_s29 + $0x248] sm:$0xff] }
 0xf0c   : > { %v2583_v62 = vadd.f32 %v2582_v15, %v2435_v47  ;;  %v2660_v63 = vadd.f32 %v2659_v58, %v2443_v48  ;;  %v3280_v15 = vld [vmem:[%s5525_s29 + $0x3b0] sm:$0xff]  ;;  %v3281_v58 = vld [vmem:[%s5525_s29 + $0x3b8] sm:$0xff] }
 0xf0d   : > { %v3130_v13 = vmax.f32 %v2581_v57, 0.0  ;;  %v3132_v17 = vmax.f32 %v2658_v14, 0.0  ;;  %v3249_v14 = vld [vmem:[%s5525_s29 + $0x2b8] sm:$0xff] }
 0xf0e   : > { %v3131_v5 = vmax.f32 %v2583_v62, 0.0  ;;  %v3133_v6 = vmax.f32 %v2660_v63, 0.0  ;;  %v2586_v7 = vpop.f32.mrb[22].mxu1  ;;  %v2663_v8 = vpop.f32.mrb[20].mxu0 }
 0xf0f   : > { %v2587_v18 = vadd.f32 %v2586_v7, %v2431_v45  ;;  %v2664_v20 = vadd.f32 %v2663_v8, %v2439_v46  ;;  %v2588_v22 = vpop.f32.mrb[23].mxu1  ;;  %v2665_v23 = vpop.f32.mrb[21].mxu0  ;;  %v3231_v45 = vld [vmem:[%s5525_s29 + $0x228] sm:$0xff]  ;;  %v3262_v46 = vld [vmem:[%s5525_s29 + $0x320] sm:$0xff]  ;;  %v2471_v7 = vrot.slane %v5690_v21, %v2438_v40  ;;  %v4925_v8 = vpack.c.bf16 %v3249_v14, %v3248_v55  ;;  %v3236_v55 = vld [vmem:[%s5525_s29 + $0x250] sm:$0xff] }
 0xf10   : > { %v2589_v26 = vadd.f32 %v2588_v22, %v2435_v47  ;;  %v2666_v27 = vadd.f32 %v2665_v23, %v2443_v48  ;;  %3487 = vmatprep.mubr.f32.mxu1 %v3131_v5  ;;  %3562 = vmatprep.mubr.f32.mxu0 %v3133_v6  ;;  %v4923_v63 = vpack.c.bf16 %v3231_v45, %v3230_v32  ;;  %v3266_v32 = vld [vmem:[%s5525_s29 + $0x340] sm:$0xff]  ;;  %v3253_v45 = vld [vmem:[%s5525_s29 + $0x2d8] sm:$0xff] }
 0xf11   : > { %3488 = vmatmul.mubr.f32.vlgmr.msra.gmra.mrb[36].mxu1 %v3130_v13  ;;  %3563 = vmatmul.mubr.f32.vlgmr.msra.gmra.mrb[34].mxu0 %v3132_v17  ;;  %v3146_v47 = vmax.f32 %v2587_v18, 0.0  ;;  %v3148_v48 = vmax.f32 %v2664_v20, 0.0  ;;  %v3251_v13 = vld [vmem:[%s5525_s29 + $0x2c8] sm:$0xff]  ;;  %v3282_v17 = vld [vmem:[%s5525_s29 + $0x3c0] sm:$0xff] }
 0xf12   : > { %v3147_v16 = vmax.f32 %v2589_v26, 0.0  ;;  %v3149_v33 = vmax.f32 %v2666_v27, 0.0  ;;  %4916 = vmatpush3.bf16.msra.mxu1 %v4915_v1  ;;  %4948 = vmatpush3.bf16.msra.mxu0 %v4947_v2  ;;  %v5692_v34 = vpop.f32.mrb[24].mxu1  ;;  %v5694_v35 = vpop.f32.mrb[22].mxu0  ;;  %v4955_v1 = vpack.c.bf16 %v3263_v54, %v3262_v46  ;;  %v3232_v2 = vld [vmem:[%s5525_s29 + $0x230] sm:$0xff]  ;;  %v3283_v18 = vld [vmem:[%s5525_s29 + $0x3c8] sm:$0xff]  ;;  %v4929_v30 = vpack.c.bf16 %v3251_v13, %v3250_v12 }
 0xf13   : > { %v2736_v49 = vpop.f32.mrb[25].mxu1  ;;  %v2813_v50 = vpop.f32.mrb[23].mxu0  ;;  %4918 = vmatprep.subr.bf16.mxu1 %v4917_v9  ;;  %4950 = vmatprep.subr.bf16.mxu0 %v4949_v10  ;;  %v4957_v9 = vpack.c.bf16 %v3281_v58, %v3280_v15  ;;  %v3264_v10 = vld [vmem:[%s5525_s29 + $0x330] sm:$0xff]  ;;  %v4927_v22 = vpack.c.bf16 %v3233_v4, %v3232_v2  ;;  %v4961_v31 = vpack.c.bf16 %v3283_v18, %v3282_v17  ;;  %v3255_v2 = vld [vmem:[%s5525_s29 + $0x2e8] sm:$0xff]  ;;  %v3238_v18 = vld [vmem:[%s5525_s29 + $0x260] sm:$0xff] }
 0xf14   : > { %v2737_v56 = vadd.f32 %v2736_v49, %v5673_v3  ;;  %v2814_v57 = vadd.f32 %v2813_v50, %v5683_v28  ;;  %3492 = vmatprep.mubr.f32.mxu1 %v3147_v16  ;;  %3567 = vmatprep.mubr.f32.mxu0 %v3149_v33  ;;  %v4959_v23 = vpack.c.bf16 %v3265_v11, %v3264_v10  ;;  %v3267_v16 = vld [vmem:[%s5525_s29 + $0x348] sm:$0xff]  ;;  %v3252_v33 = vld [vmem:[%s5525_s29 + $0x2d0] sm:$0xff] }
 0xf15   : > { %3493 = vmatmul.mubr.f32.gmra.mrb[38].mxu1 %v3146_v47  ;;  %3568 = vmatmul.mubr.f32.gmra.mrb[36].mxu0 %v3148_v48  ;;  %v3284_v46 = vld [vmem:[%s5525_s29 + $0x3d0] sm:$0xff]  ;;  %v3285_v47 = vld [vmem:[%s5525_s29 + $0x3d8] sm:$0xff]  ;;  %v4931_v48 = vpack.c.bf16 %v3235_v25, %v3234_v24  ;;  %v2483_v4 = vrot.slane %v5690_v21, %v2450_v51  ;;  %v3239_v51 = vld [vmem:[%s5525_s29 + $0x268] sm:$0xff] }
 0xf16   : > { %v3135_v59 = vmax.f32 %v2737_v56, 0.0  ;;  %v3137_v60 = vmax.f32 %v2814_v57, 0.0  ;;  %4920 = vmatpush3.bf16.msra.mxu1 %v4919_v36  ;;  %4952 = vmatpush3.bf16.msra.mxu0 %v4951_v38  ;;  %v5705_v61 = vpop.f32.mrb[26].mxu1  ;;  %v5707_v62 = vpop.f32.mrb[24].mxu0  ;;  %v2446_v36 = vsub.s32 4, %v5633_v39  ;;  %v2454_v38 = vsub.s32 6, %v5633_v39 }
 0xf17   : > { %v5711_v5 = vpop.f32.mrb[27].mxu1  ;;  %v5713_v6 = vpop.f32.mrb[25].mxu0  ;;  %4922 = vmatprep.subr.bf16.mxu1 %v4921_v52  ;;  %4954 = vmatprep.subr.bf16.mxu0 %v4953_v53  ;;  %v4963_v52 = vpack.c.bf16 %v3267_v16, %v3266_v32  ;;  %v3237_v56 = vld [vmem:[%s5525_s29 + $0x258] sm:$0xff]  ;;  %v3268_v57 = vld [vmem:[%s5525_s29 + $0x350] sm:$0xff] }
 0xf18   : > { %3637 = vmatprep.mubr.f32.mxu1 %v3135_v59  ;;  %3712 = vmatprep.mubr.f32.mxu0 %v3137_v60  ;;  %v2479_v53 = vrot.slane %v5690_v21, %v2446_v36  ;;  %v2487_v54 = vrot.slane %v5690_v21, %v2454_v38  ;;  %v4933_v59 = vpack.c.bf16 %v3253_v45, %v3252_v33  ;;  %v3257_v32 = vld [vmem:[%s5525_s29 + $0x2f8] sm:$0xff]  ;;  %v3288_v45 = vld [vmem:[%s5525_s29 + $0x3f0] sm:$0xff] }
 0xf19   : > { %v4965_v60 = vpack.c.bf16 %v3285_v47, %v3284_v46  ;;  %v4935_v12 = vpack.c.bf16 %v3237_v56, %v3236_v55  ;;  %v3289_v46 = vld [vmem:[%s5525_s29 + $0x3f8] sm:$0xff]  ;;  %v2447_v47 = vrot.slane %v5644_v42, %v2446_v36  ;;  %v4939_v55 = vpack.c.bf16 %v3239_v51, %v3238_v18  ;;  %v3291_v18 = vld [vmem:[%s5525_s29 + $0x408] sm:$0xff] }
 0xf1a   : > { %4924 = vmatpush3.bf16.msra.mxu1 %v4923_v63  ;;  %4956 = vmatpush3.bf16.msra.mxu0 %v4955_v1  ;;  %v5724_v20 = vpop.f32.mrb[28].mxu1  ;;  %v2965_v40 = vpop.f32.mrb[26].mxu0  ;;  %v3269_v63 = vld [vmem:[%s5525_s29 + $0x358] sm:$0xff]  ;;  %v3254_v1 = vld [vmem:[%s5525_s29 + $0x2e0] sm:$0xff] }
 0xf1b   : > { %v5728_v26 = vadd.f32 %v2965_v40, %v2471_v7  ;;  %v5730_v27 = vpop.f32.mrb[29].mxu1  ;;  %v5732_v29 = vpop.f32.mrb[27].mxu0  ;;  %4926 = vmatprep.subr.bf16.mxu1 %v4925_v8  ;;  %4958 = vmatprep.subr.bf16.mxu0 %v4957_v9  ;;  %v3286_v8 = vld [vmem:[%s5525_s29 + $0x3e0] sm:$0xff]  ;;  %v3287_v9 = vld [vmem:[%s5525_s29 + $0x3e8] sm:$0xff]  ;;  %v4967_v13 = vpack.c.bf16 %v3269_v63, %v3268_v57  ;;  %v4937_v17 = vpack.c.bf16 %v3255_v2, %v3254_v1  ;;  %v3272_v63 = vld [vmem:[%s5525_s29 + $0x370] sm:$0xff] }
 0xf1c   : > { %v3270_v40 = vld [vmem:[%s5525_s29 + $0x360] sm:$0xff]  ;;  %v4969_v25 = vpack.c.bf16 %v3287_v9, %v3286_v8  ;;  %v4973_v2 = vpack.c.bf16 %v3289_v46, %v3288_v45  ;;  %v3273_v8 = vld [vmem:[%s5525_s29 + $0x378] sm:$0xff]  ;;  %v2743_v46 = vadd.f32 %v5711_v5, %v5673_v3 }
 0xf1d   : > { %v3306_v9 = vld [vmem:[%s5525_s29 + $0x480] sm:$0xff]  ;;  %v4975_v51 = vpack.c.bf16 %v3273_v8, %v3272_v63  ;;  %v3341_v45 = vld [vmem:[%s5525_s29 + $0x598] sm:$0xff] }
 0xf1e   : > { %4928 = vmatpush3.bf16.msra.mxu1 %v4927_v22  ;;  %4960 = vmatpush3.bf16.msra.mxu0 %v4959_v23  ;;  %v5742_v49 = vpop.f32.mrb[30].mxu1  ;;  %v2971_v50 = vpop.f32.mrb[28].mxu0 }
 0xf1f   : > { %v5749_v14 = vadd.f32 %v2971_v50, %v2471_v7  ;;  %v5751_v15 = vpop.f32.mrb[31].mxu1  ;;  %v5753_v58 = vpop.f32.mrb[29].mxu0  ;;  %4930 = vmatprep.subr.bf16.mxu1 %v4929_v30  ;;  %4962 = vmatprep.subr.bf16.mxu0 %v4961_v31  ;;  %v2491_v7 = vrot.slane %v5690_v21, %v2458_v0  ;;  %v3271_v30 = vld [vmem:[%s5525_s29 + $0x368] sm:$0xff]  ;;  %v3256_v31 = vld [vmem:[%s5525_s29 + $0x2f0] sm:$0xff] }
 0xf20   : > { %v4971_v56 = vpack.c.bf16 %v3271_v30, %v3270_v40  ;;  %v4941_v57 = vpack.c.bf16 %v3257_v32, %v3256_v31  ;;  %v3309_v31 = vld [vmem:[%s5525_s29 + $0x498] sm:$0xff]  ;;  %v3340_v32 = vld [vmem:[%s5525_s29 + $0x590] sm:$0xff] }
 0xf22   : > { %4932 = vmatpush3.bf16.msra.mxu1 %v4931_v48  ;;  %4964 = vmatpush3.bf16.msra.mxu0 %v4963_v52  ;;  %v3042_v10 = vpop.f32.mrb[32].mxu1  ;;  %v3119_v11 = vpop.f32.mrb[30].mxu0  ;;  %v2455_v48 = vrot.slane %v5644_v42, %v2454_v38 }
 0xf23   : > { %v5769_v22 = vadd.f32 %v3042_v10, %v2479_v53  ;;  %v5771_v0 = vadd.f32 %v3119_v11, %v2487_v54  ;;  %v3044_v23 = vpop.f32.mrb[33].mxu1  ;;  %v3121_v24 = vpop.f32.mrb[31].mxu0  ;;  %4934 = vmatprep.subr.bf16.mxu1 %v4933_v59  ;;  %4966 = vmatprep.subr.bf16.mxu0 %v4965_v60  ;;  %v3240_v59 = vld [vmem:[%s5525_s29 + $0x270] sm:$0xff]  ;;  %v3241_v60 = vld [vmem:[%s5525_s29 + $0x278] sm:$0xff]  ;;  %v3307_v10 = vld [vmem:[%s5525_s29 + $0x488] sm:$0xff] }
 0xf24   : > { %v5776_v16 = vadd.f32 %v3044_v23, %v2483_v4  ;;  %v5778_v33 = vadd.f32 %v3121_v24, %v2491_v7  ;;  %v4977_v40 = vpack.c.bf16 %v3307_v10, %v3306_v9  ;;  %v3322_v23 = vld [vmem:[%s5525_s29 + $0x500] sm:$0xff]  ;;  %v3323_v24 = vld [vmem:[%s5525_s29 + $0x508] sm:$0xff] }
 0xf25   : > { %v5011_v3 = vpack.c.bf16 %v3323_v24, %v3322_v23  ;;  %v3294_v10 = vld [vmem:[%s5525_s29 + $0x420] sm:$0xff]  ;;  %v3312_v23 = vld [vmem:[%s5525_s29 + $0x4b0] sm:$0xff]  ;;  %v3313_v24 = vld [vmem:[%s5525_s29 + $0x4b8] sm:$0xff] }
 0xf26   : > { %4936 = vmatpush3.bf16.msra.mxu1 %v4935_v12  ;;  %4968 = vmatpush3.bf16.msra.mxu0 %v4967_v13  ;;  %v3048_v50 = vpop.f32.mrb[34].mxu1  ;;  %v3125_v52 = vpop.f32.mrb[32].mxu0  ;;  %v3338_v13 = vld [vmem:[%s5525_s29 + $0x580] sm:$0xff] }
 0xf27   : > { %v5787_v36 = vadd.f32 %v3048_v50, %v2479_v53  ;;  %v5789_v42 = vadd.f32 %v3125_v52, %v2487_v54  ;;  %v3050_v38 = vpop.f32.mrb[35].mxu1  ;;  %v3127_v1 = vpop.f32.mrb[33].mxu0  ;;  %4938 = vmatprep.subr.bf16.mxu1 %v4937_v17  ;;  %4970 = vmatprep.subr.bf16.mxu0 %v4969_v25  ;;  %v3339_v53 = vld [vmem:[%s5525_s29 + $0x588] sm:$0xff]  ;;  %v3290_v54 = vld [vmem:[%s5525_s29 + $0x400] sm:$0xff]  ;;  %v4943_v17 = vpack.c.bf16 %v3241_v60, %v3240_v59  ;;  %v3308_v25 = vld [vmem:[%s5525_s29 + $0x490] sm:$0xff]  ;;  %v3151_v59 = vmax.f32 %v2743_v46, 0.0 }
 0xf28   : > { %v5794_v11 = vadd.f32 %v3050_v38, %v2483_v4  ;;  %v5796_v12 = vadd.f32 %v3127_v1, %v2491_v7  ;;  %v2735_v4 = vadd.f32 %v5692_v34, %v2447_v47  ;;  %v2812_v7 = vadd.f32 %v5694_v35, %v2455_v48  ;;  %v3324_v1 = vld [vmem:[%s5525_s29 + $0x510] sm:$0xff] }
 0xf29   : > { %v5009_v30 = vpack.c.bf16 %v3339_v53, %v3338_v13  ;;  %v2820_v50 = vadd.f32 %v5713_v6, %v5683_v28  ;;  %v5817_v34 = vrot.slane %v5690_v21, %v2434_v43  ;;  %v5822_v35 = vrot.slane %v5690_v21, %v2442_v44  ;;  %v3292_v44 = vld [vmem:[%s5525_s29 + $0x410] sm:$0xff]  ;;  %v3295_v13 = vld [vmem:[%s5525_s29 + $0x428] sm:$0xff] }
 0xf2a   : > { %4940 = vmatpush3.bf16.msra.mxu1 %v4939_v55  ;;  %4972 = vmatpush3.bf16.msra.mxu0 %v4971_v56  ;;  %v4979_v52 = vpack.c.bf16 %v3291_v18, %v3290_v54  ;;  %v4981_v5 = vpack.c.bf16 %v3309_v31, %v3308_v25  ;;  %v5013_v28 = vpack.c.bf16 %v3341_v45, %v3340_v32  ;;  %v3134_v6 = vmax.f32 %v2735_v4, 0.0  ;;  %v3344_v25 = vld [vmem:[%s5525_s29 + $0x5b0] sm:$0xff]  ;;  %v3345_v4 = vld [vmem:[%s5525_s29 + $0x5b8] sm:$0xff] }
 0xf2b   : > { %4942 = vmatprep.subr.bf16.mxu1 %v4941_v57  ;;  %4974 = vmatprep.subr.bf16.mxu0 %v4973_v2  ;;  %v3136_v55 = vmax.f32 %v2812_v7, 0.0  ;;  %v2741_v43 = vadd.f32 %v5705_v61, %v2447_v47  ;;  %v2818_v56 = vadd.f32 %v5707_v62, %v2455_v48  ;;  %v3293_v57 = vld [vmem:[%s5525_s29 + $0x418] sm:$0xff]  ;;  %v3153_v60 = vmax.f32 %v2820_v50, 0.0  ;;  %v3310_v61 = vld [vmem:[%s5525_s29 + $0x4a0] sm:$0xff]  ;;  %v3311_v62 = vld [vmem:[%s5525_s29 + $0x4a8] sm:$0xff] }
 0xf2c   : > { %v2891_v63 = vadd.f32 %v5730_v27, %v5817_v34  ;;  %v2968_v38 = vadd.f32 %v5732_v29, %v5822_v35  ;;  %v3325_v2 = vld [vmem:[%s5525_s29 + $0x518] sm:$0xff]  ;;  %v3342_v47 = vld [vmem:[%s5525_s29 + $0x5a0] sm:$0xff]  ;;  %v3343_v48 = vld [vmem:[%s5525_s29 + $0x5a8] sm:$0xff]  ;;  %v4983_v29 = vpack.c.bf16 %v3293_v57, %v3292_v44  ;;  %v4985_v18 = vpack.c.bf16 %v3311_v62, %v3310_v61 }
 0xf2d   : > { %v3150_v8 = vmax.f32 %v2741_v43, 0.0  ;;  %v3152_v27 = vmax.f32 %v2818_v56, 0.0  ;;  %v5015_v9 = vpack.c.bf16 %v3325_v2, %v3324_v1  ;;  %v4987_v7 = vpack.c.bf16 %v3295_v13, %v3294_v10  ;;  %v3296_v31 = vld [vmem:[%s5525_s29 + $0x430] sm:$0xff]  ;;  %v3297_v32 = vld [vmem:[%s5525_s29 + $0x438] sm:$0xff]  ;;  %v3298_v56 = vld [vmem:[%s5525_s29 + $0x440] sm:$0xff] }
 0xf2e   : > { %4944 = vmatpush3.bf16.msra.mxu1 %v4943_v17  ;;  %4976 = vmatpush3.bf16.msra.mxu0 %v4975_v51  ;;  %v3139_v53 = vmax.f32 %v2891_v63, 0.0  ;;  %v3141_v54 = vmax.f32 %v2968_v38, 0.0  ;;  %v5017_v17 = vpack.c.bf16 %v3343_v48, %v3342_v47  ;;  %v3326_v51 = vld [vmem:[%s5525_s29 + $0x520] sm:$0xff]  ;;  %v4989_v45 = vpack.c.bf16 %v3313_v24, %v3312_v23  ;;  %v3328_v50 = vld [vmem:[%s5525_s29 + $0x530] sm:$0xff]  ;;  %v3299_v44 = vld [vmem:[%s5525_s29 + $0x448] sm:$0xff] }
 0xf2f   : > { %4978 = vmatprep.subr.bf16.mxu1 %v4977_v40  ;;  %5010 = vmatprep.subr.bf16.mxu0 %v5009_v30  ;;  %v3327_v40 = vld [vmem:[%s5525_s29 + $0x528] sm:$0xff]  ;;  %v5021_v46 = vpack.c.bf16 %v3345_v4, %v3344_v25  ;;  %v3316_v38 = vld [vmem:[%s5525_s29 + $0x4d0] sm:$0xff]  ;;  %v3317_v1 = vld [vmem:[%s5525_s29 + $0x4d8] sm:$0xff]  ;;  %v4995_v62 = vpack.c.bf16 %v3299_v44, %v3298_v56 }
 0xf30   : > { %v5019_v30 = vpack.c.bf16 %v3327_v40, %v3326_v51  ;;  %v3331_v63 = vld [vmem:[%s5525_s29 + $0x548] sm:$0xff]  ;;  %v3348_v2 = vld [vmem:[%s5525_s29 + $0x5d0] sm:$0xff]  ;;  %v3349_v61 = vld [vmem:[%s5525_s29 + $0x5d8] sm:$0xff] }
 0xf31   : > { %3638 = vmatmul.mubr.f32.vlgmr.msra.gmra.mrb[40].mxu1 %v3134_v6  ;;  %3713 = vmatmul.mubr.f32.vlgmr.msra.gmra.mrb[38].mxu0 %v3136_v55  ;;  %v3347_v6 = vld [vmem:[%s5525_s29 + $0x5c8] sm:$0xff]  ;;  %v4991_v55 = vpack.c.bf16 %v3297_v32, %v3296_v31  ;;  %v3300_v48 = vld [vmem:[%s5525_s29 + $0x450] sm:$0xff]  ;;  %v3333_v10 = vld [vmem:[%s5525_s29 + $0x558] sm:$0xff] }
 0xf32   : > { %3642 = vmatprep.mubr.f32.mxu1 %v3151_v59  ;;  %3717 = vmatprep.mubr.f32.mxu0 %v3153_v60  ;;  %v3330_v60 = vld [vmem:[%s5525_s29 + $0x540] sm:$0xff]  ;;  %v3303_v23 = vld [vmem:[%s5525_s29 + $0x468] sm:$0xff]  ;;  %v3321_v31 = vld [vmem:[%s5525_s29 + $0x4f8] sm:$0xff] }
 0xf33   : > { %4980 = vmatpush3.bf16.msra.mxu1 %v4979_v52  ;;  %5012 = vmatpush3.bf16.msra.mxu0 %v5011_v3  ;;  %v3329_v52 = vld [vmem:[%s5525_s29 + $0x538] sm:$0xff]  ;;  %v3314_v3 = vld [vmem:[%s5525_s29 + $0x4c0] sm:$0xff]  ;;  %v5027_v47 = vpack.c.bf16 %v3331_v63, %v3330_v60  ;;  %v3352_v32 = vld [vmem:[%s5525_s29 + $0x5f0] sm:$0xff] }
 0xf34   : > { %4982 = vmatprep.subr.bf16.mxu1 %v4981_v5  ;;  %5014 = vmatprep.subr.bf16.mxu0 %v5013_v28  ;;  %v3315_v5 = vld [vmem:[%s5525_s29 + $0x4c8] sm:$0xff]  ;;  %v3346_v28 = vld [vmem:[%s5525_s29 + $0x5c0] sm:$0xff]  ;;  %v5023_v43 = vpack.c.bf16 %v3329_v52, %v3328_v50  ;;  %v3304_v52 = vld [vmem:[%s5525_s29 + $0x470] sm:$0xff] }
 0xf35   : > { %3643 = vmatmul.mubr.f32.gmra.mrb[42].mxu1 %v3150_v8  ;;  %3718 = vmatmul.mubr.f32.gmra.mrb[40].mxu0 %v3152_v27  ;;  %v4993_v57 = vpack.c.bf16 %v3315_v5, %v3314_v3  ;;  %v5025_v59 = vpack.c.bf16 %v3347_v6, %v3346_v28  ;;  %v3301_v8 = vld [vmem:[%s5525_s29 + $0x458] sm:$0xff]  ;;  %v4997_v27 = vpack.c.bf16 %v3317_v1, %v3316_v38  ;;  %v3318_v13 = vld [vmem:[%s5525_s29 + $0x4e0] sm:$0xff]  ;;  %v3371_v44 = vld [vmem:[%s5525_s29 + $0x688] sm:$0xff] }
 0xf36   : > { %3787 = vmatprep.mubr.f32.mxu1 %v3139_v53  ;;  %3862 = vmatprep.mubr.f32.mxu0 %v3141_v54  ;;  %v3319_v53 = vld [vmem:[%s5525_s29 + $0x4e8] sm:$0xff]  ;;  %v3350_v54 = vld [vmem:[%s5525_s29 + $0x5e0] sm:$0xff]  ;;  %v3305_v3 = vld [vmem:[%s5525_s29 + $0x478] sm:$0xff]  ;;  %v2463_v5 = vrot.slane %v5690_v21, %v2430_v19 }
 0xf37   : > { %4984 = vmatpush3.bf16.msra.mxu1 %v4983_v29  ;;  %5016 = vmatpush3.bf16.msra.mxu0 %v5015_v9  ;;  %v5029_v29 = vpack.c.bf16 %v3349_v61, %v3348_v2  ;;  %v3332_v9 = vld [vmem:[%s5525_s29 + $0x550] sm:$0xff]  ;;  %v3302_v40 = vld [vmem:[%s5525_s29 + $0x460] sm:$0xff]  ;;  %v5001_v24 = vpack.c.bf16 %v3319_v53, %v3318_v13  ;;  %v5007_v39 = vpack.c.bf16 %v3305_v3, %v3304_v52  ;;  %v3355_v1 = vld [vmem:[%s5525_s29 + $0x608] sm:$0xff] }
 0xf38   : > { %4986 = vmatprep.subr.bf16.mxu1 %v4985_v18  ;;  %5018 = vmatprep.subr.bf16.mxu0 %v5017_v17  ;;  %v3351_v18 = vld [vmem:[%s5525_s29 + $0x5e8] sm:$0xff]  ;;  %v4999_v17 = vpack.c.bf16 %v3301_v8, %v3300_v48  ;;  %v5031_v51 = vpack.c.bf16 %v3333_v10, %v3332_v9  ;;  %v3334_v4 = vld [vmem:[%s5525_s29 + $0x560] sm:$0xff]  ;;  %v2889_v21 = vadd.f32 %v5724_v20, %v2463_v5  ;;  %v3372_v48 = vld [vmem:[%s5525_s29 + $0x690] sm:$0xff] }
 0xf39   : > { %v5033_v25 = vpack.c.bf16 %v3351_v18, %v3350_v54  ;;  %v3370_v56 = vld [vmem:[%s5525_s29 + $0x680] sm:$0xff]  ;;  %v2897_v2 = vadd.f32 %v5751_v15, %v5817_v34  ;;  %v2974_v61 = vadd.f32 %v5753_v58, %v5822_v35  ;;  %v3373_v8 = vld [vmem:[%s5525_s29 + $0x698] sm:$0xff]  ;;  %v3140_v15 = vmax.f32 %v5728_v26, 0.0  ;;  %v3356_v35 = vld [vmem:[%s5525_s29 + $0x610] sm:$0xff] }
 0xf3a   : > { %v5041_v60 = vpack.c.bf16 %v3371_v44, %v3370_v56  ;;  %v3354_v38 = vld [vmem:[%s5525_s29 + $0x600] sm:$0xff]  ;;  %v3405_v20 = vld [vmem:[%s5525_s29 + $0x798] sm:$0xff]  ;;  %v3138_v9 = vmax.f32 %v2889_v21, 0.0  ;;  %v2895_v58 = vadd.f32 %v5742_v49, %v2463_v5  ;;  %v5045_v54 = vpack.c.bf16 %v3373_v8, %v3372_v48  ;;  %v3375_v26 = vld [vmem:[%s5525_s29 + $0x6a8] sm:$0xff] }
 0xf3b   : > { %4988 = vmatpush3.bf16.msra.mxu1 %v4987_v7  ;;  %5020 = vmatpush3.bf16.msra.mxu0 %v5019_v30  ;;  %v3335_v7 = vld [vmem:[%s5525_s29 + $0x568] sm:$0xff]  ;;  %v3320_v30 = vld [vmem:[%s5525_s29 + $0x4f0] sm:$0xff]  ;;  %v3357_v10 = vld [vmem:[%s5525_s29 + $0x618] sm:$0xff]  ;;  %v3155_v13 = vmax.f32 %v2897_v2, 0.0  ;;  %v3157_v53 = vmax.f32 %v2974_v61, 0.0 }
 0xf3c   : > { %4990 = vmatprep.subr.bf16.mxu1 %v4989_v45  ;;  %5022 = vmatprep.subr.bf16.mxu0 %v5021_v46  ;;  %v3353_v45 = vld [vmem:[%s5525_s29 + $0x5f8] sm:$0xff]  ;;  %v5003_v46 = vpack.c.bf16 %v3303_v23, %v3302_v40  ;;  %v5035_v50 = vpack.c.bf16 %v3335_v7, %v3334_v4  ;;  %v5005_v28 = vpack.c.bf16 %v3321_v31, %v3320_v30  ;;  %v3374_v40 = vld [vmem:[%s5525_s29 + $0x6a0] sm:$0xff]  ;;  %v3407_v23 = vld [vmem:[%s5525_s29 + $0x7a8] sm:$0xff] }
 0xf3d   : > { %v5037_v6 = vpack.c.bf16 %v3353_v45, %v3352_v32  ;;  %v3406_v49 = vld [vmem:[%s5525_s29 + $0x7a0] sm:$0xff]  ;;  %v5047_v4 = vpack.c.bf16 %v3357_v10, %v3356_v35  ;;  %v3359_v31 = vld [vmem:[%s5525_s29 + $0x628] sm:$0xff]  ;;  %v3143_v32 = vmax.f32 %v5776_v16, 0.0  ;;  %v3145_v45 = vmax.f32 %v5778_v33, 0.0  ;;  %v3376_v3 = vld [vmem:[%s5525_s29 + $0x6b0] sm:$0xff] }
 0xf3e   : > { %v3358_v30 = vld [vmem:[%s5525_s29 + $0x620] sm:$0xff]  ;;  %v3391_v52 = vld [vmem:[%s5525_s29 + $0x728] sm:$0xff]  ;;  %v3377_v5 = vld [vmem:[%s5525_s29 + $0x6b8] sm:$0xff] }
 0xf3f   : > { %4992 = vmatpush3.bf16.msra.mxu1 %v4991_v55  ;;  %5024 = vmatpush3.bf16.msra.mxu0 %v5023_v43  ;;  %v3336_v55 = vld [vmem:[%s5525_s29 + $0x570] sm:$0xff]  ;;  %v3337_v43 = vld [vmem:[%s5525_s29 + $0x578] sm:$0xff]  ;;  %v5051_v16 = vpack.c.bf16 %v3359_v31, %v3358_v30  ;;  %v5053_v56 = vpack.c.bf16 %v3377_v5, %v3376_v3  ;;  %v3410_v21 = vld [vmem:[%s5525_s29 + $0x7c0] sm:$0xff] }
 0xf40   : > { %4994 = vmatprep.subr.bf16.mxu1 %v4993_v57  ;;  %5026 = vmatprep.subr.bf16.mxu0 %v5025_v59  ;;  %v3402_v57 = vld [vmem:[%s5525_s29 + $0x780] sm:$0xff]  ;;  %v3403_v59 = vld [vmem:[%s5525_s29 + $0x788] sm:$0xff]  ;;  %v5039_v19 = vpack.c.bf16 %v3337_v43, %v3336_v55  ;;  %v3360_v55 = vld [vmem:[%s5525_s29 + $0x630] sm:$0xff] }
 0xf41   : > { %v5073_v63 = vpack.c.bf16 %v3403_v59, %v3402_v57  ;;  %v3361_v43 = vld [vmem:[%s5525_s29 + $0x638] sm:$0xff]  ;;  %v3392_v57 = vld [vmem:[%s5525_s29 + $0x730] sm:$0xff]  ;;  %v3363_v2 = vld [vmem:[%s5525_s29 + $0x648] sm:$0xff] }
 0xf42   : > { %v3393_v59 = vld [vmem:[%s5525_s29 + $0x738] sm:$0xff]  ;;  %v3395_v48 = vld [vmem:[%s5525_s29 + $0x748] sm:$0xff]  ;;  %v3380_v8 = vld [vmem:[%s5525_s29 + $0x6d0] sm:$0xff] }
 0xf43   : > { %4996 = vmatpush3.bf16.msra.mxu1 %v4995_v62  ;;  %5028 = vmatpush3.bf16.msra.mxu0 %v5027_v47  ;;  %v3386_v62 = vld [vmem:[%s5525_s29 + $0x700] sm:$0xff]  ;;  %v3387_v47 = vld [vmem:[%s5525_s29 + $0x708] sm:$0xff]  ;;  %v3384_v30 = vld [vmem:[%s5525_s29 + $0x6f0] sm:$0xff] }
 0xf44   : > { %4998 = vmatprep.subr.bf16.mxu1 %v4997_v27  ;;  %5030 = vmatprep.subr.bf16.mxu0 %v5029_v29  ;;  %v3404_v27 = vld [vmem:[%s5525_s29 + $0x790] sm:$0xff]  ;;  %v5043_v29 = vpack.c.bf16 %v3355_v1, %v3354_v38  ;;  %v5075_v34 = vpack.c.bf16 %v3387_v47, %v3386_v62  ;;  %v5087_v38 = vpack.c.bf16 %v3393_v59, %v3392_v57  ;;  %v3362_v1 = vld [vmem:[%s5525_s29 + $0x640] sm:$0xff]  ;;  %v3385_v31 = vld [vmem:[%s5525_s29 + $0x6f8] sm:$0xff]  ;;  %v3158_v57 = vmax.f32 %v5787_v36, 0.0 }
 0xf45   : > { %v5077_v18 = vpack.c.bf16 %v3405_v20, %v3404_v27  ;;  %v3394_v47 = vld [vmem:[%s5525_s29 + $0x740] sm:$0xff]  ;;  %v3381_v27 = vld [vmem:[%s5525_s29 + $0x6d8] sm:$0xff]  ;;  %v3412_v20 = vld [vmem:[%s5525_s29 + $0x7d0] sm:$0xff]  ;;  %v3160_v59 = vmax.f32 %v5789_v42, 0.0 }
 0xf46   : > { %v5061_v35 = vpack.c.bf16 %v3381_v27, %v3380_v8  ;;  %v3369_v5 = vld [vmem:[%s5525_s29 + $0x678] sm:$0xff] }
 0xf47   : > { %5000 = vmatpush3.bf16.msra.mxu1 %v4999_v17  ;;  %5032 = vmatpush3.bf16.msra.mxu0 %v5031_v51  ;;  %v3388_v17 = vld [vmem:[%s5525_s29 + $0x710] sm:$0xff]  ;;  %v3389_v51 = vld [vmem:[%s5525_s29 + $0x718] sm:$0xff] }
 0xf48   : > { %5002 = vmatprep.subr.bf16.mxu1 %v5001_v24  ;;  %5034 = vmatprep.subr.bf16.mxu0 %v5033_v25  ;;  %v3154_v24 = vmax.f32 %v2895_v58, 0.0  ;;  %v3156_v25 = vmax.f32 %v5749_v14, 0.0  ;;  %v5079_v7 = vpack.c.bf16 %v3389_v51, %v3388_v17  ;;  %v3390_v14 = vld [vmem:[%s5525_s29 + $0x720] sm:$0xff]  ;;  %v3364_v58 = vld [vmem:[%s5525_s29 + $0x650] sm:$0xff]  ;;  %v3415_v51 = vld [vmem:[%s5525_s29 + $0x7e8] sm:$0xff] }
 0xf49   : > { %v5083_v33 = vpack.c.bf16 %v3391_v52, %v3390_v14  ;;  %v3414_v17 = vld [vmem:[%s5525_s29 + $0x7e0] sm:$0xff]  ;;  %v3368_v14 = vld [vmem:[%s5525_s29 + $0x670] sm:$0xff]  ;;  %v5069_v52 = vpack.c.bf16 %v3385_v31, %v3384_v30 }
 0xf4b   : > { %5004 = vmatpush3.bf16.msra.mxu1 %v5003_v46  ;;  %5036 = vmatpush3.bf16.msra.mxu0 %v5035_v50  ;;  %v5049_v46 = vpack.c.bf16 %v3375_v26, %v3374_v40  ;;  %v5081_v50 = vpack.c.bf16 %v3407_v23, %v3406_v49  ;;  %v3366_v49 = vld [vmem:[%s5525_s29 + $0x660] sm:$0xff]  ;;  %v3367_v23 = vld [vmem:[%s5525_s29 + $0x668] sm:$0xff] }
 0xf4c   : > { %5006 = vmatprep.subr.bf16.mxu1 %v5005_v28  ;;  %5038 = vmatprep.subr.bf16.mxu0 %v5037_v6  ;;  %v3408_v28 = vld [vmem:[%s5525_s29 + $0x7b0] sm:$0xff]  ;;  %v3409_v6 = vld [vmem:[%s5525_s29 + $0x7b8] sm:$0xff] }
 0xf4d   : > { %v5085_v44 = vpack.c.bf16 %v3409_v6, %v3408_v28  ;;  %v3400_v28 = vld [vmem:[%s5525_s29 + $0x770] sm:$0xff]  ;;  %v3401_v6 = vld [vmem:[%s5525_s29 + $0x778] sm:$0xff] }
 0xf4f   : > { %5008 = vmatpush3.bf16.msra.mxu1 %v5007_v39  ;;  %5040 = vmatpush3.bf16.msra.mxu0 %v5039_v19  ;;  %v3378_v39 = vld [vmem:[%s5525_s29 + $0x6c0] sm:$0xff]  ;;  %v3379_v19 = vld [vmem:[%s5525_s29 + $0x6c8] sm:$0xff] }
 0xf50   : > { %5042 = vmatprep.subr.bf16.mxu1 %v5041_v60  ;;  %5074 = vmatprep.subr.bf16.mxu0 %v5073_v63  ;;  %v3411_v60 = vld [vmem:[%s5525_s29 + $0x7c8] sm:$0xff]  ;;  %v5055_v63 = vpack.c.bf16 %v3361_v43, %v3360_v55  ;;  %v5057_v61 = vpack.c.bf16 %v3379_v19, %v3378_v39  ;;  %v3142_v55 = vmax.f32 %v5769_v22, 0.0  ;;  %v3144_v43 = vmax.f32 %v5771_v0, 0.0 }
 0xf51   : > { %v5089_v62 = vpack.c.bf16 %v3411_v60, %v3410_v21  ;;  %v4324_v21 = vld [vmem:[%s5460_s19 + $0x3] ss:$0 sm:$0xff] }
 0xf52   : > { %3788 = vmatmul.mubr.f32.vlgmr.msra.gmra.mrb[44].mxu1 %v3138_v9  ;;  %3863 = vmatmul.mubr.f32.vlgmr.msra.gmra.mrb[42].mxu0 %v3140_v15  ;;  %v5059_v9 = vpack.c.bf16 %v3363_v2, %v3362_v1  ;;  %v5091_v15 = vpack.c.bf16 %v3395_v48, %v3394_v47 }
 0xf53   : > { %3792 = vmatprep.mubr.f32.mxu1 %v3155_v13  ;;  %3867 = vmatprep.mubr.f32.mxu0 %v3157_v53  ;;  %v3396_v13 = vld [vmem:[%s5525_s29 + $0x750] sm:$0xff]  ;;  %v3397_v53 = vld [vmem:[%s5525_s29 + $0x758] sm:$0xff] }
 0xf54   : > { %5044 = vmatpush3.bf16.msra.mxu1 %v5043_v29  ;;  %5076 = vmatpush3.bf16.msra.mxu0 %v5075_v34  ;;  %v3413_v29 = vld [vmem:[%s5525_s29 + $0x7d8] sm:$0xff]  ;;  %v5095_v26 = vpack.c.bf16 %v3397_v53, %v3396_v13 }
 0xf55   : > { %5046 = vmatprep.subr.bf16.mxu1 %v5045_v54  ;;  %5078 = vmatprep.subr.bf16.mxu0 %v5077_v18  ;;  %v3365_v34 = vld [vmem:[%s5525_s29 + $0x658] sm:$0xff]  ;;  %v5093_v10 = vpack.c.bf16 %v3413_v29, %v3412_v20  ;;  %v3382_v54 = vld [vmem:[%s5525_s29 + $0x6e0] sm:$0xff]  ;;  %v3383_v18 = vld [vmem:[%s5525_s29 + $0x6e8] sm:$0xff] }
 0xf56   : > { %3793 = vmatmul.mubr.f32.gmra.mrb[46].mxu1 %v3154_v24  ;;  %3868 = vmatmul.mubr.f32.gmra.mrb[44].mxu0 %v3156_v25  ;;  %v5063_v40 = vpack.c.bf16 %v3365_v34, %v3364_v58  ;;  %v5065_v24 = vpack.c.bf16 %v3383_v18, %v3382_v54  ;;  %v5097_v25 = vpack.c.bf16 %v3415_v51, %v3414_v17 }
 0xf57   : > { %3937 = vmatprep.mubr.f32.mxu1 %v3143_v32  ;;  %4012 = vmatprep.mubr.f32.mxu0 %v3145_v45  ;;  %v3416_v32 = vld [vmem:[%s5525_s29 + $0x7f0] sm:$0xff]  ;;  %v3417_v45 = vld [vmem:[%s5525_s29 + $0x7f8] sm:$0xff] }
 0xf58   : > { %5048 = vmatpush3.bf16.msra.mxu1 %v5047_v4  ;;  %5080 = vmatpush3.bf16.msra.mxu0 %v5079_v7  ;;  %v3398_v4 = vld [vmem:[%s5525_s29 + $0x760] sm:$0xff]  ;;  %v3399_v7 = vld [vmem:[%s5525_s29 + $0x768] sm:$0xff]  ;;  %v5101_v3 = vpack.c.bf16 %v3417_v45, %v3416_v32 }
 0xf59   : > { %5050 = vmatprep.subr.bf16.mxu1 %v5049_v46  ;;  %5082 = vmatprep.subr.bf16.mxu0 %v5081_v50  ;;  %v5067_v46 = vpack.c.bf16 %v3367_v23, %v3366_v49  ;;  %v5099_v50 = vpack.c.bf16 %v3399_v7, %v3398_v4 }
 0xf5c   : > { %5052 = vmatpush3.bf16.msra.mxu1 %v5051_v16  ;;  %5084 = vmatpush3.bf16.msra.mxu0 %v5083_v33  ;;  %v5071_v16 = vpack.c.bf16 %v3369_v5, %v3368_v14  ;;  %v5103_v33 = vpack.c.bf16 %v3401_v6, %v3400_v28 }
 0xf5d   : > { %5054 = vmatprep.subr.bf16.mxu1 %v5053_v56  ;;  %5086 = vmatprep.subr.bf16.mxu0 %v5085_v44  ;;  %v3159_v56 = vmax.f32 %v5794_v11, 0.0  ;;  %v3161_v44 = vmax.f32 %v5796_v12, 0.0 }
 0xf60   : > { %5056 = vmatpush3.bf16.msra.mxu1 %v5055_v63  ;;  %5088 = vmatpush3.bf16.msra.mxu0 %v5087_v38 }
 0xf61   : > { %5058 = vmatprep.subr.bf16.mxu1 %v5057_v61  ;;  %5090 = vmatprep.subr.bf16.mxu0 %v5089_v62 }
 0xf64   : > { %5060 = vmatpush3.bf16.msra.mxu1 %v5059_v9  ;;  %5092 = vmatpush3.bf16.msra.mxu0 %v5091_v15 }
 0xf65   : > { %5062 = vmatprep.subr.bf16.mxu1 %v5061_v35  ;;  %5094 = vmatprep.subr.bf16.mxu0 %v5093_v10 }
 0xf68   : > { %5064 = vmatpush3.bf16.msra.mxu1 %v5063_v40  ;;  %5096 = vmatpush3.bf16.msra.mxu0 %v5095_v26 }
 0xf69   : > { %5066 = vmatprep.subr.bf16.mxu1 %v5065_v24  ;;  %5098 = vmatprep.subr.bf16.mxu0 %v5097_v25 }
 0xf6c   : > { %5068 = vmatpush3.bf16.msra.mxu1 %v5067_v46  ;;  %5100 = vmatpush3.bf16.msra.mxu0 %v5099_v50 }
 0xf6d   : > { %5070 = vmatprep.subr.bf16.mxu1 %v5069_v52  ;;  %5102 = vmatprep.subr.bf16.mxu0 %v5101_v3 }
 0xf70   : > { %5072 = vmatpush3.bf16.msra.mxu1 %v5071_v16  ;;  %5104 = vmatpush3.bf16.msra.mxu0 %v5103_v33 }
 0xf73   : > { %3938 = vmatmul.mubr.f32.vlgmr.msra.gmra.mrb[48].mxu1 %v3142_v55  ;;  %4013 = vmatmul.mubr.f32.vlgmr.msra.gmra.mrb[46].mxu0 %v3144_v43 }
 0xf74   : > { %3942 = vmatprep.mubr.f32.mxu1 %v3159_v56  ;;  %4017 = vmatprep.mubr.f32.mxu0 %v3161_v44 }
 0xf77   : > { %3943 = vmatmul.mubr.f32.gmra.mrb[50].mxu1 %v3158_v57  ;;  %4018 = vmatmul.mubr.f32.gmra.mrb[48].mxu0 %v3160_v59 }
 0xfe4   : > { %v4418_v39 = vpop.f32.mrb[36].mxu1  ;;  %v4456_v19 = vpop.f32.mrb[34].mxu0 }
 0xfe5   : > { %v4419_v22 = vpop.f32.mrb[37].mxu1  ;;  %v4457_v60 = vpop.f32.mrb[35].mxu0 }
 0xfe6   : > { %v4420_v0 = vadd.f32 %v4419_v22, %v4418_v39  ;;  %v4458_v63 = vadd.f32 %v4457_v60, %v4456_v19 }
 0xfe8   : > { %v3490_v11 = vadd.f32 %v4420_v0, %v4324_v21  ;;  %v4421_v38 = vpop.f32.mrb[38].mxu1  ;;  %v4459_v12 = vpop.f32.mrb[36].mxu0 }
 0xfe9   : > { %v4422_v1 = vpop.f32.mrb[39].mxu1  ;;  %v4460_v2 = vpop.f32.mrb[37].mxu0 }
 0xfea   : > { %v3565_v61 = vadd.f32 %v4458_v63, %v3490_v11  ;;  %v4423_v62 = vadd.f32 %v4422_v1, %v4421_v38  ;;  %v4461_v47 = vadd.f32 %v4460_v2, %v4459_v12 }
 0xfec   : > { %v3495_v36 = vadd.f32 %v4423_v62, %v4324_v21 }
 0xfee   : > { %v3570_v48 = vadd.f32 %v4461_v47, %v3495_v36 }
0x1004   : > { %v4494_v42 = vpop.f32.mrb[40].mxu1  ;;  %v4532_v8 = vpop.f32.mrb[38].mxu0 }
0x1005   : > { %v4495_v27 = vpop.f32.mrb[41].mxu1  ;;  %v4533_v20 = vpop.f32.mrb[39].mxu0 }
0x1006   : > { %v4496_v29 = vadd.f32 %v4495_v27, %v4494_v42  ;;  %v4534_v9 = vadd.f32 %v4533_v20, %v4532_v8 }
0x1008   : > { %v3640_v15 = vadd.f32 %v4496_v29, %v3565_v61  ;;  %v4497_v58 = vpop.f32.mrb[42].mxu1  ;;  %v4535_v34 = vpop.f32.mrb[40].mxu0 }
0x1009   : > { %v4498_v35 = vpop.f32.mrb[43].mxu1  ;;  %v4536_v10 = vpop.f32.mrb[41].mxu0 }
0x100a   : > { %v3715_v13 = vadd.f32 %v4534_v9, %v3640_v15  ;;  %v4499_v53 = vadd.f32 %v4498_v35, %v4497_v58  ;;  %v4537_v54 = vadd.f32 %v4536_v10, %v4535_v34  ;;  %v4325_v15 = vld [vmem:[%s5460_s19 + $0x4] ss:$0 sm:$0xff]  ;;  %v4326_v34 = vld [vmem:[%s5460_s19 + $0x5] ss:$0 sm:$0xff] }
0x100c   : > { %v3645_v18 = vadd.f32 %v4499_v53, %v3570_v48 }
0x100e   : > { %v3720_v17 = vadd.f32 %v4537_v54, %v3645_v18 }
0x1025   : > { %v4570_v51 = vpop.f32.mrb[44].mxu1  ;;  %v4608_v40 = vpop.f32.mrb[42].mxu0 }
0x1026   : > { %v4571_v26 = vpop.f32.mrb[45].mxu1  ;;  %v4609_v49 = vpop.f32.mrb[43].mxu0 }
0x1027   : > { %v4572_v23 = vadd.f32 %v4571_v26, %v4570_v51  ;;  %v4610_v24 = vadd.f32 %v4609_v49, %v4608_v40  ;;  %v4068_v51 = vld [vmem:[%s5998_s3 + $0x8] sm:$0xff] }
0x1029   : > { %v3790_v25 = vadd.f32 %v4572_v23, %v3715_v13  ;;  %v4573_v4 = vpop.f32.mrb[46].mxu1  ;;  %v4611_v7 = vpop.f32.mrb[44].mxu0 }
0x102a   : > { %v4574_v30 = vpop.f32.mrb[47].mxu1  ;;  %v4612_v31 = vpop.f32.mrb[45].mxu0 }
0x102b   : > { %v3865_v32 = vadd.f32 %v4610_v24, %v3790_v25  ;;  %v4575_v45 = vadd.f32 %v4574_v30, %v4573_v4  ;;  %v4613_v46 = vadd.f32 %v4612_v31, %v4611_v7 }
0x102d   : > { %v3795_v50 = vadd.f32 %v4575_v45, %v3720_v17 }
0x102f   : > { %v3870_v14 = vadd.f32 %v4613_v46, %v3795_v50 }
0x1046   : > { %v4646_v52 = vpop.f32.mrb[48].mxu1  ;;  %v4684_v3 = vpop.f32.mrb[46].mxu0 }
0x1047   : > { %v4647_v5 = vpop.f32.mrb[49].mxu1  ;;  %v4685_v28 = vpop.f32.mrb[47].mxu0 }
0x1048   : > { %v4648_v6 = vadd.f32 %v4647_v5, %v4646_v52  ;;  %v4686_v16 = vadd.f32 %v4685_v28, %v4684_v3 }
0x104a   : > { %v3940_v33 = vadd.f32 %v4648_v6, %v3865_v32  ;;  %v4649_v55 = vpop.f32.mrb[50].mxu1  ;;  %v4687_v43 = vpop.f32.mrb[48].mxu0 }
0x104b   : > { %v4650_v56 = vpop.f32.mrb[51].mxu1  ;;  %v4688_v44 = vpop.f32.mrb[49].mxu0 }
0x104c   : > { %v4015_v57 = vadd.f32 %v4686_v16, %v3940_v33  ;;  %v4651_v59 = vadd.f32 %v4650_v56, %v4649_v55  ;;  %v4689_v39 = vadd.f32 %v4688_v44, %v4687_v43 }
0x104e   : > { %v3945_v19 = vadd.f32 %v4651_v59, %v3870_v14  ;;  %v4023_v21 = vadd.f32 %v4015_v57, %v5497_v37 }
0x1050   : > { %v4020_v22 = vadd.f32 %v4689_v39, %v3945_v19  ;;  %v4025_v60 = vsel %vm589_vm3, %v4023_v21, 0.0 }
0x1051   : > { %4026 = vadd.xlane.f32.xlu0 %v4025_v60 }
0x1052   : > { %v4024_v0 = vadd.f32 %v4020_v22, %v5505_v41  ;;  %v4067_v41 = vld [vmem:[%s5998_s3] sm:$0xff] }
0x1053   : > { %4810 = vmatprep.mubr.msk.f32.mxu1 %vm589_vm3, %v4067_v41 }
0x1054   : > { %v4028_v63 = vsel %vm589_vm3, %v4024_v0, 0.0 }
0x1055   : > { %4029 = vadd.xlane.f32.xlu1 %v4028_v63 }
0x10de   : > { %v4027_v11 = vpop.xlane.xlu0 %4026 }
0x10df   : > { %v4031_v38 = vmul.f32 0.0625, %v4027_v11 }
0x10e1   : > { %v4033_v12 = vsub.f32 %v4023_v21, %v4031_v38 }
0x10e2   : > { %v4030_v1 = vpop.xlane.xlu1 %4029 }
0x10e3   : > { %v4032_v2 = vmul.f32 0.0625, %v4030_v1  ;;  %v4035_v61 = vmul.f32 %v4033_v12, %v4033_v12 }
0x10e5   : > { %v4034_v62 = vsub.f32 %v4024_v0, %v4032_v2  ;;  %v4037_v47 = vsel %vm589_vm3, %v4035_v61, 0.0 }
0x10e6   : > { %4038 = vadd.xlane.f32.xlu0 %v4037_v47 }
0x10e7   : > { %v4036_v37 = vmul.f32 %v4034_v62, %v4034_v62 }
0x10e9   : > { %v4040_v36 = vsel %vm589_vm3, %v4036_v37, 0.0 }
0x10ea   : > { %4041 = vadd.xlane.f32.xlu1 %v4040_v36 }
0x1173   : > { %v4039_v48 = vpop.xlane.xlu0 %4038 }
0x1174   : > { %v4043_v42 = vmul.f32 0.0625, %v4039_v48 }
0x1176   : > { %v4045_v8 = vadd.f32 1e-05, %v4043_v42 }
0x1177   : > { %v4042_v27 = vpop.xlane.xlu1 %4041 }
0x1178   : > { %5172 = vrsqrt.f32 %v4045_v8  ;;  %v4044_v20 = vmul.f32 0.0625, %v4042_v27 }
0x117a   : > { %v4046_v29 = vadd.f32 1e-05, %v4044_v20 }
0x117c   : > { %5174 = vrsqrt.f32 %v4046_v29 }
0x1182   : > { %v5173_v9 = vpop.eup %5172 }
0x1183   : > { %v4049_v58 = vmul.f32 %v5173_v9, %v4033_v12 }
0x1185   : > { %v4056_v35 = vmul.f32 %v4325_v15, %v4049_v58 }
0x1186   : > { %v5175_v10 = vpop.eup %5174 }
0x1187   : > { %v4050_v13 = vmul.f32 %v5175_v10, %v4034_v62  ;;  %v4063_v53 = vadd.f32 %v4326_v34, %v4056_v35 }
0x1189   : > { %v4057_v54 = vmul.f32 %v4325_v15, %v4050_v13  ;;  %4065 = vst.msk [vmem:[#allocation2] sm:$0xff] %vm589_vm3, %v4063_v53 }
0x118b   : > { %v4064_v18 = vadd.f32 %v4326_v34, %v4057_v54 }
0x118d   : > { %4066 = vst.msk [vmem:[#allocation2 + $0x8] sm:$0xff] %vm589_vm3, %v4064_v18  ;;  %v5105_v17 = vpack.c.bf16 %v4064_v18, %v4063_v53 }
0x118f   : > { %5106 = vmatprep.subr.bf16.mxu1 %v5105_v17 }
0x1190   : > { %5108 = vmatpush3.bf16.msra.mxu1 %v5105_v17 }
0x1193   : > { %4811 = vmatmul.mubr.msk.f32.vlgmr.msra.gmra.mrb[52].mxu1 %vm589_vm3, %v4068_v51 }
0x1266   : > { %v4812_v40 = vpop.f32.mrb[52].mxu1 }
0x1267   : > { %4151 = vst.msk [vmem:[%s6006_s11 + $0x8] sm:$0xff] %vm589_vm3, %v4812_v40  ;;  %v4141_v26 = vpop.f32.mrb[53].mxu1 }
0x1268   : > { %4150 = vst.msk [vmem:[%s6006_s11] sm:$0xff] %vm589_vm3, %v4141_v26 }
0x1269 PF: > { %s21_s17 = sadd.s32 1, %s5182_s17  }
0x126a   : > { %p18_p5 = scmp.ge.s32.totalorder %s21_s17, 4  }
0x126c   :  { %20 = sbr.rel (!%p18_p5) target bundleno = 1 (0x1), region = 108 }

</bundles_post_ra>
